<compile_context>
chip_gen: v6e
topology: v6e:2x2x1
jax: 0.10.0
libtpu: 0.0.40
codegen_flags: <defaults>
</compile_context>

<pallas_src>
import jax
import jax.numpy as jnp
from jax import lax
from jax.experimental import pallas as pl
from jax.experimental.pallas import tpu as pltpu

C_IN = 64
KH = KW = 10

_NT_DIMS = (((1,), (1,)), ((), ()))  # contract dim 1 of lhs with dim 1 of rhs


def _conv_kernel(x_ref, wb_ref, b_ref, o_ref):
    """One image per grid step.

    x_ref : (H, W*C)       f32 VMEM  -- NHWC image with (W, C) flattened.
    wb_ref: (KH, OW, W*C)  f32 VMEM  -- banded weights (same block every step).
    b_ref : (1,)           f32 SMEM  -- bias.
    o_ref : (OH, OW)       f32 VMEM  -- one vreg at these sizes.
    """
    n_kh = wb_ref.shape[0]
    OH, OW = o_ref.shape

    acc = jnp.zeros((OH, OW), jnp.float32)
    # Static unroll over the KH kernel rows: 10 MXU dots with K = W*C.
    for kh in range(n_kh):
        rows = x_ref[pl.ds(kh, OH), :]                       # (OH, W*C)
        acc = acc + lax.dot_general(
            rows, wb_ref[kh], _NT_DIMS,
            precision=lax.Precision.HIGHEST,                 # true-f32 matmul
            preferred_element_type=jnp.float32)
    o_ref[...] = acc + b_ref[0]


def _banded_weights(w_oihw, W):
    """(1, C, KH, KW) -> (KH, OW, W*C) banded matrix.

    wb[kh, ow, w*C + c] == w[0, c, kh, w - ow]  for 0 <= w - ow < KW, else 0,
    so  out[oh, ow] = sum_kh  x_flat[oh + kh, :] . wb[kh, ow, :].
    """
    C = w_oihw.shape[1]
    OW = W - KW + 1
    w_hwc = jnp.transpose(w_oihw[0], (1, 2, 0))              # (KH, KW, C)
    w_flat = w_hwc.reshape(KH, KW * C)                       # (KH, KW*C)
    rows = [jnp.pad(w_flat, ((0, 0), (ow * C, (W - KW - ow) * C)))
            for ow in range(OW)]
    return jnp.stack(rows, axis=1)                           # (KH, OW, W*C)


@jax.jit
def conv2d_pallas_nhwc(x_nhwc, w_oihw, b):
    """NHWC-native entry point: (N, H, W, C) f32 -> (N, OH, OW) f32."""
    N, H, W, C = x_nhwc.shape
    assert C == C_IN and w_oihw.shape == (1, C_IN, KH, KW) and b.shape == (1,)
    OH, OW = H - KH + 1, W - KW + 1

    x_flat = x_nhwc.reshape(N, H, W * C)                     # contiguous reshape
    wb = _banded_weights(w_oihw, W)                          # (KH, OW, W*C)

    return pl.pallas_call(
        _conv_kernel,
        out_shape=jax.ShapeDtypeStruct((N, OH, OW), jnp.float32),
        grid=(N,),
        in_specs=[
            pl.BlockSpec((None, H, W * C), lambda n: (n, 0, 0)),
            pl.BlockSpec((KH, OW, W * C), lambda n: (0, 0, 0)),
            pl.BlockSpec(memory_space=pltpu.MemorySpace.SMEM),
        ],
        out_specs=pl.BlockSpec((None, OH, OW), lambda n: (n, 0, 0)),
        compiler_params=pltpu.CompilerParams(
            dimension_semantics=("parallel",)),
    )(x_flat, wb, b)


@jax.jit
def conv2d_pallas(x_nchw, w_oihw, b):
    """PyTorch-parity entry point: NCHW in, NCHW out (Cout == 1)."""
    # TODO(synk): if the surrounding model keeps activations NHWC end-to-end,
    # call conv2d_pallas_nhwc directly and skip this transpose (it is one extra
    # HBM round-trip over the input); CompilerParams(allow_input_fusion=...)
    # is an alternative way to let XLA fold it into the pallas_call input.
    x_nhwc = jnp.transpose(x_nchw, (0, 2, 3, 1))             # (N, H, W, C)
    out = conv2d_pallas_nhwc(x_nhwc, w_oihw, b)              # (N, OH, OW)
    return out[:, None, :, :]                                # (N, 1, OH, OW)


if __name__ == "__main__":
    key = jax.random.PRNGKey(0)
    k1, k2, k3 = jax.random.split(key, 3)

    N, C, H, W = 2, C_IN, 16, 16
    x = jax.random.normal(k1, (N, C, H, W), jnp.float32)

    # Deterministic PyTorch-style init: U(-bound, bound), bound = 1/sqrt(fan_in)
    fan_in = C * KH * KW
    bound = 1.0 / (fan_in ** 0.5)
    w = jax.random.uniform(k2, (1, C, KH, KW), jnp.float32, -bound, bound)
    b = jax.random.uniform(k3, (1,), jnp.float32, -bound, bound)

    out = jax.block_until_ready(conv2d_pallas(x, w, b))

    # Reference check against XLA's conv (same semantics as F.conv2d, VALID).
    ref = lax.conv_general_dilated(
        x, w, window_strides=(1, 1), padding="VALID",
        dimension_numbers=("NCHW", "OIHW", "NCHW"),
        precision=lax.Precision.HIGHEST) + b[None, :, None, None]

    assert out.shape == ref.shape == (N, 1, H - KH + 1, W - KW + 1)
    assert jnp.allclose(out, ref, atol=1e-3, rtol=1e-3)
    print("KERNEL_OK")
</pallas_src>

<mosaic_0001>
module attributes {stable_mosaic.version = 11 : i64} {
  func.func @_conv_kernel(%arg0: i32, %arg1: memref<1x16x1024xf32, #tpu.memory_space<vmem>>, %arg2: memref<10x7x1024xf32, #tpu.memory_space<vmem>>, %arg3: memref<1xf32, #tpu.memory_space<smem>>, %arg4: memref<1x7x7xf32, #tpu.memory_space<vmem>>) attributes {dimension_semantics = [#tpu.dimension_semantics<parallel>], iteration_bounds = array<i64: 2>, scalar_prefetch = 0 : i64, scratch_operands = 0 : i64, tpu.core_type = #tpu.core_type<tc>, window_params = [{transform_indices = @transform_0, window_bounds = array<i64: 1, 16, 1024>}, {pipeline_mode = #tpu.pipeline_mode<synchronous>, transform_indices = @transform_1, window_bounds = array<i64: 10, 7, 1024>}, {transform_indices = @transform_2, window_bounds = array<i64: 1>}, {transform_indices = @transform_3, window_bounds = array<i64: 1, 7, 7>}]} {
    %cst = arith.constant 0.000000e+00 : f32
    %0 = vector.broadcast %cst : f32 to vector<7x7xf32>
    %c0 = arith.constant 0 : index
    %c0_0 = arith.constant 0 : index
    %c0_1 = arith.constant 0 : index
    %1 = vector.load %arg1[%c0, %c0_0, %c0_1] : memref<1x16x1024xf32, #tpu.memory_space<vmem>>, vector<1x7x1024xf32>
    %2 = vector.shape_cast %1 : vector<1x7x1024xf32> to vector<7x1024xf32>
    %c0_2 = arith.constant 0 : index
    %c0_3 = arith.constant 0 : index
    %c0_4 = arith.constant 0 : index
    %3 = vector.load %arg2[%c0_2, %c0_3, %c0_4] : memref<10x7x1024xf32, #tpu.memory_space<vmem>>, vector<1x7x1024xf32>
    %4 = vector.shape_cast %3 : vector<1x7x1024xf32> to vector<7x1024xf32>
    %cst_5 = arith.constant dense<0.000000e+00> : vector<7x7xf32>
    %5 = tpu.matmul %2, %4, %cst_5 {dimension_numbers = #tpu.dot_dimension_numbers<[1], [1], [0], [0], [0, 0, 1, 0], [], []>, precision = #tpu.contract_precision<fp32>} : vector<7x1024xf32>, vector<7x1024xf32>, vector<7x7xf32> -> vector<7x7xf32>
    %6 = arith.addf %0, %5 : vector<7x7xf32>
    %c0_6 = arith.constant 0 : index
    %c1 = arith.constant 1 : index
    %c0_7 = arith.constant 0 : index
    %7 = vector.load %arg1[%c0_6, %c1, %c0_7] : memref<1x16x1024xf32, #tpu.memory_space<vmem>>, vector<1x7x1024xf32>
    %8 = vector.shape_cast %7 : vector<1x7x1024xf32> to vector<7x1024xf32>
    %c1_8 = arith.constant 1 : index
    %c0_9 = arith.constant 0 : index
    %c0_10 = arith.constant 0 : index
    %9 = vector.load %arg2[%c1_8, %c0_9, %c0_10] : memref<10x7x1024xf32, #tpu.memory_space<vmem>>, vector<1x7x1024xf32>
    %10 = vector.shape_cast %9 : vector<1x7x1024xf32> to vector<7x1024xf32>
    %cst_11 = arith.constant dense<0.000000e+00> : vector<7x7xf32>
    %11 = tpu.matmul %8, %10, %cst_11 {dimension_numbers = #tpu.dot_dimension_numbers<[1], [1], [0], [0], [0, 0, 1, 0], [], []>, precision = #tpu.contract_precision<fp32>} : vector<7x1024xf32>, vector<7x1024xf32>, vector<7x7xf32> -> vector<7x7xf32>
    %12 = arith.addf %6, %11 : vector<7x7xf32>
    %c0_12 = arith.constant 0 : index
    %c2 = arith.constant 2 : index
    %c0_13 = arith.constant 0 : index
    %13 = vector.load %arg1[%c0_12, %c2, %c0_13] : memref<1x16x1024xf32, #tpu.memory_space<vmem>>, vector<1x7x1024xf32>
    %14 = vector.shape_cast %13 : vector<1x7x1024xf32> to vector<7x1024xf32>
    %c2_14 = arith.constant 2 : index
    %c0_15 = arith.constant 0 : index
    %c0_16 = arith.constant 0 : index
    %15 = vector.load %arg2[%c2_14, %c0_15, %c0_16] : memref<10x7x1024xf32, #tpu.memory_space<vmem>>, vector<1x7x1024xf32>
    %16 = vector.shape_cast %15 : vector<1x7x1024xf32> to vector<7x1024xf32>
    %cst_17 = arith.constant dense<0.000000e+00> : vector<7x7xf32>
    %17 = tpu.matmul %14, %16, %cst_17 {dimension_numbers = #tpu.dot_dimension_numbers<[1], [1], [0], [0], [0, 0, 1, 0], [], []>, precision = #tpu.contract_precision<fp32>} : vector<7x1024xf32>, vector<7x1024xf32>, vector<7x7xf32> -> vector<7x7xf32>
    %18 = arith.addf %12, %17 : vector<7x7xf32>
    %c0_18 = arith.constant 0 : index
    %c3 = arith.constant 3 : index
    %c0_19 = arith.constant 0 : index
    %19 = vector.load %arg1[%c0_18, %c3, %c0_19] : memref<1x16x1024xf32, #tpu.memory_space<vmem>>, vector<1x7x1024xf32>
    %20 = vector.shape_cast %19 : vector<1x7x1024xf32> to vector<7x1024xf32>
    %c3_20 = arith.constant 3 : index
    %c0_21 = arith.constant 0 : index
    %c0_22 = arith.constant 0 : index
    %21 = vector.load %arg2[%c3_20, %c0_21, %c0_22] : memref<10x7x1024xf32, #tpu.memory_space<vmem>>, vector<1x7x1024xf32>
    %22 = vector.shape_cast %21 : vector<1x7x1024xf32> to vector<7x1024xf32>
    %cst_23 = arith.constant dense<0.000000e+00> : vector<7x7xf32>
    %23 = tpu.matmul %20, %22, %cst_23 {dimension_numbers = #tpu.dot_dimension_numbers<[1], [1], [0], [0], [0, 0, 1, 0], [], []>, precision = #tpu.contract_precision<fp32>} : vector<7x1024xf32>, vector<7x1024xf32>, vector<7x7xf32> -> vector<7x7xf32>
    %24 = arith.addf %18, %23 : vector<7x7xf32>
    %c0_24 = arith.constant 0 : index
    %c4 = arith.constant 4 : index
    %c0_25 = arith.constant 0 : index
    %25 = vector.load %arg1[%c0_24, %c4, %c0_25] : memref<1x16x1024xf32, #tpu.memory_space<vmem>>, vector<1x7x1024xf32>
    %26 = vector.shape_cast %25 : vector<1x7x1024xf32> to vector<7x1024xf32>
    %c4_26 = arith.constant 4 : index
    %c0_27 = arith.constant 0 : index
    %c0_28 = arith.constant 0 : index
    %27 = vector.load %arg2[%c4_26, %c0_27, %c0_28] : memref<10x7x1024xf32, #tpu.memory_space<vmem>>, vector<1x7x1024xf32>
    %28 = vector.shape_cast %27 : vector<1x7x1024xf32> to vector<7x1024xf32>
    %cst_29 = arith.constant dense<0.000000e+00> : vector<7x7xf32>
    %29 = tpu.matmul %26, %28, %cst_29 {dimension_numbers = #tpu.dot_dimension_numbers<[1], [1], [0], [0], [0, 0, 1, 0], [], []>, precision = #tpu.contract_precision<fp32>} : vector<7x1024xf32>, vector<7x1024xf32>, vector<7x7xf32> -> vector<7x7xf32>
    %30 = arith.addf %24, %29 : vector<7x7xf32>
    %c0_30 = arith.constant 0 : index
    %c5 = arith.constant 5 : index
    %c0_31 = arith.constant 0 : index
    %31 = vector.load %arg1[%c0_30, %c5, %c0_31] : memref<1x16x1024xf32, #tpu.memory_space<vmem>>, vector<1x7x1024xf32>
    %32 = vector.shape_cast %31 : vector<1x7x1024xf32> to vector<7x1024xf32>
    %c5_32 = arith.constant 5 : index
    %c0_33 = arith.constant 0 : index
    %c0_34 = arith.constant 0 : index
    %33 = vector.load %arg2[%c5_32, %c0_33, %c0_34] : memref<10x7x1024xf32, #tpu.memory_space<vmem>>, vector<1x7x1024xf32>
    %34 = vector.shape_cast %33 : vector<1x7x1024xf32> to vector<7x1024xf32>
    %cst_35 = arith.constant dense<0.000000e+00> : vector<7x7xf32>
    %35 = tpu.matmul %32, %34, %cst_35 {dimension_numbers = #tpu.dot_dimension_numbers<[1], [1], [0], [0], [0, 0, 1, 0], [], []>, precision = #tpu.contract_precision<fp32>} : vector<7x1024xf32>, vector<7x1024xf32>, vector<7x7xf32> -> vector<7x7xf32>
    %36 = arith.addf %30, %35 : vector<7x7xf32>
    %c0_36 = arith.constant 0 : index
    %c6 = arith.constant 6 : index
    %c0_37 = arith.constant 0 : index
    %37 = vector.load %arg1[%c0_36, %c6, %c0_37] : memref<1x16x1024xf32, #tpu.memory_space<vmem>>, vector<1x7x1024xf32>
    %38 = vector.shape_cast %37 : vector<1x7x1024xf32> to vector<7x1024xf32>
    %c6_38 = arith.constant 6 : index
    %c0_39 = arith.constant 0 : index
    %c0_40 = arith.constant 0 : index
    %39 = vector.load %arg2[%c6_38, %c0_39, %c0_40] : memref<10x7x1024xf32, #tpu.memory_space<vmem>>, vector<1x7x1024xf32>
    %40 = vector.shape_cast %39 : vector<1x7x1024xf32> to vector<7x1024xf32>
    %cst_41 = arith.constant dense<0.000000e+00> : vector<7x7xf32>
    %41 = tpu.matmul %38, %40, %cst_41 {dimension_numbers = #tpu.dot_dimension_numbers<[1], [1], [0], [0], [0, 0, 1, 0], [], []>, precision = #tpu.contract_precision<fp32>} : vector<7x1024xf32>, vector<7x1024xf32>, vector<7x7xf32> -> vector<7x7xf32>
    %42 = arith.addf %36, %41 : vector<7x7xf32>
    %c0_42 = arith.constant 0 : index
    %c7 = arith.constant 7 : index
    %c0_43 = arith.constant 0 : index
    %43 = vector.load %arg1[%c0_42, %c7, %c0_43] : memref<1x16x1024xf32, #tpu.memory_space<vmem>>, vector<1x7x1024xf32>
    %44 = vector.shape_cast %43 : vector<1x7x1024xf32> to vector<7x1024xf32>
    %c7_44 = arith.constant 7 : index
    %c0_45 = arith.constant 0 : index
    %c0_46 = arith.constant 0 : index
    %45 = vector.load %arg2[%c7_44, %c0_45, %c0_46] : memref<10x7x1024xf32, #tpu.memory_space<vmem>>, vector<1x7x1024xf32>
    %46 = vector.shape_cast %45 : vector<1x7x1024xf32> to vector<7x1024xf32>
    %cst_47 = arith.constant dense<0.000000e+00> : vector<7x7xf32>
    %47 = tpu.matmul %44, %46, %cst_47 {dimension_numbers = #tpu.dot_dimension_numbers<[1], [1], [0], [0], [0, 0, 1, 0], [], []>, precision = #tpu.contract_precision<fp32>} : vector<7x1024xf32>, vector<7x1024xf32>, vector<7x7xf32> -> vector<7x7xf32>
    %48 = arith.addf %42, %47 : vector<7x7xf32>
    %c0_48 = arith.constant 0 : index
    %c8 = arith.constant 8 : index
    %c0_49 = arith.constant 0 : index
    %49 = vector.load %arg1[%c0_48, %c8, %c0_49] : memref<1x16x1024xf32, #tpu.memory_space<vmem>>, vector<1x7x1024xf32>
    %50 = vector.shape_cast %49 : vector<1x7x1024xf32> to vector<7x1024xf32>
    %c8_50 = arith.constant 8 : index
    %c0_51 = arith.constant 0 : index
    %c0_52 = arith.constant 0 : index
    %51 = vector.load %arg2[%c8_50, %c0_51, %c0_52] : memref<10x7x1024xf32, #tpu.memory_space<vmem>>, vector<1x7x1024xf32>
    %52 = vector.shape_cast %51 : vector<1x7x1024xf32> to vector<7x1024xf32>
    %cst_53 = arith.constant dense<0.000000e+00> : vector<7x7xf32>
    %53 = tpu.matmul %50, %52, %cst_53 {dimension_numbers = #tpu.dot_dimension_numbers<[1], [1], [0], [0], [0, 0, 1, 0], [], []>, precision = #tpu.contract_precision<fp32>} : vector<7x1024xf32>, vector<7x1024xf32>, vector<7x7xf32> -> vector<7x7xf32>
    %54 = arith.addf %48, %53 : vector<7x7xf32>
    %c0_54 = arith.constant 0 : index
    %c9 = arith.constant 9 : index
    %c0_55 = arith.constant 0 : index
    %55 = vector.load %arg1[%c0_54, %c9, %c0_55] : memref<1x16x1024xf32, #tpu.memory_space<vmem>>, vector<1x7x1024xf32>
    %56 = vector.shape_cast %55 : vector<1x7x1024xf32> to vector<7x1024xf32>
    %c9_56 = arith.constant 9 : index
    %c0_57 = arith.constant 0 : index
    %c0_58 = arith.constant 0 : index
    %57 = vector.load %arg2[%c9_56, %c0_57, %c0_58] : memref<10x7x1024xf32, #tpu.memory_space<vmem>>, vector<1x7x1024xf32>
    %58 = vector.shape_cast %57 : vector<1x7x1024xf32> to vector<7x1024xf32>
    %cst_59 = arith.constant dense<0.000000e+00> : vector<7x7xf32>
    %59 = tpu.matmul %56, %58, %cst_59 {dimension_numbers = #tpu.dot_dimension_numbers<[1], [1], [0], [0], [0, 0, 1, 0], [], []>, precision = #tpu.contract_precision<fp32>} : vector<7x1024xf32>, vector<7x1024xf32>, vector<7x7xf32> -> vector<7x7xf32>
    %60 = arith.addf %54, %59 : vector<7x7xf32>
    %c0_60 = arith.constant 0 : index
    %61 = memref.load %arg3[%c0_60] : memref<1xf32, #tpu.memory_space<smem>>
    %62 = vector.broadcast %61 : f32 to vector<7x7xf32>
    %63 = arith.addf %60, %62 : vector<7x7xf32>
    %c0_61 = arith.constant 0 : index
    %c0_62 = arith.constant 0 : index
    %c0_63 = arith.constant 0 : index
    %64 = vector.load %arg4[%c0_61, %c0_62, %c0_63] : memref<1x7x7xf32, #tpu.memory_space<vmem>>, vector<1x7x7xf32>
    %65 = vector.shape_cast %64 : vector<1x7x7xf32> to vector<7x7xf32>
    %66 = vector.shape_cast %63 : vector<7x7xf32> to vector<1x7x7xf32>
    tpu.vector_store %arg4[%c0_61, %c0_62, %c0_63], %66 {strides = array<i32>} : memref<1x7x7xf32, #tpu.memory_space<vmem>>, vector<1x7x7xf32>,
    return
  }
  func.func @transform_0(%arg0: i32) -> (i32, i32, i32) {
    %c0_i32 = arith.constant 0 : i32
    %c0_i32_0 = arith.constant 0 : i32
    %c0_i32_1 = arith.constant 0 : i32
    return %arg0, %c0_i32, %c0_i32_0 : i32, i32, i32
  }
  func.func @transform_1(%arg0: i32) -> (i32, i32, i32) {
    %c0_i32 = arith.constant 0 : i32
    %c0_i32_0 = arith.constant 0 : i32
    %c0_i32_1 = arith.constant 0 : i32
    %c0_i32_2 = arith.constant 0 : i32
    return %c0_i32, %c0_i32_0, %c0_i32_1 : i32, i32, i32
  }
  func.func @transform_2(%arg0: i32) -> i32 {
    %c0_i32 = arith.constant 0 : i32
    %c0_i32_0 = arith.constant 0 : i32
    return %c0_i32 : i32
  }
  func.func @transform_3(%arg0: i32) -> (i32, i32, i32) {
    %c0_i32 = arith.constant 0 : i32
    %c0_i32_0 = arith.constant 0 : i32
    %c0_i32_1 = arith.constant 0 : i32
    return %arg0, %c0_i32, %c0_i32_0 : i32, i32, i32
  }
}

</mosaic_0001>

<bundles_post_ra>
// kernel: conv2d_pallas_nhwc.1
= control target key start
LH: loop header
LB: loop body
LE: loop exit
PB: predicated region body
PF: predicated region fallthrough
CT: control target
= control target key end

     0   :  { %s19797_s14 = smov 0   ;;  %s22479_s0 = inlined_call_operand.vmem [shape: f32[2,16,1024], index: 0, kind: input, shape index: {}]   ;;  %s22480_s1 = inlined_call_operand.vmem [shape: f32[10,7,1024], index: 1, kind: input, shape index: {}]   ;;  %s22481_s2 = inlined_call_operand.<no memory space> [shape: f32[1], index: 2, kind: input, shape index: {}]   ;;  %s22482_s3 = inlined_call_operand.vmem [shape: f32[2,7,7], index: 3, kind: output, shape index: {}]  }
   0x1   :  { %8 = sst [smem:[#allocation2]] %s22481_s2 }
   0x2 LB: > { %s19675_s15 = sadd.s32 4294967295, %s19772_s14   ;;  %p19679_p0 = scmp.ge.s32.totalorder %s19772_s14, 1  ;;  %s19772_s14 = sphi %s19797_s14, %s14_s14  }
   0x3   : > { %p138_p1 = scmp.lt.s32.totalorder %s19772_s14, 3 }
   0x5   : > { %p139_p2 = pnand %p19679_p0, %p138_p1 }
   0x6   : > { %p161_p3 = scmp.lt.s32.totalorder (!%p139_p2), %s19675_s15, 1 }
   0x7   : > { %142 = sbr.rel (%p139_p2) target bundleno = 708 (0x2c4), region = 32 }
   0xc   : > { %v19684_v0 = vld [vmem:[%s22480_s1 + $0x48] sm:$0x7f]  ;;  %v19683_v1 = vld [vmem:[%s22480_s1 + $0x40] sm:$0x7f]  ;;  %v19686_v4 = vld [vmem:[%s22480_s1 + $0x58] sm:$0x7f] }
   0xd   : > { %v257_v2 = vand.u32 4294901760, %v19684_v0  ;;  %v19811_v3 = vand.u32 4294901760, %v19683_v1  ;;  %v19685_v5 = vld [vmem:[%s22480_s1 + $0x50] sm:$0x7f]  ;;  %s22484_s15 = smov (!%p161_p3, %s19675_s15), 1  ;;  %v19821_v6 = vand.u32 4294901760, %v19686_v4 }
   0xe   : > { %s19757_s23 = sshll.u32 %s22484_s15, 7  ;;  %v19830_v9 = vand.u32 4294901760, %v19685_v5  ;;  %v19688_v34 = vld [vmem:[%s22480_s1 + $0x68] sm:$0x7f]  ;;  %v19687_v38 = vld [vmem:[%s22480_s1 + $0x60] sm:$0x7f] }
   0xf   : > { %258 = vmatprep.subr.mxu0 %v257_v2  ;;  %v19823_v7 = vsub.f32 %v19684_v0, %v257_v2  ;;  %v19826_v8 = vsub.f32 %v19683_v1, %v19811_v3  ;;  %s19837_s26 = scalar_lea.vmem %s22479_s0, %s19757_s23  ;;  %v19843_v14 = vsub.f32 %v19686_v4, %v19821_v6  ;;  %v19879_v43 = vand.u32 4294901760, %v19688_v34  ;;  %v19690_v0 = vld [vmem:[%s22480_s1 + $0x78] sm:$0x7f]  ;;  %s19682_s29 = sshll.u32 %s22484_s15, 3 }
  0x10   : > { %260 = vmatpush1.xpose.msra.mxu0 %v19811_v3  ;;  %v187_v12 = vld [vmem:[%s19837_s26 + $0x8] sm:$0xfe]  ;;  %v186_v13 = vld [vmem:[%s19837_s26] sm:$0xfe]  ;;  %v189_v19 = vld [vmem:[%s19837_s26 + $0x18] sm:$0xfe]  ;;  %v19854_v21 = vsub.f32 %v19685_v5, %v19830_v9  ;;  %s169_s5 = scalar_lea.vmem %s22482_s3, %s19682_s29 }
  0x11   : > { %v341_v10 = vand.u32 4294901760, %v19823_v7  ;;  %v347_v11 = vand.u32 4294901760, %v19826_v8  ;;  %423 = vmatprep.subr.mxu0 %v19823_v7  ;;  %v212_v17 = vrot.slane %v187_v12, 1  ;;  %v211_v18 = vrot.slane %v186_v13, 1  ;;  %v188_v20 = vld [vmem:[%s19837_s26 + $0x10] sm:$0xfe] }
  0x12   : > { %v214_v22 = vrot.slane %v189_v19, 1  ;;  %v213_v23 = vrot.slane %v188_v20, 1  ;;  %v813_v31 = vand.u32 4294901760, %v19843_v14  ;;  %v819_v32 = vand.u32 4294901760, %v19854_v21  ;;  %v191_v39 = vld [vmem:[%s19837_s26 + $0x28] sm:$0xfe] }
  0x13   : > { %v342_v15 = vsub.f32 %v19823_v7, %v341_v10  ;;  %v348_v16 = vsub.f32 %v19826_v8, %v347_v11  ;;  %v293_v26 = vand.u32 4294901760, %v212_v17  ;;  %v19856_v27 = vand.u32 4294901760, %v211_v18  ;;  %v190_v51 = vld [vmem:[%s19837_s26 + $0x20] sm:$0xfe]  ;;  %v193_v4 = vld [vmem:[%s19837_s26 + $0x38] sm:$0xfe] }
  0x14   : > { %v19858_v28 = vand.u32 4294901760, %v214_v22  ;;  %v19863_v33 = vand.u32 4294901760, %v213_v23  ;;  %v814_v42 = vsub.f32 %v19843_v14, %v813_v31  ;;  %v820_v44 = vsub.f32 %v19854_v21, %v819_v32 }
  0x15   : > { %v343_v24 = vand.u32 4294901760, %v342_v15  ;;  %v349_v25 = vand.u32 4294901760, %v348_v16  ;;  %v294_v29 = vsub.f32 %v212_v17, %v293_v26  ;;  %384 = vmatprep.mubr.f32.mxu1 %v293_v26  ;;  %v300_v30 = vsub.f32 %v211_v18, %v19856_v27  ;;  %v192_v16 = vld [vmem:[%s19837_s26 + $0x30] sm:$0xfe] }
  0x16   : > { %v19869_v37 = vsub.f32 %v214_v22, %v19858_v28  ;;  %v19886_v45 = vsub.f32 %v213_v23, %v19863_v33  ;;  %v19888_v46 = vand.u32 4294901760, %v19687_v38  ;;  %v216_v50 = vrot.slane %v191_v39, 1 }
  0x17   : > { %344 = vmatprep.subr.mxu1 %v343_v24  ;;  %v295_v35 = vand.u32 4294901760, %v294_v29  ;;  %v301_v36 = vand.u32 4294901760, %v300_v30  ;;  %v815_v52 = vand.u32 4294901760, %v814_v42  ;;  %v19893_v53 = vsub.f32 %v19688_v34, %v19879_v43 }
  0x18   : > { %350 = vmatpush1.xpose.msra.mxu1 %v349_v25  ;;  %v767_v49 = vand.u32 4294901760, %v19869_v37  ;;  %v821_v54 = vand.u32 4294901760, %v820_v44  ;;  %v773_v55 = vand.u32 4294901760, %v19886_v45  ;;  %v19898_v56 = vsub.f32 %v19687_v38, %v19888_v46 }
  0x19   : > { %500 = vmatprep.subr.mxu1 %v257_v2  ;;  %v296_v40 = vsub.f32 %v294_v29, %v295_v35  ;;  %v302_v41 = vsub.f32 %v300_v30, %v301_v36  ;;  %v215_v57 = vrot.slane %v190_v51, 1  ;;  %v19902_v59 = vand.u32 4294901760, %v216_v50 }
  0x1a   : > { %v768_v58 = vsub.f32 %v19869_v37, %v767_v49  ;;  %v1285_v60 = vand.u32 4294901760, %v19893_v53  ;;  %v774_v61 = vsub.f32 %v19886_v45, %v773_v55  ;;  %v1291_v62 = vand.u32 4294901760, %v19898_v56 }
  0x1b   : > { %386 = vmatmul.mubr.f32.vlgmr.msra.gmra.mxu1 %v19856_v27  ;;  %v297_v47 = vand.u32 4294901760, %v296_v40  ;;  %v303_v48 = vand.u32 4294901760, %v302_v41  ;;  %v19910_v63 = vand.u32 4294901760, %v215_v57  ;;  %v19931_v7 = vand.u32 4294901760, %v19690_v0 }
  0x1c   : > { %502 = vmatpush1.xpose.msra.mxu1 %v19811_v3  ;;  %538 = vmatprep.mubr.f32.mxu1 %v295_v35  ;;  %v769_v1 = vand.u32 4294901760, %v768_v58  ;;  %v1286_v5 = vsub.f32 %v19893_v53, %v1285_v60  ;;  %v218_v15 = vrot.slane %v193_v4, 1  ;;  %v217_v23 = vrot.slane %v192_v16, 1  ;;  %v182_v16 = vld [vmem:[%s22480_s1 + $0x20] sm:$0x7f] }
  0x1d   : > { %656 = vmatprep.subr.mxu1 %v257_v2  ;;  %298 = vmatprep.mubr.f32.mxu0 %v297_v47  ;;  %v19918_v2 = vsub.f32 %v216_v50, %v19902_v59  ;;  %v19949_v18 = vsub.f32 %v19690_v0, %v19931_v7  ;;  %v181_v50 = vld [vmem:[%s22480_s1 + $0x18] sm:$0x7f]  ;;  %vm4044_vm0 = vcmask 1045504   ;;  %vm6007_vm1 = vcmask 1044480  }
  0x1e   : > { %304 = vmatmul.mubr.f32.vlgmr.msra.gmra.mxu0 %v303_v48  ;;  %v1287_v17 = vand.u32 4294901760, %v1286_v5  ;;  %v19959_v24 = vand.u32 4294901760, %v218_v15  ;;  %v172_v5 = vld [vmem:[%s19837_s26 + $0x10] sm:$0x7f]  ;;  %vm7970_vm2 = vcmask 1043456   ;;  %vm9933_vm3 = vcmask 1042432  }
  0x1f   : > { %542 = vmatmul.mubr.f32.vlgmr.msra.gmra.mxu1 %v301_v36  ;;  %426 = vmatpush1.xpose.msra.mxu0 %v19826_v8  ;;  %v775_v8 = vand.u32 4294901760, %v774_v61  ;;  %v1239_v13 = vand.u32 4294901760, %v19918_v2  ;;  %v173_v61 = vld [vmem:[%s19837_s26 + $0x18] sm:$0x7f]  ;;  %vm11896_vm4 = vcmask 1041408   ;;  %vm13859_vm5 = vcmask 1040384  }
  0x20   : > { %658 = vmatpush1.xpose.msra.mxu1 %v19811_v3  ;;  %461 = vmatprep.mubr.f32.mxu0 %v294_v29  ;;  %v19689_v3 = vld [vmem:[%s22480_s1 + $0x70] sm:$0x7f]  ;;  %v20078_v4 = vand.u32 4294901760, %v173_v61  ;;  %vm19620_vm6 = vcmask 55296  }
  0x21   : > { %580 = vmatprep.subr.mxu0 %v341_v10  ;;  %692 = vmatprep.mubr.f32.mxu1 %v293_v26  ;;  %v1292_v10 = vsub.f32 %v19898_v56, %v1291_v62  ;;  %v19941_v12 = vand.u32 4294901760, %v19689_v3 }
  0x22   : > { %816 = vmatprep.subr.mxu1 %v815_v52  ;;  %464 = vmatmul.mubr.f32.vlgmr.msra.gmra.mxu0 %v300_v30  ;;  %v19978_v30 = vsub.f32 %v218_v15, %v19959_v24  ;;  %v20098_v15 = vsub.f32 %v173_v61, %v20078_v4 }
  0x23   : > { %694 = vmatmul.mubr.f32.vlgmr.msra.gmra.mxu1 %v19856_v27  ;;  %584 = vmatpush1.xpose.msra.mxu0 %v347_v11  ;;  %v19939_v11 = vsub.f32 %v215_v57, %v19910_v63  ;;  %v1293_v19 = vand.u32 4294901760, %v1292_v10  ;;  %v19954_v22 = vsub.f32 %v19689_v3, %v19941_v12 }
  0x24   : > { %822 = vmatpush1.xpose.msra.mxu1 %v821_v54  ;;  %618 = vmatprep.mubr.f32.mxu0 %v293_v26 }
  0x25   : > { %730 = vmatprep.subr.mxu0 %v19821_v6  ;;  %856 = vmatprep.mubr.f32.mxu1 %v19858_v28  ;;  %v1245_v20 = vand.u32 4294901760, %v19939_v11  ;;  %v1763_v26 = vand.u32 4294901760, %v19954_v22 }
  0x26   : > { %972 = vmatprep.subr.mxu1 %v19821_v6  ;;  %620 = vmatmul.mubr.f32.vlgmr.msra.gmra.mxu0 %v19856_v27  ;;  %v19969_v27 = vand.u32 4294901760, %v217_v23 }
  0x27   : > { %858 = vmatmul.mubr.f32.vlgmr.msra.gmra.mxu1 %v19863_v33  ;;  %732 = vmatpush1.xpose.msra.mxu0 %v19830_v9  ;;  %v1246_v25 = vsub.f32 %v19939_v11, %v1245_v20  ;;  %v1764_v34 = vsub.f32 %v19954_v22, %v1763_v26 }
  0x28   : > { %974 = vmatpush1.xpose.msra.mxu1 %v19830_v9  ;;  %770 = vmatprep.mubr.f32.mxu0 %v769_v1  ;;  %v19998_v35 = vsub.f32 %v217_v23, %v19969_v27  ;;  %v20120_v23 = vand.u32 4294901760, %v182_v16 }
  0x29   : > { %895 = vmatprep.subr.mxu0 %v19843_v14  ;;  %1010 = vmatprep.mubr.f32.mxu1 %v767_v49  ;;  %v179_v14 = vld [vmem:[%s22480_s1 + $0x8] sm:$0x7f]  ;;  %v1765_v40 = vand.u32 4294901760, %v1764_v34 }
  0x2a   : > { %1128 = vmatprep.subr.mxu1 %v19821_v6  ;;  %776 = vmatmul.mubr.f32.vlgmr.msra.gmra.mxu0 %v775_v8  ;;  %v1240_v6 = vsub.f32 %v19918_v2, %v1239_v13  ;;  %v1717_v41 = vand.u32 4294901760, %v19998_v35 }
  0x2b   : > { %1014 = vmatmul.mubr.f32.vlgmr.msra.gmra.mxu1 %v773_v55  ;;  %898 = vmatpush1.xpose.msra.mxu0 %v19854_v21  ;;  %v20050_v55 = vand.u32 4294901760, %v181_v50 }
  0x2c   : > { %1130 = vmatpush1.xpose.msra.mxu1 %v19830_v9  ;;  %933 = vmatprep.mubr.f32.mxu0 %v19869_v37  ;;  %v1757_v9 = vand.u32 4294901760, %v19949_v18  ;;  %v1241_v29 = vand.u32 4294901760, %v1240_v6  ;;  %v1711_v37 = vand.u32 4294901760, %v19978_v30  ;;  %v1718_v47 = vsub.f32 %v19998_v35, %v1717_v41 }
  0x2d   : > { %1052 = vmatprep.subr.mxu0 %v813_v31  ;;  %1164 = vmatprep.mubr.f32.mxu1 %v19858_v28  ;;  %v178_v31 = vld [vmem:[%s22480_s1] sm:$0x7f]  ;;  %v2655_v6 = vand.u32 4294901760, %v20098_v15 }
  0x2e   : > { %1288 = vmatprep.subr.mxu1 %v1287_v17  ;;  %936 = vmatmul.mubr.f32.vlgmr.msra.gmra.mxu0 %v19886_v45  ;;  %v1758_v21 = vsub.f32 %v19949_v18, %v1757_v9  ;;  %v20000_v36 = vand.u32 4294901760, %v178_v31  ;;  %v1712_v44 = vsub.f32 %v19978_v30, %v1711_v37  ;;  %v170_v45 = vld [vmem:[%s19837_s26] sm:$0x7f] }
  0x2f   : > { %1166 = vmatmul.mubr.f32.vlgmr.msra.gmra.mxu1 %v19863_v33  ;;  %1056 = vmatpush1.xpose.msra.mxu0 %v819_v32  ;;  %v1247_v32 = vand.u32 4294901760, %v1246_v25  ;;  %v20029_v49 = vand.u32 4294901760, %v170_v45 }
  0x30   : > { %1294 = vmatpush1.xpose.msra.mxu1 %v1293_v19  ;;  %1090 = vmatprep.mubr.f32.mxu0 %v19858_v28  ;;  %v19990_v28 = vand.u32 4294901760, %v179_v14  ;;  %v1759_v38 = vand.u32 4294901760, %v1758_v21  ;;  %v20013_v42 = vsub.f32 %v178_v31, %v20000_v36  ;;  %v1713_v51 = vand.u32 4294901760, %v1712_v44  ;;  %v174_v31 = vld [vmem:[%s19837_s26 + $0x20] sm:$0x7f] }
  0x31   : > { %1202 = vmatprep.subr.mxu0 %v19879_v43  ;;  %1328 = vmatprep.mubr.f32.mxu1 %v19902_v59  ;;  %v20058_v58 = vsub.f32 %v170_v45, %v20029_v49  ;;  %v20149_v34 = vand.u32 4294901760, %v174_v31  ;;  %v177_v45 = vld [vmem:[%s19837_s26 + $0x38] sm:$0x7f] }
  0x32   : > { %1444 = vmatprep.subr.mxu1 %v19879_v43  ;;  %1092 = vmatmul.mubr.f32.vlgmr.msra.gmra.mxu0 %v19863_v33  ;;  %v171_v33 = vld [vmem:[%s19837_s26 + $0x8] sm:$0x7f]  ;;  %v20008_v39 = vsub.f32 %v179_v14, %v19990_v28  ;;  %v2235_v48 = vand.u32 4294901760, %v20013_v42  ;;  %v20133_v14 = vsub.f32 %v182_v16, %v20120_v23 }
  0x33   : > { %1330 = vmatmul.mubr.f32.vlgmr.msra.gmra.mxu1 %v19910_v63  ;;  %1204 = vmatpush1.xpose.msra.mxu0 %v19888_v46  ;;  %v2189_v1 = vand.u32 4294901760, %v20058_v58 }
  0x34   : > { %1446 = vmatpush1.xpose.msra.mxu1 %v19888_v46  ;;  %1242 = vmatprep.mubr.f32.mxu0 %v1241_v29  ;;  %v2236_v57 = vsub.f32 %v20013_v42, %v2235_v48  ;;  %v2656_v29 = vsub.f32 %v20098_v15, %v2655_v6 }
  0x35   : > { %1367 = vmatprep.subr.mxu0 %v19893_v53  ;;  %1482 = vmatprep.mubr.f32.mxu1 %v1239_v13  ;;  %v180_v53 = vld [vmem:[%s22480_s1 + $0x10] sm:$0x7f]  ;;  %v2190_v8 = vsub.f32 %v20058_v58, %v2189_v1 }
  0x36   : > { %1600 = vmatprep.subr.mxu1 %v19879_v43  ;;  %1248 = vmatmul.mubr.f32.vlgmr.msra.gmra.mxu0 %v1247_v32  ;;  %v20018_v43 = vand.u32 4294901760, %v171_v33  ;;  %v2237_v0 = vand.u32 4294901760, %v2236_v57  ;;  %v3179_v32 = vand.u32 4294901760, %v20133_v14 }
  0x37   : > { %1486 = vmatmul.mubr.f32.vlgmr.msra.gmra.mxu1 %v1245_v20  ;;  %1370 = vmatpush1.xpose.msra.mxu0 %v19898_v56  ;;  %v1719_v56 = vand.u32 4294901760, %v1718_v47  ;;  %v2191_v19 = vand.u32 4294901760, %v2190_v8 }
  0x38   : > { %1602 = vmatpush1.xpose.msra.mxu1 %v19888_v46  ;;  %1405 = vmatprep.mubr.f32.mxu0 %v19918_v2  ;;  %v2229_v46 = vand.u32 4294901760, %v20008_v39  ;;  %v20038_v52 = vsub.f32 %v171_v33, %v20018_v43  ;;  %v184_v33 = vld [vmem:[%s22480_s1 + $0x30] sm:$0x7f] }
  0x39   : > { %1524 = vmatprep.subr.mxu0 %v1285_v60  ;;  %1636 = vmatprep.mubr.f32.mxu1 %v19902_v59  ;;  %v20180_v44 = vand.u32 4294901760, %v184_v33 }
  0x3a   : > { %1760 = vmatprep.subr.mxu1 %v1759_v38  ;;  %1408 = vmatmul.mubr.f32.vlgmr.msra.gmra.mxu0 %v19939_v11  ;;  %v2230_v54 = vsub.f32 %v20008_v39, %v2229_v46  ;;  %v2183_v60 = vand.u32 4294901760, %v20038_v52  ;;  %v20089_v11 = vand.u32 4294901760, %v172_v5 }
  0x3b   : > { %1638 = vmatmul.mubr.f32.vlgmr.msra.gmra.mxu1 %v19910_v63  ;;  %1528 = vmatpush1.xpose.msra.mxu0 %v1291_v62 }
  0x3c   : > { %1766 = vmatpush1.xpose.msra.mxu1 %v1765_v40  ;;  %1562 = vmatprep.mubr.f32.mxu0 %v19902_v59  ;;  %v20060_v59 = vand.u32 4294901760, %v180_v53  ;;  %v2231_v62 = vand.u32 4294901760, %v2230_v54  ;;  %v2184_v3 = vsub.f32 %v20038_v52, %v2183_v60 }
  0x3d   : > { %1674 = vmatprep.subr.mxu0 %v19931_v7  ;;  %1800 = vmatprep.mubr.f32.mxu1 %v19959_v24 }
  0x3e   : > { %1916 = vmatprep.subr.mxu1 %v19931_v7  ;;  %1564 = vmatmul.mubr.f32.vlgmr.msra.gmra.mxu0 %v19910_v63  ;;  %v20068_v63 = vsub.f32 %v181_v50, %v20050_v55  ;;  %v20073_v2 = vsub.f32 %v180_v53, %v20060_v59  ;;  %v2185_v13 = vand.u32 4294901760, %v2184_v3  ;;  %v20193_v50 = vsub.f32 %v184_v33, %v20180_v44  ;;  %v176_v53 = vld [vmem:[%s19837_s26 + $0x30] sm:$0x7f]  ;;  %v4003_v3 = vld [vmem:[%s19837_s26] sm:$0xfc] }
  0x3f   : > { %1802 = vmatmul.mubr.f32.vlgmr.msra.gmra.mxu1 %v19969_v27  ;;  %1676 = vmatpush1.xpose.msra.mxu0 %v19941_v12 }
  0x40   : > { %1918 = vmatpush1.xpose.msra.mxu1 %v19941_v12  ;;  %1714 = vmatprep.mubr.f32.mxu0 %v1713_v51  ;;  %v2707_v10 = vand.u32 4294901760, %v20073_v2 }
  0x41   : > { %1839 = vmatprep.subr.mxu0 %v19949_v18  ;;  %1954 = vmatprep.mubr.f32.mxu1 %v1711_v37 }
  0x42   : > { %2072 = vmatprep.subr.mxu1 %v19931_v7  ;;  %1720 = vmatmul.mubr.f32.vlgmr.msra.gmra.mxu0 %v1719_v56  ;;  %v2701_v7 = vand.u32 4294901760, %v20068_v63  ;;  %v2708_v20 = vsub.f32 %v20073_v2, %v2707_v10  ;;  %v4012_v56 = vld [vmem:[%s19837_s26 + $0x48] sm:$0x1] }
  0x43   : > { %1958 = vmatmul.mubr.f32.vlgmr.msra.gmra.mxu1 %v1717_v41  ;;  %1842 = vmatpush1.xpose.msra.mxu0 %v19954_v22  ;;  %v20118_v22 = vsub.f32 %v172_v5, %v20089_v11  ;;  %v3180_v41 = vsub.f32 %v20133_v14, %v3179_v32  ;;  %v4011_v5 = vld [vmem:[%s19837_s26 + $0x40] sm:$0x1] }
  0x44   : > { %2074 = vmatpush1.xpose.msra.mxu1 %v19941_v12  ;;  %1877 = vmatprep.mubr.f32.mxu0 %v19978_v30  ;;  %v183_v12 = vld [vmem:[%s22480_s1 + $0x28] sm:$0x7f]  ;;  %v2702_v17 = vsub.f32 %v20068_v63, %v2701_v7  ;;  %v4046_v16 = vrot.slane %v4011_v5, 2  ;;  %v19695_v5 = vld [vmem:[%s22480_s1 + $0xa0] sm:$0x7f] }
  0x45   : > { %1996 = vmatprep.subr.mxu0 %v1757_v9  ;;  %2108 = vmatprep.mubr.f32.mxu1 %v19959_v24  ;;  %v20110_v18 = vand.u32 4294901760, %v183_v12 }
  0x46   : > { %2232 = vmatprep.subr.mxu1 %v2231_v62  ;;  %1880 = vmatmul.mubr.f32.vlgmr.msra.gmra.mxu0 %v19998_v35  ;;  %v2703_v9 = vand.u32 4294901760, %v2702_v17  ;;  %v185_v35 = vld [vmem:[%s22480_s1 + $0x38] sm:$0x7f] }
  0x47   : > { %2110 = vmatmul.mubr.f32.vlgmr.msra.gmra.mxu1 %v19969_v27  ;;  %2000 = vmatpush1.xpose.msra.mxu0 %v1763_v26  ;;  %v20128_v25 = vsub.f32 %v183_v12, %v20110_v18  ;;  %v2709_v26 = vand.u32 4294901760, %v2708_v20 }
  0x48   : > { %2238 = vmatpush1.xpose.msra.mxu1 %v2237_v0  ;;  %2034 = vmatprep.mubr.f32.mxu0 %v19959_v24  ;;  %v175_v24 = vld [vmem:[%s19837_s26 + $0x28] sm:$0x7f] }
  0x49   : > { %2146 = vmatprep.subr.mxu0 %v19990_v28  ;;  %2272 = vmatprep.mubr.f32.mxu1 %v20018_v43  ;;  %v20138_v30 = vand.u32 4294901760, %v175_v24  ;;  %v3173_v21 = vand.u32 4294901760, %v20128_v25 }
  0x4a   : > { %2388 = vmatprep.subr.mxu1 %v19990_v28  ;;  %2036 = vmatmul.mubr.f32.vlgmr.msra.gmra.mxu0 %v19969_v27  ;;  %v2661_v27 = vand.u32 4294901760, %v20118_v22 }
  0x4b   : > { %2274 = vmatmul.mubr.f32.vlgmr.msra.gmra.mxu1 %v20029_v49  ;;  %2148 = vmatpush1.xpose.msra.mxu0 %v20000_v36  ;;  %v20158_v37 = vsub.f32 %v175_v24, %v20138_v30  ;;  %v3174_v38 = vsub.f32 %v20128_v25, %v3173_v21 }
  0x4c   : > { %2390 = vmatpush1.xpose.msra.mxu1 %v20000_v36  ;;  %2186 = vmatprep.mubr.f32.mxu0 %v2185_v13 }
  0x4d   : > { %2311 = vmatprep.subr.mxu0 %v20008_v39  ;;  %2426 = vmatprep.mubr.f32.mxu1 %v2183_v60  ;;  %v20170_v39 = vand.u32 4294901760, %v185_v35  ;;  %v19692_v60 = vld [vmem:[%s22480_s1 + $0x88] sm:$0x7f] }
  0x4e   : > { %2544 = vmatprep.subr.mxu1 %v19990_v28  ;;  %2192 = vmatmul.mubr.f32.vlgmr.msra.gmra.mxu0 %v2191_v19  ;;  %v2662_v28 = vsub.f32 %v20118_v22, %v2661_v27 }
  0x4f   : > { %2430 = vmatmul.mubr.f32.vlgmr.msra.gmra.mxu1 %v2189_v1  ;;  %2314 = vmatpush1.xpose.msra.mxu0 %v20013_v42  ;;  %v20178_v42 = vsub.f32 %v174_v31, %v20149_v34  ;;  %v20188_v47 = vsub.f32 %v185_v35, %v20170_v39  ;;  %v4049_v1 = vrot.slane %v4012_v56, 2 }
  0x50   : > { %2546 = vmatpush1.xpose.msra.mxu1 %v20000_v36  ;;  %2349 = vmatprep.mubr.f32.mxu0 %v20038_v52  ;;  %v2657_v36 = vand.u32 4294901760, %v2656_v29  ;;  %v2663_v40 = vand.u32 4294901760, %v2662_v28  ;;  %v20198_v52 = vand.u32 4294901760, %v177_v45 }
  0x51   : > { %2468 = vmatprep.subr.mxu0 %v2229_v46  ;;  %2580 = vmatprep.mubr.f32.mxu1 %v20018_v43  ;;  %v3175_v46 = vand.u32 4294901760, %v3174_v38  ;;  %v3645_v54 = vand.u32 4294901760, %v20188_v47  ;;  %v4005_v38 = vld [vmem:[%s19837_s26 + $0x10] sm:$0xfc] }
  0x52   : > { %2704 = vmatprep.subr.mxu1 %v2703_v9  ;;  %2352 = vmatmul.mubr.f32.vlgmr.msra.gmra.mxu0 %v20058_v58  ;;  %v3651_v58 = vand.u32 4294901760, %v20193_v50  ;;  %v20220_v62 = vsub.f32 %v177_v45, %v20198_v52 }
  0x53   : > { %2582 = vmatmul.mubr.f32.vlgmr.msra.gmra.mxu1 %v20029_v49  ;;  %2472 = vmatpush1.xpose.msra.mxu0 %v2235_v48  ;;  %v3181_v48 = vand.u32 4294901760, %v3180_v41 }
  0x54   : > { %2710 = vmatpush1.xpose.msra.mxu1 %v2709_v26  ;;  %2506 = vmatprep.mubr.f32.mxu0 %v20018_v43  ;;  %v3127_v43 = vand.u32 4294901760, %v20158_v37  ;;  %v3652_v8 = vsub.f32 %v20193_v50, %v3651_v58  ;;  %v3599_v13 = vand.u32 4294901760, %v20220_v62  ;;  %v4006_v26 = vld [vmem:[%s19837_s26 + $0x18] sm:$0xfc] }
  0x55   : > { %2618 = vmatprep.subr.mxu0 %v20050_v55  ;;  %2744 = vmatprep.mubr.f32.mxu1 %v20078_v4 }
  0x56   : > { %2860 = vmatprep.subr.mxu1 %v20050_v55  ;;  %2508 = vmatmul.mubr.f32.vlgmr.msra.gmra.mxu0 %v20029_v49  ;;  %v3133_v49 = vand.u32 4294901760, %v20178_v42  ;;  %v3128_v51 = vsub.f32 %v20158_v37, %v3127_v43  ;;  %v3653_v20 = vand.u32 4294901760, %v3652_v8  ;;  %v4007_v8 = vld [vmem:[%s19837_s26 + $0x20] sm:$0xfc] }
  0x57   : > { %2746 = vmatmul.mubr.f32.vlgmr.msra.gmra.mxu1 %v20089_v11  ;;  %2620 = vmatpush1.xpose.msra.mxu0 %v20060_v59 }
  0x58   : > { %2862 = vmatpush1.xpose.msra.mxu1 %v20060_v59  ;;  %2658 = vmatprep.mubr.f32.mxu0 %v2657_v36  ;;  %v3134_v57 = vsub.f32 %v20178_v42, %v3133_v49  ;;  %v3129_v61 = vand.u32 4294901760, %v3128_v51  ;;  %v19693_v36 = vld [vmem:[%s22480_s1 + $0x90] sm:$0x7f] }
  0x59   : > { %2783 = vmatprep.subr.mxu0 %v20068_v63  ;;  %2898 = vmatprep.mubr.f32.mxu1 %v2655_v6  ;;  %v19691_v63 = vld [vmem:[%s22480_s1 + $0x80] sm:$0x7f] }
  0x5a   : > { %3016 = vmatprep.subr.mxu1 %v20050_v55  ;;  %2664 = vmatmul.mubr.f32.vlgmr.msra.gmra.mxu0 %v2663_v40  ;;  %v4004_v55 = vld [vmem:[%s19837_s26 + $0x8] sm:$0xfc]  ;;  %v20244_v12 = vand.u32 4294901760, %v19691_v63  ;;  %v4013_v40 = vld [vmem:[%s19837_s26 + $0x50] sm:$0x1] }
  0x5b   : > { %2902 = vmatmul.mubr.f32.vlgmr.msra.gmra.mxu1 %v2661_v27  ;;  %2786 = vmatpush1.xpose.msra.mxu0 %v20073_v2  ;;  %v4048_v0 = vrot.slane %v4004_v55, 2  ;;  %v3646_v2 = vsub.f32 %v20188_v47, %v3645_v54  ;;  %v4014_v27 = vld [vmem:[%s19837_s26 + $0x58] sm:$0x1] }
  0x5c   : > { %3018 = vmatpush1.xpose.msra.mxu1 %v20060_v59  ;;  %2821 = vmatprep.mubr.f32.mxu0 %v20098_v15  ;;  %v20211_v59 = vand.u32 4294901760, %v176_v53  ;;  %v4045_v15 = vrot.slane %v4003_v3, 2  ;;  %v20257_v6 = vsub.f32 %v19691_v63, %v20244_v12  ;;  %v4055_v33 = vrot.slane %v4014_v27, 2  ;;  %v4016_v63 = vld [vmem:[%s19837_s26 + $0x68] sm:$0x1] }
  0x5d   : > { %2940 = vmatprep.subr.mxu0 %v2701_v7  ;;  %3052 = vmatprep.mubr.f32.mxu1 %v20078_v4  ;;  %v3135_v7 = vand.u32 4294901760, %v3134_v57  ;;  %v3647_v17 = vand.u32 4294901760, %v3646_v2 }
  0x5e   : > { %3176 = vmatprep.subr.mxu1 %v3175_v46  ;;  %2824 = vmatmul.mubr.f32.vlgmr.msra.gmra.mxu0 %v20118_v22  ;;  %v4047_v9 = vsel %vm4044_vm0, %v4045_v15, %v4046_v16  ;;  %v4197_v31 = vand.u32 4294901760, %v20257_v6  ;;  %v4051_v46 = vrot.slane %v4005_v38, 2  ;;  %v20372_v16 = vand.u32 4294901760, %v19695_v5 }
  0x5f   : > { %3054 = vmatmul.mubr.f32.vlgmr.msra.gmra.mxu1 %v20089_v11  ;;  %2944 = vmatpush1.xpose.msra.mxu0 %v2707_v10  ;;  %v20242_v10 = vsub.f32 %v176_v53, %v20211_v59 }
  0x60   : > { %3182 = vmatpush1.xpose.msra.mxu1 %v3181_v48  ;;  %2978 = vmatprep.mubr.f32.mxu0 %v20078_v4  ;;  %v20234_v4 = vand.u32 4294901760, %v19692_v60  ;;  %v4198_v41 = vsub.f32 %v20257_v6, %v4197_v31  ;;  %v4052_v48 = vrot.slane %v4013_v40, 2  ;;  %v20385_v27 = vsub.f32 %v19695_v5, %v20372_v16  ;;  %v19697_v40 = vld [vmem:[%s22480_s1 + $0xb0] sm:$0x7f]  ;;  %v5975_v5 = vld [vmem:[%s19837_s26 + $0x48] sm:$0x3] }
  0x61   : > { %3090 = vmatprep.subr.mxu0 %v20110_v18  ;;  %3216 = vmatprep.mubr.f32.mxu1 %v20138_v30  ;;  %v3605_v22 = vand.u32 4294901760, %v20242_v10 }
  0x62   : > { %3332 = vmatprep.subr.mxu1 %v20110_v18  ;;  %2980 = vmatmul.mubr.f32.vlgmr.msra.gmra.mxu0 %v20089_v11  ;;  %v4050_v11 = vsel %vm4044_vm0, %v4048_v0, %v4049_v1  ;;  %v20252_v19 = vsub.f32 %v19692_v60, %v20234_v4  ;;  %v4199_v53 = vand.u32 4294901760, %v4198_v41  ;;  %v4053_v60 = vsel %vm4044_vm0, %v4051_v46, %v4052_v48  ;;  %v4009_v41 = vld [vmem:[%s19837_s26 + $0x30] sm:$0xfc] }
  0x63   : > { %3218 = vmatmul.mubr.f32.vlgmr.msra.gmra.mxu1 %v20149_v34  ;;  %3092 = vmatpush1.xpose.msra.mxu0 %v20120_v23  ;;  %v20262_v24 = vand.u32 4294901760, %v4050_v11  ;;  %v3606_v29 = vsub.f32 %v20242_v10, %v3605_v22  ;;  %v20436_v48 = vand.u32 4294901760, %v19697_v40 }
  0x64   : > { %3334 = vmatpush1.xpose.msra.mxu1 %v20120_v23  ;;  %3130 = vmatprep.mubr.f32.mxu0 %v3129_v61  ;;  %v4008_v61 = vld [vmem:[%s19837_s26 + $0x28] sm:$0xfc] }
  0x65   : > { %3255 = vmatprep.subr.mxu0 %v20128_v25  ;;  %3370 = vmatprep.mubr.f32.mxu1 %v3127_v43  ;;  %v20275_v25 = vand.u32 4294901760, %v4047_v9  ;;  %v20284_v35 = vsub.f32 %v4050_v11, %v20262_v24  ;;  %v20308_v43 = vand.u32 4294901760, %v19693_v36  ;;  %v4060_v2 = vrot.slane %v4008_v61, 2 }
  0x66   : > { %3488 = vmatprep.subr.mxu1 %v20110_v18  ;;  %3136 = vmatmul.mubr.f32.vlgmr.msra.gmra.mxu0 %v3135_v7  ;;  %v3600_v18 = vsub.f32 %v20220_v62, %v3599_v13  ;;  %v4061_v7 = vrot.slane %v4016_v63, 2  ;;  %v20449_v63 = vsub.f32 %v19697_v40, %v20436_v48  ;;  %v5977_v40 = vld [vmem:[%s19837_s26 + $0x58] sm:$0x3] }
  0x67   : > { %3374 = vmatmul.mubr.f32.vlgmr.msra.gmra.mxu1 %v3133_v49  ;;  %3258 = vmatpush1.xpose.msra.mxu0 %v20133_v14  ;;  %v4145_v45 = vand.u32 4294901760, %v20284_v35  ;;  %v20321_v56 = vsub.f32 %v19693_v36, %v20308_v43  ;;  %v4018_v36 = vld [vmem:[%s19837_s26 + $0x78] sm:$0x1] }
  0x68   : > { %3490 = vmatpush1.xpose.msra.mxu1 %v20120_v23  ;;  %3293 = vmatprep.mubr.f32.mxu0 %v20158_v37  ;;  %v4191_v23 = vand.u32 4294901760, %v20252_v19  ;;  %v3601_v28 = vand.u32 4294901760, %v3600_v18  ;;  %v4054_v37 = vrot.slane %v4006_v26, 2 }
  0x69   : > { %3412 = vmatprep.subr.mxu0 %v3173_v21  ;;  %3524 = vmatprep.mubr.f32.mxu1 %v20138_v30  ;;  %v19694_v21 = vld [vmem:[%s22480_s1 + $0x98] sm:$0x7f]  ;;  %v4669_v0 = vand.u32 4294901760, %v20321_v56 }
  0x6a   : > { %3648 = vmatprep.subr.mxu1 %v3647_v17  ;;  %3296 = vmatmul.mubr.f32.vlgmr.msra.gmra.mxu0 %v20178_v42  ;;  %v4192_v14 = vsub.f32 %v20252_v19, %v4191_v23  ;;  %v20306_v42 = vsub.f32 %v4047_v9, %v20275_v25  ;;  %v4057_v17 = vrot.slane %v4007_v8, 2 }
  0x6b   : > { %3526 = vmatmul.mubr.f32.vlgmr.msra.gmra.mxu1 %v20149_v34  ;;  %3416 = vmatpush1.xpose.msra.mxu0 %v3179_v32  ;;  %v3607_v32 = vand.u32 4294901760, %v3606_v29 }
  0x6c   : > { %3654 = vmatpush1.xpose.msra.mxu1 %v3653_v20  ;;  %3450 = vmatprep.mubr.f32.mxu0 %v20138_v30  ;;  %v20298_v30 = vand.u32 4294901760, %v19694_v21  ;;  %v4193_v49 = vand.u32 4294901760, %v4192_v14  ;;  %v4151_v55 = vand.u32 4294901760, %v20306_v42 }
  0x6d   : > { %3562 = vmatprep.subr.mxu0 %v20170_v39  ;;  %3688 = vmatprep.mubr.f32.mxu1 %v20198_v52 }
  0x6e   : > { %3804 = vmatprep.subr.mxu1 %v20170_v39  ;;  %3452 = vmatmul.mubr.f32.vlgmr.msra.gmra.mxu0 %v20149_v34  ;;  %v4056_v34 = vsel %vm4044_vm0, %v4054_v37, %v4055_v33  ;;  %v20316_v51 = vsub.f32 %v19694_v21, %v20298_v30  ;;  %v5141_v37 = vand.u32 4294901760, %v20385_v27 }
  0x6f   : > { %3690 = vmatmul.mubr.f32.vlgmr.msra.gmra.mxu1 %v20211_v59  ;;  %3564 = vmatpush1.xpose.msra.mxu0 %v20180_v44  ;;  %v20326_v57 = vand.u32 4294901760, %v4056_v34 }
  0x70   : > { %3806 = vmatpush1.xpose.msra.mxu1 %v20180_v44  ;;  %3602 = vmatprep.mubr.f32.mxu0 %v3601_v28  ;;  %v4010_v28 = vld [vmem:[%s19837_s26 + $0x38] sm:$0xfc] }
  0x71   : > { %3727 = vmatprep.subr.mxu0 %v20188_v47  ;;  %3842 = vmatprep.mubr.f32.mxu1 %v3599_v13  ;;  %v20339_v47 = vand.u32 4294901760, %v4053_v60  ;;  %v20348_v3 = vsub.f32 %v4056_v34, %v20326_v57  ;;  %v4670_v13 = vsub.f32 %v20321_v56, %v4669_v0  ;;  %v4066_v14 = vrot.slane %v4010_v28, 2 }
  0x72   : > { %3960 = vmatprep.subr.mxu1 %v20170_v39  ;;  %3608 = vmatmul.mubr.f32.vlgmr.msra.gmra.mxu0 %v3607_v32  ;;  %v4146_v39 = vsub.f32 %v20284_v35, %v4145_v45  ;;  %v4067_v32 = vrot.slane %v4018_v36, 2 }
  0x73   : > { %3846 = vmatmul.mubr.f32.vlgmr.msra.gmra.mxu1 %v3605_v22  ;;  %3730 = vmatpush1.xpose.msra.mxu0 %v20193_v50  ;;  %v20370_v15 = vsub.f32 %v4053_v60, %v20339_v47  ;;  %v4617_v11 = vand.u32 4294901760, %v20348_v3  ;;  %v4671_v9 = vand.u32 4294901760, %v4670_v13  ;;  %v5966_v13 = vld [vmem:[%s19837_s26] sm:$0xf8] }
  0x74   : > { %3962 = vmatpush1.xpose.msra.mxu1 %v20180_v44  ;;  %3765 = vmatprep.mubr.f32.mxu0 %v20220_v62  ;;  %v4663_v44 = vand.u32 4294901760, %v20316_v51  ;;  %v4152_v62 = vsub.f32 %v20306_v42, %v4151_v55  ;;  %v4147_v1 = vand.u32 4294901760, %v4146_v39 }
  0x75   : > { %3884 = vmatprep.subr.mxu0 %v3645_v54  ;;  %3996 = vmatprep.mubr.f32.mxu1 %v20198_v52  ;;  %v19696_v54 = vld [vmem:[%s22480_s1 + $0xa8] sm:$0x7f]  ;;  %v4623_v26 = vand.u32 4294901760, %v20370_v15 }
  0x76   : > { %4194 = vmatprep.subr.mxu1 %v4193_v49  ;;  %3768 = vmatmul.mubr.f32.vlgmr.msra.gmra.mxu0 %v20242_v10  ;;  %v4015_v10 = vld [vmem:[%s19837_s26 + $0x60] sm:$0x1]  ;;  %v4664_v50 = vsub.f32 %v20316_v51, %v4663_v44  ;;  %v4063_v49 = vrot.slane %v4009_v41, 2 }
  0x77   : > { %3998 = vmatmul.mubr.f32.vlgmr.msra.gmra.mxu1 %v20211_v59  ;;  %3888 = vmatpush1.xpose.msra.mxu0 %v3651_v58  ;;  %v4153_v58 = vand.u32 4294901760, %v4152_v62  ;;  %v4058_v20 = vrot.slane %v4015_v10, 2  ;;  %v19699_v10 = vld [vmem:[%s22480_s1 + $0xc0] sm:$0x7f] }
  0x78   : > { %4200 = vmatpush1.xpose.msra.mxu1 %v4199_v53  ;;  %3922 = vmatprep.mubr.f32.mxu0 %v20198_v52  ;;  %v20362_v52 = vand.u32 4294901760, %v19696_v54  ;;  %v4665_v22 = vand.u32 4294901760, %v4664_v50 }
  0x79   : > { %4108 = vmatprep.subr.mxu0 %v20234_v4  ;;  %4234 = vmatprep.mubr.f32.mxu1 %v20262_v24  ;;  %v4059_v21 = vsel %vm4044_vm0, %v4057_v17, %v4058_v20  ;;  %v20500_v20 = vand.u32 4294901760, %v19699_v10 }
  0x7a   : > { %4350 = vmatprep.subr.mxu1 %v20234_v4  ;;  %3924 = vmatmul.mubr.f32.vlgmr.msra.gmra.mxu0 %v20211_v59  ;;  %v4062_v59 = vsel %vm4044_vm0, %v4060_v2, %v4061_v7  ;;  %v20380_v18 = vsub.f32 %v19696_v54, %v20362_v52  ;;  %v5613_v2 = vand.u32 4294901760, %v20449_v63 }
  0x7b   : > { %4236 = vmatmul.mubr.f32.vlgmr.msra.gmra.mxu1 %v20275_v25  ;;  %4110 = vmatpush1.xpose.msra.mxu0 %v20244_v12  ;;  %v20390_v29 = vand.u32 4294901760, %v4062_v59  ;;  %v20513_v36 = vsub.f32 %v19699_v10, %v20500_v20  ;;  %v5979_v10 = vld [vmem:[%s19837_s26 + $0x68] sm:$0x3] }
  0x7c   : > { %4352 = vmatpush1.xpose.msra.mxu1 %v20244_v12  ;;  %4148 = vmatprep.mubr.f32.mxu0 %v4147_v1  ;;  %v5967_v1 = vld [vmem:[%s19837_s26 + $0x8] sm:$0xf8] }
  0x7d   : > { %4273 = vmatprep.subr.mxu0 %v20252_v19  ;;  %4388 = vmatprep.mubr.f32.mxu1 %v4145_v45  ;;  %v20403_v19 = vand.u32 4294901760, %v4059_v21  ;;  %v20412_v38 = vsub.f32 %v4062_v59, %v20390_v29  ;;  %v5142_v45 = vsub.f32 %v20385_v27, %v5141_v37  ;;  %v6011_v50 = vrot.slane %v5967_v1, 3 }
  0x7e   : > { %4506 = vmatprep.subr.mxu1 %v20234_v4  ;;  %4154 = vmatmul.mubr.f32.vlgmr.msra.gmra.mxu0 %v4153_v58  ;;  %v4618_v4 = vsub.f32 %v20348_v3, %v4617_v11  ;;  %v6012_v58 = vrot.slane %v5975_v5, 3 }
  0x7f   : > { %4392 = vmatmul.mubr.f32.vlgmr.msra.gmra.mxu1 %v4151_v55  ;;  %4276 = vmatpush1.xpose.msra.mxu0 %v20257_v6  ;;  %v20434_v46 = vsub.f32 %v4059_v21, %v20403_v19  ;;  %v5089_v34 = vand.u32 4294901760, %v20412_v38  ;;  %v5143_v60 = vand.u32 4294901760, %v5142_v45  ;;  %v5968_v45 = vld [vmem:[%s19837_s26 + $0x10] sm:$0xf8] }
  0x80   : > { %4508 = vmatpush1.xpose.msra.mxu1 %v20244_v12  ;;  %4311 = vmatprep.mubr.f32.mxu0 %v20284_v35  ;;  %v5135_v12 = vand.u32 4294901760, %v20380_v18  ;;  %v4624_v35 = vsub.f32 %v20370_v15, %v4623_v26  ;;  %v4619_v33 = vand.u32 4294901760, %v4618_v4 }
  0x81   : > { %4430 = vmatprep.subr.mxu0 %v4191_v23  ;;  %4542 = vmatprep.mubr.f32.mxu1 %v20262_v24  ;;  %v19698_v23 = vld [vmem:[%s22480_s1 + $0xb8] sm:$0x7f]  ;;  %v5095_v61 = vand.u32 4294901760, %v20434_v46 }
  0x82   : > { %4666 = vmatprep.subr.mxu1 %v4665_v22  ;;  %4314 = vmatmul.mubr.f32.vlgmr.msra.gmra.mxu0 %v20306_v42  ;;  %v4017_v42 = vld [vmem:[%s19837_s26 + $0x70] sm:$0x1]  ;;  %v5136_v6 = vsub.f32 %v20380_v18, %v5135_v12  ;;  %v6008_v22 = vrot.slane %v5966_v13, 3 }
  0x83   : > { %4544 = vmatmul.mubr.f32.vlgmr.msra.gmra.mxu1 %v20275_v25  ;;  %4434 = vmatpush1.xpose.msra.mxu0 %v4197_v31  ;;  %v4625_v31 = vand.u32 4294901760, %v4624_v35  ;;  %v4064_v53 = vrot.slane %v4017_v42, 2  ;;  %v19701_v42 = vld [vmem:[%s22480_s1 + $0xd0] sm:$0x7f] }
  0x84   : > { %4672 = vmatpush1.xpose.msra.mxu1 %v4671_v9  ;;  %4468 = vmatprep.mubr.f32.mxu0 %v20262_v24  ;;  %v20426_v24 = vand.u32 4294901760, %v19698_v23  ;;  %v5137_v55 = vand.u32 4294901760, %v5136_v6 }
  0x85   : > { %4580 = vmatprep.subr.mxu0 %v20298_v30  ;;  %4706 = vmatprep.mubr.f32.mxu1 %v20326_v57  ;;  %v4065_v54 = vsel %vm4044_vm0, %v4063_v49, %v4064_v53  ;;  %v20564_v53 = vand.u32 4294901760, %v19701_v42 }
  0x86   : > { %4822 = vmatprep.subr.mxu1 %v20298_v30  ;;  %4470 = vmatmul.mubr.f32.vlgmr.msra.gmra.mxu0 %v20275_v25  ;;  %v4068_v25 = vsel %vm4044_vm0, %v4066_v14, %v4067_v32  ;;  %v20444_v39 = vsub.f32 %v19698_v23, %v20426_v24  ;;  %v6160_v14 = vand.u32 4294901760, %v20513_v36 }
  0x87   : > { %4708 = vmatmul.mubr.f32.vlgmr.msra.gmra.mxu1 %v20339_v47  ;;  %4582 = vmatpush1.xpose.msra.mxu0 %v20308_v43  ;;  %v20454_v62 = vand.u32 4294901760, %v4068_v25  ;;  %v20577_v5 = vsub.f32 %v19701_v42, %v20564_v53  ;;  %v5981_v42 = vld [vmem:[%s19837_s26 + $0x78] sm:$0x3] }
  0x88   : > { %4824 = vmatpush1.xpose.msra.mxu1 %v20308_v43  ;;  %4620 = vmatprep.mubr.f32.mxu0 %v4619_v33  ;;  %v5969_v33 = vld [vmem:[%s19837_s26 + $0x18] sm:$0xf8] }
  0x89   : > { %4745 = vmatprep.subr.mxu0 %v20316_v51  ;;  %4860 = vmatprep.mubr.f32.mxu1 %v4617_v11  ;;  %v20467_v51 = vand.u32 4294901760, %v4065_v54  ;;  %v20476_v8 = vsub.f32 %v4068_v25, %v20454_v62  ;;  %v5614_v11 = vsub.f32 %v20449_v63, %v5613_v2  ;;  %v6017_v6 = vrot.slane %v5969_v33, 3 }
  0x8a   : > { %4978 = vmatprep.subr.mxu1 %v20298_v30  ;;  %4626 = vmatmul.mubr.f32.vlgmr.msra.gmra.mxu0 %v4625_v31  ;;  %v5090_v30 = vsub.f32 %v20412_v38, %v5089_v34  ;;  %v6018_v31 = vrot.slane %v5977_v40, 3 }
  0x8b   : > { %4864 = vmatmul.mubr.f32.vlgmr.msra.gmra.mxu1 %v4623_v26  ;;  %4748 = vmatpush1.xpose.msra.mxu0 %v20321_v56  ;;  %v20498_v17 = vsub.f32 %v4065_v54, %v20467_v51  ;;  %v5561_v59 = vand.u32 4294901760, %v20476_v8  ;;  %v5615_v21 = vand.u32 4294901760, %v5614_v11  ;;  %v5970_v11 = vld [vmem:[%s19837_s26 + $0x20] sm:$0xf8] }
  0x8c   : > { %4980 = vmatpush1.xpose.msra.mxu1 %v20308_v43  ;;  %4783 = vmatprep.mubr.f32.mxu0 %v20348_v3  ;;  %v5607_v43 = vand.u32 4294901760, %v20444_v39  ;;  %v5096_v3 = vsub.f32 %v20434_v46, %v5095_v61  ;;  %v5091_v7 = vand.u32 4294901760, %v5090_v30 }
  0x8d   : > { %4902 = vmatprep.subr.mxu0 %v4663_v44  ;;  %5014 = vmatprep.mubr.f32.mxu1 %v20326_v57  ;;  %v19700_v44 = vld [vmem:[%s22480_s1 + $0xc8] sm:$0x7f]  ;;  %v5567_v28 = vand.u32 4294901760, %v20498_v17 }
  0x8e   : > { %5138 = vmatprep.subr.mxu1 %v5137_v55  ;;  %4786 = vmatmul.mubr.f32.vlgmr.msra.gmra.mxu0 %v20370_v15  ;;  %v5974_v15 = vld [vmem:[%s19837_s26 + $0x40] sm:$0x3]  ;;  %v5608_v56 = vsub.f32 %v20444_v39, %v5607_v43  ;;  %v6014_v55 = vrot.slane %v5968_v45, 3 }
  0x8f   : > { %5016 = vmatmul.mubr.f32.vlgmr.msra.gmra.mxu1 %v20339_v47  ;;  %4906 = vmatpush1.xpose.msra.mxu0 %v4669_v0  ;;  %v5097_v0 = vand.u32 4294901760, %v5096_v3  ;;  %v6009_v9 = vrot.slane %v5974_v15, 3  ;;  %v19703_v15 = vld [vmem:[%s22480_s1 + $0xe0] sm:$0x7f] }
  0x90   : > { %5144 = vmatpush1.xpose.msra.mxu1 %v5143_v60  ;;  %4940 = vmatprep.mubr.f32.mxu0 %v20326_v57  ;;  %v20490_v57 = vand.u32 4294901760, %v19700_v44  ;;  %v5609_v26 = vand.u32 4294901760, %v5608_v56 }
  0x91   : > { %5052 = vmatprep.subr.mxu0 %v20362_v52  ;;  %5178 = vmatprep.mubr.f32.mxu1 %v20390_v29  ;;  %v6010_v23 = vsel %vm6007_vm1, %v6008_v22, %v6009_v9  ;;  %v20628_v9 = vand.u32 4294901760, %v19703_v15 }
  0x92   : > { %5294 = vmatprep.subr.mxu1 %v20362_v52  ;;  %4942 = vmatmul.mubr.f32.vlgmr.msra.gmra.mxu0 %v20339_v47  ;;  %v6013_v47 = vsel %vm6007_vm1, %v6011_v50, %v6012_v58  ;;  %v20508_v4 = vsub.f32 %v19700_v44, %v20490_v57  ;;  %v6632_v50 = vand.u32 4294901760, %v20577_v5 }
  0x93   : > { %5180 = vmatmul.mubr.f32.vlgmr.msra.gmra.mxu1 %v20403_v19  ;;  %5054 = vmatpush1.xpose.msra.mxu0 %v20372_v16  ;;  %v20518_v35 = vand.u32 4294901760, %v6013_v47  ;;  %v20641_v40 = vsub.f32 %v19703_v15, %v20628_v9  ;;  %v7938_v15 = vld [vmem:[%s19837_s26 + $0x48] sm:$0x7] }
  0x94   : > { %5296 = vmatpush1.xpose.msra.mxu1 %v20372_v16  ;;  %5092 = vmatprep.mubr.f32.mxu0 %v5091_v7  ;;  %v5971_v7 = vld [vmem:[%s19837_s26 + $0x28] sm:$0xf8] }
  0x95   : > { %5217 = vmatprep.subr.mxu0 %v20380_v18  ;;  %5332 = vmatprep.mubr.f32.mxu1 %v5089_v34  ;;  %v20531_v18 = vand.u32 4294901760, %v6010_v23  ;;  %v20540_v41 = vsub.f32 %v6013_v47, %v20518_v35  ;;  %v6161_v34 = vsub.f32 %v20513_v36, %v6160_v14  ;;  %v6023_v56 = vrot.slane %v5971_v7, 3 }
  0x96   : > { %5450 = vmatprep.subr.mxu1 %v20362_v52  ;;  %5098 = vmatmul.mubr.f32.vlgmr.msra.gmra.mxu0 %v5097_v0  ;;  %v5562_v52 = vsub.f32 %v20476_v8, %v5561_v59  ;;  %v6024_v0 = vrot.slane %v5979_v10, 3 }
  0x97   : > { %5336 = vmatmul.mubr.f32.vlgmr.msra.gmra.mxu1 %v5095_v61  ;;  %5220 = vmatpush1.xpose.msra.mxu0 %v20385_v27  ;;  %v20562_v49 = vsub.f32 %v6010_v23, %v20531_v18  ;;  %v6108_v25 = vand.u32 4294901760, %v20540_v41  ;;  %v6162_v54 = vand.u32 4294901760, %v6161_v34  ;;  %v5972_v34 = vld [vmem:[%s19837_s26 + $0x30] sm:$0xf8] }
  0x98   : > { %5452 = vmatpush1.xpose.msra.mxu1 %v20372_v16  ;;  %5255 = vmatprep.mubr.f32.mxu0 %v20412_v38  ;;  %v6154_v16 = vand.u32 4294901760, %v20508_v4  ;;  %v5568_v38 = vsub.f32 %v20498_v17, %v5567_v28  ;;  %v5563_v32 = vand.u32 4294901760, %v5562_v52 }
  0x99   : > { %5374 = vmatprep.subr.mxu0 %v5135_v12  ;;  %5486 = vmatprep.mubr.f32.mxu1 %v20390_v29  ;;  %v19702_v12 = vld [vmem:[%s22480_s1 + $0xd8] sm:$0x7f]  ;;  %v6114_v1 = vand.u32 4294901760, %v20562_v49 }
  0x9a   : > { %5610 = vmatprep.subr.mxu1 %v5609_v26  ;;  %5258 = vmatmul.mubr.f32.vlgmr.msra.gmra.mxu0 %v20434_v46  ;;  %v5976_v46 = vld [vmem:[%s19837_s26 + $0x50] sm:$0x3]  ;;  %v6155_v27 = vsub.f32 %v20508_v4, %v6154_v16  ;;  %v6020_v26 = vrot.slane %v5970_v11, 3 }
  0x9b   : > { %5488 = vmatmul.mubr.f32.vlgmr.msra.gmra.mxu1 %v20403_v19  ;;  %5378 = vmatpush1.xpose.msra.mxu0 %v5141_v37  ;;  %v5569_v37 = vand.u32 4294901760, %v5568_v38  ;;  %v6015_v60 = vrot.slane %v5976_v46, 3  ;;  %v19705_v46 = vld [vmem:[%s22480_s1 + $0xf0] sm:$0x7f] }
  0x9c   : > { %5616 = vmatpush1.xpose.msra.mxu1 %v5615_v21  ;;  %5412 = vmatprep.mubr.f32.mxu0 %v20390_v29  ;;  %v20554_v29 = vand.u32 4294901760, %v19702_v12  ;;  %v6156_v61 = vand.u32 4294901760, %v6155_v27 }
  0x9d   : > { %5524 = vmatprep.subr.mxu0 %v20426_v24  ;;  %5650 = vmatprep.mubr.f32.mxu1 %v20454_v62  ;;  %v6016_v44 = vsel %vm6007_vm1, %v6014_v55, %v6015_v60  ;;  %v20692_v60 = vand.u32 4294901760, %v19705_v46 }
  0x9e   : > { %5766 = vmatprep.subr.mxu1 %v20426_v24  ;;  %5414 = vmatmul.mubr.f32.vlgmr.msra.gmra.mxu0 %v20403_v19  ;;  %v6019_v19 = vsel %vm6007_vm1, %v6017_v6, %v6018_v31  ;;  %v20572_v30 = vsub.f32 %v19702_v12, %v20554_v29  ;;  %v7104_v6 = vand.u32 4294901760, %v20641_v40 }
  0x9f   : > { %5652 = vmatmul.mubr.f32.vlgmr.msra.gmra.mxu1 %v20467_v51  ;;  %5526 = vmatpush1.xpose.msra.mxu0 %v20436_v48  ;;  %v20582_v3 = vand.u32 4294901760, %v6019_v19  ;;  %v20705_v10 = vsub.f32 %v19705_v46, %v20692_v60  ;;  %v7940_v46 = vld [vmem:[%s19837_s26 + $0x58] sm:$0x7] }
  0xa0   : > { %5768 = vmatpush1.xpose.msra.mxu1 %v20436_v48  ;;  %5564 = vmatprep.mubr.f32.mxu0 %v5563_v32  ;;  %v5973_v32 = vld [vmem:[%s19837_s26 + $0x38] sm:$0xf8] }
  0xa1   : > { %5689 = vmatprep.subr.mxu0 %v20444_v39  ;;  %5804 = vmatprep.mubr.f32.mxu1 %v5561_v59  ;;  %v20595_v39 = vand.u32 4294901760, %v6016_v44  ;;  %v20604_v13 = vsub.f32 %v6019_v19, %v20582_v3  ;;  %v6633_v59 = vsub.f32 %v20577_v5, %v6632_v50  ;;  %v6029_v27 = vrot.slane %v5973_v32, 3 }
  0xa2   : > { %5922 = vmatprep.subr.mxu1 %v20426_v24  ;;  %5570 = vmatmul.mubr.f32.vlgmr.msra.gmra.mxu0 %v5569_v37  ;;  %v6109_v24 = vsub.f32 %v20540_v41, %v6108_v25  ;;  %v6030_v37 = vrot.slane %v5981_v42, 3 }
  0xa3   : > { %5808 = vmatmul.mubr.f32.vlgmr.msra.gmra.mxu1 %v5567_v28  ;;  %5692 = vmatpush1.xpose.msra.mxu0 %v20449_v63  ;;  %v20626_v22 = vsub.f32 %v6016_v44, %v20595_v39  ;;  %v6580_v47 = vand.u32 4294901760, %v20604_v13  ;;  %v6634_v23 = vand.u32 4294901760, %v6633_v59  ;;  %v7929_v59 = vld [vmem:[%s19837_s26] sm:$0xf0] }
  0xa4   : > { %5924 = vmatpush1.xpose.msra.mxu1 %v20436_v48  ;;  %5727 = vmatprep.mubr.f32.mxu0 %v20476_v8  ;;  %v6626_v48 = vand.u32 4294901760, %v20572_v30  ;;  %v6115_v8 = vsub.f32 %v20562_v49, %v6114_v1  ;;  %v6110_v58 = vand.u32 4294901760, %v6109_v24 }
  0xa5   : > { %5846 = vmatprep.subr.mxu0 %v5607_v43  ;;  %5958 = vmatprep.mubr.f32.mxu1 %v20454_v62  ;;  %v19704_v43 = vld [vmem:[%s22480_s1 + $0xe8] sm:$0x7f]  ;;  %v6586_v33 = vand.u32 4294901760, %v20626_v22 }
  0xa6   : > { %6157 = vmatprep.subr.mxu1 %v6156_v61  ;;  %5730 = vmatmul.mubr.f32.vlgmr.msra.gmra.mxu0 %v20498_v17  ;;  %v5978_v17 = vld [vmem:[%s19837_s26 + $0x60] sm:$0x3]  ;;  %v6627_v63 = vsub.f32 %v20572_v30, %v6626_v48  ;;  %v6026_v61 = vrot.slane %v5972_v34, 3 }
  0xa7   : > { %5960 = vmatmul.mubr.f32.vlgmr.msra.gmra.mxu1 %v20467_v51  ;;  %5850 = vmatpush1.xpose.msra.mxu0 %v5613_v2  ;;  %v6116_v2 = vand.u32 4294901760, %v6115_v8  ;;  %v6021_v21 = vrot.slane %v5978_v17, 3  ;;  %v19707_v17 = vld [vmem:[%s22480_s1 + $0x100] sm:$0x7f] }
  0xa8   : > { %6163 = vmatpush1.xpose.msra.mxu1 %v6162_v54  ;;  %5884 = vmatprep.mubr.f32.mxu0 %v20454_v62  ;;  %v20618_v62 = vand.u32 4294901760, %v19704_v43  ;;  %v6628_v28 = vand.u32 4294901760, %v6627_v63 }
  0xa9   : > { %6071 = vmatprep.subr.mxu0 %v20490_v57  ;;  %6197 = vmatprep.mubr.f32.mxu1 %v20518_v35  ;;  %v6022_v12 = vsel %vm6007_vm1, %v6020_v26, %v6021_v21  ;;  %v20756_v21 = vand.u32 4294901760, %v19707_v17 }
  0xaa   : > { %6313 = vmatprep.subr.mxu1 %v20490_v57  ;;  %5886 = vmatmul.mubr.f32.vlgmr.msra.gmra.mxu0 %v20467_v51  ;;  %v6025_v51 = vsel %vm6007_vm1, %v6023_v56, %v6024_v0  ;;  %v20636_v52 = vsub.f32 %v19704_v43, %v20618_v62  ;;  %v7576_v56 = vand.u32 4294901760, %v20705_v10 }
  0xab   : > { %6199 = vmatmul.mubr.f32.vlgmr.msra.gmra.mxu1 %v20531_v18  ;;  %6073 = vmatpush1.xpose.msra.mxu0 %v20500_v20  ;;  %v20646_v38 = vand.u32 4294901760, %v6025_v51  ;;  %v20769_v42 = vsub.f32 %v19707_v17, %v20756_v21  ;;  %v7942_v17 = vld [vmem:[%s19837_s26 + $0x68] sm:$0x7] }
  0xac   : > { %6315 = vmatpush1.xpose.msra.mxu1 %v20500_v20  ;;  %6111 = vmatprep.mubr.f32.mxu0 %v6110_v58  ;;  %v7930_v58 = vld [vmem:[%s19837_s26 + $0x8] sm:$0xf0] }
  0xad   : > { %6236 = vmatprep.subr.mxu0 %v20508_v4  ;;  %6351 = vmatprep.mubr.f32.mxu1 %v6108_v25  ;;  %v20659_v4 = vand.u32 4294901760, %v6022_v12  ;;  %v20668_v45 = vsub.f32 %v6025_v51, %v20646_v38  ;;  %v7105_v25 = vsub.f32 %v20641_v40, %v7104_v6  ;;  %v7974_v63 = vrot.slane %v7930_v58, 4 }
  0xae   : > { %6469 = vmatprep.subr.mxu1 %v20490_v57  ;;  %6117 = vmatmul.mubr.f32.vlgmr.msra.gmra.mxu0 %v6116_v2  ;;  %v6581_v57 = vsub.f32 %v20604_v13, %v6580_v47  ;;  %v7975_v2 = vrot.slane %v7938_v15, 4 }
  0xaf   : > { %6355 = vmatmul.mubr.f32.vlgmr.msra.gmra.mxu1 %v6114_v1  ;;  %6239 = vmatpush1.xpose.msra.mxu0 %v20513_v36  ;;  %v20690_v55 = vsub.f32 %v6022_v12, %v20659_v4  ;;  %v7052_v19 = vand.u32 4294901760, %v20668_v45  ;;  %v7106_v44 = vand.u32 4294901760, %v7105_v25  ;;  %v7931_v25 = vld [vmem:[%s19837_s26 + $0x10] sm:$0xf0] }
  0xb0   : > { %6471 = vmatpush1.xpose.msra.mxu1 %v20500_v20  ;;  %6274 = vmatprep.mubr.f32.mxu0 %v20540_v41  ;;  %v7098_v20 = vand.u32 4294901760, %v20636_v52  ;;  %v6587_v41 = vsub.f32 %v20626_v22, %v6586_v33  ;;  %v6582_v31 = vand.u32 4294901760, %v6581_v57 }
  0xb1   : > { %6393 = vmatprep.subr.mxu0 %v6154_v16  ;;  %6505 = vmatprep.mubr.f32.mxu1 %v20518_v35  ;;  %v19706_v16 = vld [vmem:[%s22480_s1 + $0xf8] sm:$0x7f]  ;;  %v7058_v7 = vand.u32 4294901760, %v20690_v55 }
  0xb2   : > { %6629 = vmatprep.subr.mxu1 %v6628_v28  ;;  %6277 = vmatmul.mubr.f32.vlgmr.msra.gmra.mxu0 %v20562_v49  ;;  %v5980_v49 = vld [vmem:[%s19837_s26 + $0x70] sm:$0x3]  ;;  %v7099_v36 = vsub.f32 %v20636_v52, %v7098_v20  ;;  %v7971_v28 = vrot.slane %v7929_v59, 4 }
  0xb3   : > { %6507 = vmatmul.mubr.f32.vlgmr.msra.gmra.mxu1 %v20531_v18  ;;  %6397 = vmatpush1.xpose.msra.mxu0 %v6160_v14  ;;  %v6588_v14 = vand.u32 4294901760, %v6587_v41  ;;  %v6027_v54 = vrot.slane %v5980_v49, 3  ;;  %v19709_v49 = vld [vmem:[%s22480_s1 + $0x110] sm:$0x7f] }
  0xb4   : > { %6635 = vmatpush1.xpose.msra.mxu1 %v6634_v23  ;;  %6431 = vmatprep.mubr.f32.mxu0 %v20518_v35  ;;  %v20682_v35 = vand.u32 4294901760, %v19706_v16  ;;  %v7100_v1 = vand.u32 4294901760, %v7099_v36 }
  0xb5   : > { %6543 = vmatprep.subr.mxu0 %v20554_v29  ;;  %6669 = vmatprep.mubr.f32.mxu1 %v20582_v3  ;;  %v6028_v43 = vsel %vm6007_vm1, %v6026_v61, %v6027_v54  ;;  %v20820_v54 = vand.u32 4294901760, %v19709_v49 }
  0xb6   : > { %6785 = vmatprep.subr.mxu1 %v20554_v29  ;;  %6433 = vmatmul.mubr.f32.vlgmr.msra.gmra.mxu0 %v20531_v18  ;;  %v6031_v18 = vsel %vm6007_vm1, %v6029_v27, %v6030_v37  ;;  %v20700_v24 = vsub.f32 %v19706_v16, %v20682_v35  ;;  %v8123_v27 = vand.u32 4294901760, %v20769_v42 }
  0xb7   : > { %6671 = vmatmul.mubr.f32.vlgmr.msra.gmra.mxu1 %v20595_v39  ;;  %6545 = vmatpush1.xpose.msra.mxu0 %v20564_v53  ;;  %v20710_v8 = vand.u32 4294901760, %v6031_v18  ;;  %v20833_v15 = vsub.f32 %v19709_v49, %v20820_v54 }
  0xb8   : > { %6787 = vmatpush1.xpose.msra.mxu1 %v20564_v53  ;;  %6583 = vmatprep.mubr.f32.mxu0 %v6582_v31  ;;  %v7932_v31 = vld [vmem:[%s19837_s26 + $0x18] sm:$0xf0] }
  0xb9   : > { %6708 = vmatprep.subr.mxu0 %v20572_v30  ;;  %6823 = vmatprep.mubr.f32.mxu1 %v6580_v47  ;;  %v20723_v30 = vand.u32 4294901760, %v6028_v43  ;;  %v20732_v11 = vsub.f32 %v6031_v18, %v20710_v8  ;;  %v7577_v47 = vsub.f32 %v20705_v10, %v7576_v56  ;;  %v7980_v36 = vrot.slane %v7932_v31, 4 }
  0xba   : > { %6941 = vmatprep.subr.mxu1 %v20554_v29  ;;  %6589 = vmatmul.mubr.f32.vlgmr.msra.gmra.mxu0 %v6588_v14  ;;  %v7053_v29 = vsub.f32 %v20668_v45, %v7052_v19  ;;  %v7981_v14 = vrot.slane %v7940_v46, 4 }
  0xbb   : > { %6827 = vmatmul.mubr.f32.vlgmr.msra.gmra.mxu1 %v6586_v33  ;;  %6711 = vmatpush1.xpose.msra.mxu0 %v20577_v5  ;;  %v20754_v26 = vsub.f32 %v6028_v43, %v20723_v30  ;;  %v7524_v51 = vand.u32 4294901760, %v20732_v11  ;;  %v7578_v12 = vand.u32 4294901760, %v7577_v47  ;;  %v7933_v47 = vld [vmem:[%s19837_s26 + $0x20] sm:$0xf0] }
  0xbc   : > { %6943 = vmatpush1.xpose.msra.mxu1 %v20564_v53  ;;  %6746 = vmatprep.mubr.f32.mxu0 %v20604_v13  ;;  %v7570_v53 = vand.u32 4294901760, %v20700_v24  ;;  %v7059_v13 = vsub.f32 %v20690_v55, %v7058_v7  ;;  %v7054_v0 = vand.u32 4294901760, %v7053_v29 }
  0xbd   : > { %6865 = vmatprep.subr.mxu0 %v6626_v48  ;;  %6977 = vmatprep.mubr.f32.mxu1 %v20582_v3  ;;  %v19708_v48 = vld [vmem:[%s22480_s1 + $0x108] sm:$0x7f]  ;;  %v7530_v32 = vand.u32 4294901760, %v20754_v26 }
  0xbe   : > { %7101 = vmatprep.subr.mxu1 %v7100_v1  ;;  %6749 = vmatmul.mubr.f32.vlgmr.msra.gmra.mxu0 %v20626_v22  ;;  %v7937_v22 = vld [vmem:[%s19837_s26 + $0x40] sm:$0x7]  ;;  %v7571_v5 = vsub.f32 %v20700_v24, %v7570_v53  ;;  %v7977_v1 = vrot.slane %v7931_v25, 4 }
  0xbf   : > { %6979 = vmatmul.mubr.f32.vlgmr.msra.gmra.mxu1 %v20595_v39  ;;  %6869 = vmatpush1.xpose.msra.mxu0 %v6632_v50  ;;  %v7060_v50 = vand.u32 4294901760, %v7059_v13  ;;  %v7972_v23 = vrot.slane %v7937_v22, 4  ;;  %v19711_v22 = vld [vmem:[%s22480_s1 + $0x120] sm:$0x7f] }
  0xc0   : > { %7107 = vmatpush1.xpose.msra.mxu1 %v7106_v44  ;;  %6903 = vmatprep.mubr.f32.mxu0 %v20582_v3  ;;  %v20746_v3 = vand.u32 4294901760, %v19708_v48  ;;  %v7572_v33 = vand.u32 4294901760, %v7571_v5 }
  0xc1   : > { %7015 = vmatprep.subr.mxu0 %v20618_v62  ;;  %7141 = vmatprep.mubr.f32.mxu1 %v20646_v38  ;;  %v7973_v16 = vsel %vm7970_vm2, %v7971_v28, %v7972_v23 }
  0xc2   : > { %7257 = vmatprep.subr.mxu1 %v20618_v62  ;;  %6905 = vmatmul.mubr.f32.vlgmr.msra.gmra.mxu0 %v20595_v39  ;;  %v7976_v39 = vsel %vm7970_vm2, %v7974_v63, %v7975_v2  ;;  %v20764_v57 = vsub.f32 %v19708_v48, %v20746_v3  ;;  %v8595_v63 = vand.u32 4294901760, %v20833_v15 }
  0xc3   : > { %7143 = vmatmul.mubr.f32.vlgmr.msra.gmra.mxu1 %v20659_v4  ;;  %7017 = vmatpush1.xpose.msra.mxu0 %v20628_v9  ;;  %v20774_v41 = vand.u32 4294901760, %v7976_v39 }
  0xc4   : > { %7259 = vmatpush1.xpose.msra.mxu1 %v20628_v9  ;;  %7055 = vmatprep.mubr.f32.mxu0 %v7054_v0  ;;  %v7934_v0 = vld [vmem:[%s19837_s26 + $0x28] sm:$0xf0]  ;;  %v8596_v28 = vsub.f32 %v20833_v15, %v8595_v63 }
  0xc5   : > { %7180 = vmatprep.subr.mxu0 %v20636_v52  ;;  %7295 = vmatprep.mubr.f32.mxu1 %v7052_v19  ;;  %v20787_v52 = vand.u32 4294901760, %v7973_v16  ;;  %v20796_v34 = vsub.f32 %v7976_v39, %v20774_v41  ;;  %v8124_v19 = vsub.f32 %v20769_v42, %v8123_v27  ;;  %v7986_v5 = vrot.slane %v7934_v0, 4 }
  0xc6   : > { %7413 = vmatprep.subr.mxu1 %v20618_v62  ;;  %7061 = vmatmul.mubr.f32.vlgmr.msra.gmra.mxu0 %v7060_v50  ;;  %v7525_v62 = vsub.f32 %v20732_v11, %v7524_v51  ;;  %v7987_v50 = vrot.slane %v7942_v17, 4  ;;  %v20884_v39 = vand.u32 4294901760, %v19711_v22 }
  0xc7   : > { %7299 = vmatmul.mubr.f32.vlgmr.msra.gmra.mxu1 %v7058_v7  ;;  %7183 = vmatpush1.xpose.msra.mxu0 %v20641_v40  ;;  %v20818_v61 = vsub.f32 %v7973_v16, %v20787_v52  ;;  %v8071_v18 = vand.u32 4294901760, %v20796_v34  ;;  %v8125_v43 = vand.u32 4294901760, %v8124_v19 }
  0xc8   : > { %7415 = vmatpush1.xpose.msra.mxu1 %v20628_v9  ;;  %7218 = vmatprep.mubr.f32.mxu0 %v20668_v45  ;;  %v8117_v9 = vand.u32 4294901760, %v20764_v57  ;;  %v7531_v45 = vsub.f32 %v20754_v26, %v7530_v32  ;;  %v7526_v37 = vand.u32 4294901760, %v7525_v62  ;;  %v7988_v62 = vsel %vm7970_vm2, %v7986_v5, %v7987_v50 }
  0xc9   : > { %7337 = vmatprep.subr.mxu0 %v7098_v20  ;;  %7449 = vmatprep.mubr.f32.mxu1 %v20646_v38  ;;  %v19710_v20 = vld [vmem:[%s22480_s1 + $0x118] sm:$0x7f]  ;;  %v8077_v58 = vand.u32 4294901760, %v20818_v61  ;;  %v20897_v49 = vsub.f32 %v19711_v22, %v20884_v39  ;;  %v20904_v25 = vand.u32 4294901760, %v7988_v62 }
  0xca   : > { %7573 = vmatprep.subr.mxu1 %v7572_v33  ;;  %7221 = vmatmul.mubr.f32.vlgmr.msra.gmra.mxu0 %v20690_v55  ;;  %v7939_v55 = vld [vmem:[%s19837_s26 + $0x50] sm:$0x7]  ;;  %v8118_v40 = vsub.f32 %v20764_v57, %v8117_v9 }
  0xcb   : > { %7451 = vmatmul.mubr.f32.vlgmr.msra.gmra.mxu1 %v20659_v4  ;;  %7341 = vmatpush1.xpose.msra.mxu0 %v7104_v6  ;;  %v7532_v6 = vand.u32 4294901760, %v7531_v45  ;;  %v7978_v44 = vrot.slane %v7939_v55, 4 }
  0xcc   : > { %7579 = vmatpush1.xpose.msra.mxu1 %v7578_v12  ;;  %7375 = vmatprep.mubr.f32.mxu0 %v20646_v38  ;;  %v20810_v38 = vand.u32 4294901760, %v19710_v20  ;;  %v8119_v7 = vand.u32 4294901760, %v8118_v40  ;;  %v19714_v40 = vld [vmem:[%s22480_s1 + $0x138] sm:$0x7f] }
  0xcd   : > { %7487 = vmatprep.subr.mxu0 %v20682_v35  ;;  %7613 = vmatprep.mubr.f32.mxu1 %v20710_v8  ;;  %v7979_v48 = vsel %vm7970_vm2, %v7977_v1, %v7978_v44  ;;  %v9067_v44 = vand.u32 4294901760, %v20897_v49  ;;  %v20936_v0 = vand.u32 4294901760, %v19714_v40 }
  0xce   : > { %7729 = vmatprep.subr.mxu1 %v20682_v35  ;;  %7377 = vmatmul.mubr.f32.vlgmr.msra.gmra.mxu0 %v20659_v4  ;;  %v7982_v4 = vsel %vm7970_vm2, %v7980_v36, %v7981_v14  ;;  %v20828_v29 = vsub.f32 %v19710_v20, %v20810_v38  ;;  %v8597_v20 = vand.u32 4294901760, %v8596_v28 }
  0xcf   : > { %7615 = vmatmul.mubr.f32.vlgmr.msra.gmra.mxu1 %v20723_v30  ;;  %7489 = vmatpush1.xpose.msra.mxu0 %v20692_v60  ;;  %v20838_v13 = vand.u32 4294901760, %v7982_v4  ;;  %v9068_v50 = vsub.f32 %v20897_v49, %v9067_v44 }
  0xd0   : > { %7731 = vmatpush1.xpose.msra.mxu1 %v20692_v60  ;;  %7527 = vmatprep.mubr.f32.mxu0 %v7526_v37 }
  0xd1   : > { %7652 = vmatprep.subr.mxu0 %v20700_v24  ;;  %7767 = vmatprep.mubr.f32.mxu1 %v7524_v51  ;;  %v20851_v24 = vand.u32 4294901760, %v7979_v48  ;;  %v20860_v59 = vsub.f32 %v7982_v4, %v20838_v13 }
  0xd2   : > { %7885 = vmatprep.subr.mxu1 %v20682_v35  ;;  %7533 = vmatmul.mubr.f32.vlgmr.msra.gmra.mxu0 %v7532_v6  ;;  %v8072_v35 = vsub.f32 %v20796_v34, %v8071_v18 }
  0xd3   : > { %7771 = vmatmul.mubr.f32.vlgmr.msra.gmra.mxu1 %v7530_v32  ;;  %7655 = vmatpush1.xpose.msra.mxu0 %v20705_v10  ;;  %v20882_v23 = vsub.f32 %v7979_v48, %v20851_v24  ;;  %v8543_v12 = vand.u32 4294901760, %v20860_v59  ;;  %v7983_v32 = vrot.slane %v7933_v47, 4 }
  0xd4   : > { %7887 = vmatpush1.xpose.msra.mxu1 %v20692_v60  ;;  %7690 = vmatprep.mubr.f32.mxu0 %v20732_v11  ;;  %v8589_v60 = vand.u32 4294901760, %v20828_v29  ;;  %v8078_v11 = vsub.f32 %v20818_v61, %v8077_v58  ;;  %v8073_v2 = vand.u32 4294901760, %v8072_v35  ;;  %v7935_v35 = vld [vmem:[%s19837_s26 + $0x30] sm:$0xf0] }
  0xd5   : > { %7809 = vmatprep.subr.mxu0 %v7570_v53  ;;  %7921 = vmatprep.mubr.f32.mxu1 %v20710_v8  ;;  %v19712_v53 = vld [vmem:[%s22480_s1 + $0x128] sm:$0x7f]  ;;  %v8549_v37 = vand.u32 4294901760, %v20882_v23  ;;  %v8544_v14 = vsub.f32 %v20860_v59, %v8543_v12 }
  0xd6   : > { %8120 = vmatprep.subr.mxu1 %v8119_v7  ;;  %7693 = vmatmul.mubr.f32.vlgmr.msra.gmra.mxu0 %v20754_v26  ;;  %v7941_v26 = vld [vmem:[%s19837_s26 + $0x60] sm:$0x7]  ;;  %v8079_v51 = vand.u32 4294901760, %v8078_v11 }
  0xd7   : > { %7923 = vmatmul.mubr.f32.vlgmr.msra.gmra.mxu1 %v20723_v30  ;;  %7813 = vmatpush1.xpose.msra.mxu0 %v7576_v56  ;;  %v20874_v56 = vand.u32 4294901760, %v19712_v53  ;;  %v8550_v1 = vsub.f32 %v20882_v23, %v8549_v37 }
  0xd8   : > { %8126 = vmatpush1.xpose.msra.mxu1 %v8125_v43  ;;  %7847 = vmatprep.mubr.f32.mxu0 %v20710_v8  ;;  %v8590_v8 = vsub.f32 %v20828_v29, %v8589_v60 }
  0xd9   : > { %8034 = vmatprep.subr.mxu0 %v20746_v3  ;;  %8160 = vmatprep.mubr.f32.mxu1 %v20774_v41  ;;  %v20892_v46 = vsub.f32 %v19712_v53, %v20874_v56  ;;  %v8551_v5 = vand.u32 4294901760, %v8550_v1 }
  0xda   : > { %8276 = vmatprep.subr.mxu1 %v20746_v3  ;;  %7849 = vmatmul.mubr.f32.vlgmr.msra.gmra.mxu0 %v20723_v30  ;;  %v7984_v30 = vrot.slane %v7941_v26, 4  ;;  %v8591_v31 = vand.u32 4294901760, %v8590_v8 }
  0xdb   : > { %v387_v10 = vpop.f32.mrf.mxu1  ;;  %8162 = vmatmul.mubr.f32.vlgmr.msra.gmra.mxu1 %v20787_v52  ;;  %8036 = vmatpush1.xpose.msra.mxu0 %v20756_v21  ;;  %v9061_v19 = vand.u32 4294901760, %v20892_v46 }
  0xdc   : > { %8278 = vmatpush1.xpose.msra.mxu1 %v20756_v21  ;;  %8074 = vmatprep.mubr.f32.mxu0 %v8073_v2 }
  0xdd   : > { %v389_v33 = vpop.f32.mrf.mxu1  ;;  %8199 = vmatprep.subr.mxu0 %v20764_v57  ;;  %8314 = vmatprep.mubr.f32.mxu1 %v8071_v18  ;;  %v7936_v18 = vld [vmem:[%s19837_s26 + $0x38] sm:$0xf0]  ;;  %v7944_v57 = vld [vmem:[%s19837_s26 + $0x78] sm:$0x7]  ;;  %v9062_v2 = vsub.f32 %v20892_v46, %v9061_v19 }
  0xde   : > { %8432 = vmatprep.subr.mxu1 %v20746_v3  ;;  %v305_v45 = vpop.f32.mrf.mxu0  ;;  %8080 = vmatmul.mubr.f32.vlgmr.msra.gmra.mxu0 %v8079_v51  ;;  %v7992_v11 = vrot.slane %v7936_v18, 4  ;;  %v7989_v51 = vrot.slane %v7935_v35, 4  ;;  %v9900_v35 = vld [vmem:[%s19837_s26 + $0x40] sm:$0xf] }
  0xdf   : > { %v543_v16 = vpop.f32.mrf.mxu1  ;;  %8318 = vmatmul.mubr.f32.vlgmr.msra.gmra.mxu1 %v8077_v58  ;;  %v388_v36 = vadd.f32 %v387_v10, %v305_v45  ;;  %8202 = vmatpush1.xpose.msra.mxu0 %v20769_v42  ;;  %v8545_v58 = vand.u32 4294901760, %v8544_v14  ;;  %v7993_v42 = vrot.slane %v7944_v57, 4 }
  0xe0   : > { %8434 = vmatpush1.xpose.msra.mxu1 %v20756_v21  ;;  %8237 = vmatprep.mubr.f32.mxu0 %v20796_v34  ;;  %v7985_v21 = vsel %vm7970_vm2, %v7983_v32, %v7984_v30  ;;  %v307_v55 = vpop.f32.mrf.mxu0  ;;  %v19713_v34 = vld [vmem:[%s22480_s1 + $0x130] sm:$0x7f]  ;;  %v20963_v32 = vsub.f32 %v19714_v40, %v20936_v0 }
  0xe1   : > { %v545_v3 = vpop.f32.mrf.mxu1  ;;  %8356 = vmatprep.subr.mxu0 %v8117_v9  ;;  %8468 = vmatprep.mubr.f32.mxu1 %v20774_v41  ;;  %v20925_v4 = vand.u32 4294901760, %v7985_v21  ;;  %v20938_v17 = vand.u32 4294901760, %v19713_v34  ;;  %v7994_v30 = vsel %vm7970_vm2, %v7992_v11, %v7993_v42 }
  0xe2   : > { %8592 = vmatprep.subr.mxu1 %v8591_v31  ;;  %v465_v9 = vpop.f32.mrf.mxu0  ;;  %8240 = vmatmul.mubr.f32.vlgmr.msra.gmra.mxu0 %v20818_v61  ;;  %v20931_v61 = vsub.f32 %v7988_v62, %v20904_v25  ;;  %v9063_v31 = vand.u32 4294901760, %v9062_v2 }
  0xe3   : > { %v695_v6 = vpop.f32.mrf.mxu1  ;;  %8470 = vmatmul.mubr.f32.vlgmr.msra.gmra.mxu1 %v20787_v52  ;;  %v466_v7 = vadd.f32 %v465_v9, %v388_v36  ;;  %8360 = vmatpush1.xpose.msra.mxu0 %v8123_v27  ;;  %v7943_v27 = vld [vmem:[%s19837_s26 + $0x70] sm:$0x7]  ;;  %v20952_v47 = vsub.f32 %v7985_v21, %v20925_v4  ;;  %v20960_v33 = vsub.f32 %v19713_v34, %v20938_v17  ;;  %v9533_v21 = vand.u32 4294901760, %v20963_v32  ;;  %v19716_v34 = vld [vmem:[%s22480_s1 + $0x148] sm:$0x7f] }
  0xe4   : > { %8598 = vmatpush1.xpose.msra.mxu1 %v8597_v20  ;;  %8394 = vmatprep.mubr.f32.mxu0 %v20774_v41  ;;  %v467_v48 = vpop.f32.mrf.mxu0  ;;  %v9015_v8 = vand.u32 4294901760, %v20931_v61  ;;  %v7990_v28 = vrot.slane %v7943_v27, 4  ;;  %v19715_v9 = vld [vmem:[%s22480_s1 + $0x140] sm:$0x7f] }
  0xe5   : > { %v697_v43 = vpop.f32.mrf.mxu1  ;;  %8506 = vmatprep.subr.mxu0 %v20810_v38  ;;  %8632 = vmatprep.mubr.f32.mxu1 %v20838_v13  ;;  %v544_v53 = vadd.f32 %v543_v16, %v466_v7  ;;  %v9021_v20 = vand.u32 4294901760, %v20952_v47  ;;  %v9534_v11 = vsub.f32 %v20963_v32, %v9533_v21 }
  0xe6   : > { %8748 = vmatprep.subr.mxu1 %v20810_v38  ;;  %v621_v22 = vpop.f32.mrf.mxu0  ;;  %8396 = vmatmul.mubr.f32.vlgmr.msra.gmra.mxu0 %v20787_v52  ;;  %v7991_v14 = vsel %vm7970_vm2, %v7989_v51, %v7990_v28 }
  0xe7   : > { %v859_v41 = vpop.f32.mrf.mxu1  ;;  %8634 = vmatmul.mubr.f32.vlgmr.msra.gmra.mxu1 %v20851_v24  ;;  %v622_v26 = vadd.f32 %v621_v22, %v544_v53  ;;  %8508 = vmatpush1.xpose.msra.mxu0 %v20820_v54  ;;  %v9022_v18 = vsub.f32 %v20952_v47, %v9021_v20  ;;  %v20994_v57 = vand.u32 4294901760, %v7991_v14 }
  0xe8   : > { %8750 = vmatpush1.xpose.msra.mxu1 %v20820_v54  ;;  %8546 = vmatprep.mubr.f32.mxu0 %v8545_v58  ;;  %v623_v52 = vpop.f32.mrf.mxu0  ;;  %v9892_v58 = vld [vmem:[%s19837_s26] sm:$0xe0] }
  0xe9   : > { %v861_v10 = vpop.f32.mrf.mxu1  ;;  %8671 = vmatprep.subr.mxu0 %v20828_v29  ;;  %8786 = vmatprep.mubr.f32.mxu1 %v8543_v12  ;;  %v696_v62 = vadd.f32 %v695_v6, %v622_v26  ;;  %v9069_v12 = vand.u32 4294901760, %v9068_v50  ;;  %v9893_v6 = vld [vmem:[%s19837_s26 + $0x8] sm:$0xe0]  ;;  %v9901_v29 = vld [vmem:[%s19837_s26 + $0x48] sm:$0xf]  ;;  %v9023_v22 = vand.u32 4294901760, %v9022_v18 }
  0xea   : > { %8904 = vmatprep.subr.mxu1 %v20810_v38  ;;  %v777_v45 = vpop.f32.mrf.mxu0  ;;  %8552 = vmatmul.mubr.f32.vlgmr.msra.gmra.mxu0 %v8551_v5  ;;  %v9016_v38 = vsub.f32 %v20931_v61, %v9015_v8  ;;  %v21024_v5 = vsub.f32 %v7991_v14, %v20994_v57  ;;  %v9934_v50 = vrot.slane %v9892_v58, 5  ;;  %v9935_v26 = vrot.slane %v9900_v35, 5  ;;  %v9894_v35 = vld [vmem:[%s19837_s26 + $0x10] sm:$0xe0] }
  0xeb   : > { %v1015_v16 = vpop.f32.mrf.mxu1  ;;  %8790 = vmatmul.mubr.f32.vlgmr.msra.gmra.mxu1 %v8549_v37  ;;  %v778_v36 = vadd.f32 %v777_v45, %v696_v62  ;;  %8674 = vmatpush1.xpose.msra.mxu0 %v20833_v15  ;;  %v20976_v37 = vand.u32 4294901760, %v7994_v30  ;;  %v21012_v15 = vand.u32 4294901760, %v19716_v34 }
  0xec   : > { %8906 = vmatpush1.xpose.msra.mxu1 %v20820_v54  ;;  %8709 = vmatprep.mubr.f32.mxu0 %v20860_v59  ;;  %v779_v54 = vpop.f32.mrf.mxu0  ;;  %v9539_v59 = vand.u32 4294901760, %v20960_v33  ;;  %v9017_v43 = vand.u32 4294901760, %v9016_v38 }
  0xed   : > { %v1017_v3 = vpop.f32.mrf.mxu1  ;;  %8828 = vmatprep.subr.mxu0 %v8589_v60  ;;  %8940 = vmatprep.mubr.f32.mxu1 %v20838_v13  ;;  %v860_v55 = vadd.f32 %v859_v41, %v778_v36  ;;  %v21019_v41 = vand.u32 4294901760, %v19715_v9  ;;  %v19718_v54 = vld [vmem:[%s22480_s1 + $0x158] sm:$0x7f] }
  0xee   : > { %9064 = vmatprep.subr.mxu1 %v9063_v31  ;;  %v937_v60 = vpop.f32.mrf.mxu0  ;;  %8712 = vmatmul.mubr.f32.vlgmr.msra.gmra.mxu0 %v20882_v23  ;;  %v21003_v23 = vsub.f32 %v7994_v30, %v20976_v37  ;;  %v9540_v53 = vsub.f32 %v20960_v33, %v9539_v59  ;;  %v21036_v31 = vsub.f32 %v19716_v34, %v21012_v15 }
  0xef   : > { %v1167_v40 = vpop.f32.mrf.mxu1  ;;  %8942 = vmatmul.mubr.f32.vlgmr.msra.gmra.mxu1 %v20851_v24  ;;  %v938_v1 = vadd.f32 %v937_v60, %v860_v55  ;;  %8832 = vmatpush1.xpose.msra.mxu0 %v8595_v63  ;;  %v9937_v63 = vrot.slane %v9893_v6, 5  ;;  %v21041_v36 = vsub.f32 %v19715_v9, %v21019_v41  ;;  %v9936_v3 = vsel %vm9933_vm3, %v9934_v50, %v9935_v26  ;;  %v9895_v6 = vld [vmem:[%s19837_s26 + $0x18] sm:$0xe0] }
  0xf0   : > { %9070 = vmatpush1.xpose.msra.mxu1 %v9069_v12  ;;  %8866 = vmatprep.mubr.f32.mxu0 %v20838_v13  ;;  %v939_v48 = vpop.f32.mrf.mxu0  ;;  %v9938_v13 = vrot.slane %v9901_v29, 5  ;;  %v9487_v28 = vand.u32 4294901760, %v21003_v23  ;;  %v9541_v12 = vand.u32 4294901760, %v9540_v53  ;;  %v21059_v34 = vand.u32 4294901760, %v9936_v3  ;;  %v9903_v29 = vld [vmem:[%s19837_s26 + $0x58] sm:$0xf] }
  0xf1   : > { %v1169_v7 = vpop.f32.mrf.mxu1  ;;  %8978 = vmatprep.subr.mxu0 %v20874_v56  ;;  %9104 = vmatprep.mubr.f32.mxu1 %v20904_v25  ;;  %v1016_v42 = vadd.f32 %v1015_v16, %v938_v1  ;;  %v9535_v16 = vand.u32 4294901760, %v9534_v11 }
  0xf2   : > { %9220 = vmatprep.subr.mxu1 %v20874_v56  ;;  %v1093_v2 = vpop.f32.mrf.mxu0  ;;  %8868 = vmatmul.mubr.f32.vlgmr.msra.gmra.mxu0 %v20851_v24  ;;  %v9939_v24 = vsel %vm9933_vm3, %v9937_v63, %v9938_v13  ;;  %v21089_v13 = vsub.f32 %v9936_v3, %v21059_v34 }
  0xf3   : > { %v1331_v27 = vpop.f32.mrf.mxu1  ;;  %9106 = vmatmul.mubr.f32.vlgmr.msra.gmra.mxu1 %v20925_v4  ;;  %v1094_v10 = vadd.f32 %v1093_v2, %v1016_v42  ;;  %8980 = vmatpush1.xpose.msra.mxu0 %v20884_v39 }
  0xf4   : > { %9222 = vmatpush1.xpose.msra.mxu1 %v20884_v39  ;;  %9018 = vmatprep.mubr.f32.mxu0 %v9017_v43  ;;  %v1095_v52 = vpop.f32.mrf.mxu0  ;;  %v19717_v43 = vld [vmem:[%s22480_s1 + $0x150] sm:$0x7f] }
  0xf5   : > { %v1333_v51 = vpop.f32.mrf.mxu1  ;;  %9143 = vmatprep.subr.mxu0 %v20892_v46  ;;  %9258 = vmatprep.mubr.f32.mxu1 %v9015_v8  ;;  %v1168_v30 = vadd.f32 %v1167_v40, %v1094_v10  ;;  %v9493_v8 = vand.u32 4294901760, %v21024_v5  ;;  %v21096_v2 = vand.u32 4294901760, %v19717_v43  ;;  %v9940_v10 = vrot.slane %v9894_v35, 5 }
  0xf6   : > { %9376 = vmatprep.subr.mxu1 %v20874_v56  ;;  %v1249_v45 = vpop.f32.mrf.mxu0  ;;  %9024 = vmatmul.mubr.f32.vlgmr.msra.gmra.mxu0 %v9023_v22 }
  0xf7   : > { %v1487_v62 = vpop.f32.mrf.mxu1  ;;  %9262 = vmatmul.mubr.f32.vlgmr.msra.gmra.mxu1 %v9021_v20  ;;  %v1250_v38 = vadd.f32 %v1249_v45, %v1168_v30  ;;  %9146 = vmatpush1.xpose.msra.mxu0 %v20897_v49  ;;  %v21049_v20 = vand.u32 4294901760, %v9939_v24  ;;  %v9494_v46 = vsub.f32 %v21024_v5, %v9493_v8  ;;  %v9943_v49 = vrot.slane %v9895_v6, 5 }
  0xf8   : > { %9378 = vmatpush1.xpose.msra.mxu1 %v20884_v39  ;;  %9181 = vmatprep.mubr.f32.mxu0 %v20931_v61  ;;  %v9488_v39 = vsub.f32 %v21003_v23, %v9487_v28  ;;  %v1251_v14 = vpop.f32.mrf.mxu0  ;;  %v10080_v61 = vand.u32 4294901760, %v21036_v31  ;;  %v10040_v45 = vand.u32 4294901760, %v21089_v13  ;;  %v21113_v3 = vsub.f32 %v19717_v43, %v21096_v2 }
  0xf9   : > { %v1489_v56 = vpop.f32.mrf.mxu1  ;;  %9300 = vmatprep.subr.mxu0 %v9061_v19  ;;  %9412 = vmatprep.mubr.f32.mxu1 %v20904_v25  ;;  %v1332_v55 = vadd.f32 %v1331_v27, %v1250_v38  ;;  %v10086_v19 = vand.u32 4294901760, %v21041_v36  ;;  %v21072_v7 = vsub.f32 %v9939_v24, %v21049_v20  ;;  %v9495_v27 = vand.u32 4294901760, %v9494_v46  ;;  %v19719_v46 = vld [vmem:[%s22480_s1 + $0x160] sm:$0x7f] }
  0xfa   : > { %9536 = vmatprep.subr.mxu1 %v9535_v16  ;;  %v1409_v60 = vpop.f32.mrf.mxu0  ;;  %9184 = vmatmul.mubr.f32.vlgmr.msra.gmra.mxu0 %v20952_v47  ;;  %v9489_v1 = vand.u32 4294901760, %v9488_v39  ;;  %v21074_v47 = vand.u32 4294901760, %v19718_v54  ;;  %v10081_v63 = vsub.f32 %v21036_v31, %v10080_v61 }
  0xfb   : > { %v1639_v40 = vpop.f32.mrf.mxu1  ;;  %9414 = vmatmul.mubr.f32.vlgmr.msra.gmra.mxu1 %v20925_v4  ;;  %v1410_v18 = vadd.f32 %v1409_v60, %v1332_v55  ;;  %9304 = vmatpush1.xpose.msra.mxu0 %v9067_v44  ;;  %v9944_v44 = vrot.slane %v9903_v29, 5  ;;  %v10087_v53 = vsub.f32 %v21041_v36, %v10086_v19  ;;  %v10034_v26 = vand.u32 4294901760, %v21072_v7 }
  0xfc   : > { %9542 = vmatpush1.xpose.msra.mxu1 %v9541_v12  ;;  %9338 = vmatprep.mubr.f32.mxu0 %v20904_v25  ;;  %v1411_v58 = vpop.f32.mrf.mxu0  ;;  %v9902_v25 = vld [vmem:[%s19837_s26 + $0x50] sm:$0xf]  ;;  %v10082_v16 = vand.u32 4294901760, %v10081_v63  ;;  %v10041_v55 = vsub.f32 %v21089_v13, %v10040_v45  ;;  %v10558_v29 = vand.u32 4294901760, %v21113_v3 }
  0xfd   : > { %v1641_v9 = vpop.f32.mrf.mxu1  ;;  %9450 = vmatprep.subr.mxu0 %v20936_v0  ;;  %9576 = vmatprep.mubr.f32.mxu1 %v20976_v37  ;;  %v1488_v48 = vadd.f32 %v1487_v62, %v1410_v18  ;;  %v9941_v51 = vrot.slane %v9902_v25, 5  ;;  %v9945_v24 = vsel %vm9933_vm3, %v9943_v49, %v9944_v44  ;;  %v9904_v58 = vld [vmem:[%s19837_s26 + $0x60] sm:$0xf] }
  0xfe   : > { %9692 = vmatprep.subr.mxu1 %v20936_v0  ;;  %v1565_v42 = vpop.f32.mrf.mxu0  ;;  %9340 = vmatmul.mubr.f32.vlgmr.msra.gmra.mxu0 %v20925_v4  ;;  %v21104_v4 = vsub.f32 %v19718_v54, %v21074_v47  ;;  %v21120_v56 = vand.u32 4294901760, %v9945_v24 }
  0xff   : > { %v1803_v11 = vpop.f32.mrf.mxu1  ;;  %9578 = vmatmul.mubr.f32.vlgmr.msra.gmra.mxu1 %v20994_v57  ;;  %v1566_v22 = vadd.f32 %v1565_v42, %v1488_v48  ;;  %9452 = vmatpush1.xpose.msra.mxu0 %v20938_v17  ;;  %v10042_v48 = vand.u32 4294901760, %v10041_v55  ;;  %v10559_v42 = vsub.f32 %v21113_v3, %v10558_v29 }
 0x100   : > { %9694 = vmatpush1.xpose.msra.mxu1 %v20938_v17  ;;  %9490 = vmatprep.mubr.f32.mxu0 %v9489_v1  ;;  %v1567_v52 = vpop.f32.mrf.mxu0  ;;  %v10552_v14 = vand.u32 4294901760, %v21104_v4  ;;  %v21147_v43 = vsub.f32 %v9945_v24, %v21120_v56 }
 0x101   : > { %v1805_v50 = vpop.f32.mrf.mxu1  ;;  %9615 = vmatprep.subr.mxu0 %v20963_v32  ;;  %9730 = vmatprep.mubr.f32.mxu1 %v9487_v28  ;;  %v1640_v30 = vadd.f32 %v1639_v40, %v1566_v22  ;;  %v10088_v28 = vand.u32 4294901760, %v10087_v53  ;;  %v19720_v40 = vld [vmem:[%s22480_s1 + $0x168] sm:$0x7f]  ;;  %v9947_v22 = vrot.slane %v9904_v58, 5 }
 0x102   : > { %9848 = vmatprep.subr.mxu1 %v20936_v0  ;;  %v1721_v12 = vpop.f32.mrf.mxu0  ;;  %9496 = vmatmul.mubr.f32.vlgmr.msra.gmra.mxu0 %v9495_v27  ;;  %v10035_v0 = vsub.f32 %v21072_v7, %v10034_v26  ;;  %v9897_v32 = vld [vmem:[%s19837_s26 + $0x28] sm:$0xe0]  ;;  %v21153_v44 = vand.u32 4294901760, %v19720_v40 }
 0x103   : > { %v1959_v62 = vpop.f32.mrf.mxu1  ;;  %9734 = vmatmul.mubr.f32.vlgmr.msra.gmra.mxu1 %v9493_v8  ;;  %v1722_v38 = vadd.f32 %v1721_v12, %v1640_v30  ;;  %9618 = vmatpush1.xpose.msra.mxu0 %v20960_v33  ;;  %v9949_v35 = vrot.slane %v9897_v32, 5  ;;  %v9907_v32 = vld [vmem:[%s19837_s26 + $0x78] sm:$0xf] }
 0x104   : > { %9850 = vmatpush1.xpose.msra.mxu1 %v20938_v17  ;;  %9653 = vmatprep.mubr.f32.mxu0 %v21003_v23  ;;  %v9942_v17 = vsel %vm9933_vm3, %v9940_v10, %v9941_v51  ;;  %v1723_v39 = vpop.f32.mrf.mxu0  ;;  %v10036_v1 = vand.u32 4294901760, %v10035_v0  ;;  %v10506_v51 = vand.u32 4294901760, %v21147_v43 }
 0x105   : > { %v1961_v8 = vpop.f32.mrf.mxu1  ;;  %9772 = vmatprep.subr.mxu0 %v9533_v21  ;;  %9884 = vmatprep.mubr.f32.mxu1 %v20976_v37  ;;  %v1804_v54 = vadd.f32 %v1803_v11, %v1722_v38  ;;  %v9905_v21 = vld [vmem:[%s19837_s26 + $0x68] sm:$0xf]  ;;  %v21138_v60 = vand.u32 4294901760, %v9942_v17  ;;  %v21160_v11 = vand.u32 4294901760, %v19719_v46 }
 0x106   : > { %10083 = vmatprep.subr.mxu1 %v10082_v16  ;;  %v1881_v6 = vpop.f32.mrf.mxu0  ;;  %9656 = vmatmul.mubr.f32.vlgmr.msra.gmra.mxu0 %v21024_v5  ;;  %v9896_v5 = vld [vmem:[%s19837_s26 + $0x20] sm:$0xe0]  ;;  %v9950_v25 = vrot.slane %v9905_v21, 5 }
 0x107   : > { %v2111_v23 = vpop.f32.mrf.mxu1  ;;  %9886 = vmatmul.mubr.f32.vlgmr.msra.gmra.mxu1 %v20994_v57  ;;  %v1882_v18 = vadd.f32 %v1881_v6, %v1804_v54  ;;  %9776 = vmatpush1.xpose.msra.mxu0 %v9539_v59  ;;  %v21168_v27 = vsub.f32 %v9942_v17, %v21138_v60  ;;  %v9946_v53 = vrot.slane %v9896_v5, 5  ;;  %v21183_v12 = vsub.f32 %v19719_v46, %v21160_v11  ;;  %v9898_v6 = vld [vmem:[%s19837_s26 + $0x30] sm:$0xe0]  ;;  %v9906_v46 = vld [vmem:[%s19837_s26 + $0x70] sm:$0xf] }
 0x108   : > { %10089 = vmatpush1.xpose.msra.mxu1 %v10088_v28  ;;  %9810 = vmatprep.mubr.f32.mxu0 %v20976_v37  ;;  %v1883_v49 = vpop.f32.mrf.mxu0  ;;  %v10553_v37 = vsub.f32 %v21104_v4, %v10552_v14  ;;  %v9951_v24 = vsel %vm9933_vm3, %v9949_v35, %v9950_v25  ;;  %v19721_v5 = vld [vmem:[%s22480_s1 + $0x170] sm:$0x7f] }
 0x109   : > { %v2113_v9 = vpop.f32.mrf.mxu1  ;;  %9997 = vmatprep.subr.mxu0 %v21012_v15  ;;  %10123 = vmatprep.mubr.f32.mxu1 %v21049_v20  ;;  %v1960_v33 = vadd.f32 %v1959_v62, %v1882_v18  ;;  %v10512_v38 = vand.u32 4294901760, %v21168_v27  ;;  %v9948_v8 = vsel %vm9933_vm3, %v9946_v53, %v9947_v22  ;;  %v21193_v17 = vand.u32 4294901760, %v9951_v24 }
 0x10a   : > { %10239 = vmatprep.subr.mxu1 %v21012_v15  ;;  %v2037_v63 = vpop.f32.mrf.mxu0  ;;  %9812 = vmatmul.mubr.f32.vlgmr.msra.gmra.mxu0 %v20994_v57  ;;  %v21176_v57 = vsub.f32 %v19720_v40, %v21153_v44  ;;  %v10554_v16 = vand.u32 4294901760, %v10553_v37  ;;  %v21201_v55 = vand.u32 4294901760, %v9948_v8  ;;  %v9899_v40 = vld [vmem:[%s19837_s26 + $0x38] sm:$0xe0]  ;;  %v21240_v53 = vand.u32 4294901760, %v19721_v5 }
 0x10b   : > { %v2275_v59 = vpop.f32.mrf.mxu1  ;;  %10125 = vmatmul.mubr.f32.vlgmr.msra.gmra.mxu1 %v21059_v34  ;;  %v2038_v50 = vadd.f32 %v2037_v63, %v1960_v33  ;;  %9999 = vmatpush1.xpose.msra.mxu0 %v21019_v41  ;;  %v9952_v33 = vrot.slane %v9898_v6, 5 }
 0x10c   : > { %10241 = vmatpush1.xpose.msra.mxu1 %v21019_v41  ;;  %10037 = vmatprep.mubr.f32.mxu0 %v10036_v1  ;;  %v2039_v52 = vpop.f32.mrf.mxu0  ;;  %v11024_v39 = vand.u32 4294901760, %v21176_v57 }
 0x10d   : > { %v2277_v10 = vpop.f32.mrf.mxu1  ;;  %10162 = vmatprep.subr.mxu0 %v21036_v31  ;;  %10277 = vmatprep.mubr.f32.mxu1 %v10034_v26  ;;  %v2112_v30 = vadd.f32 %v2111_v23, %v2038_v50  ;;  %v10560_v26 = vand.u32 4294901760, %v10559_v42  ;;  %v10513_v31 = vsub.f32 %v21168_v27, %v10512_v38  ;;  %v21238_v42 = vsub.f32 %v9948_v8, %v21201_v55 }
 0x10e   : > { %10395 = vmatprep.subr.mxu1 %v21012_v15  ;;  %v2193_v28 = vpop.f32.mrf.mxu0  ;;  %10043 = vmatmul.mubr.f32.vlgmr.msra.gmra.mxu0 %v10042_v48 }
 0x10f   : > { %v2431_v62 = vpop.f32.mrf.mxu1  ;;  %10281 = vmatmul.mubr.f32.vlgmr.msra.gmra.mxu1 %v10040_v45  ;;  %v2194_v0 = vadd.f32 %v2193_v28, %v2112_v30  ;;  %10165 = vmatpush1.xpose.msra.mxu0 %v21041_v36  ;;  %v10507_v45 = vsub.f32 %v21147_v43, %v10506_v51  ;;  %v11025_v36 = vsub.f32 %v21176_v57, %v11024_v39  ;;  %v10514_v37 = vand.u32 4294901760, %v10513_v31 }
 0x110   : > { %10397 = vmatpush1.xpose.msra.mxu1 %v21019_v41  ;;  %10200 = vmatprep.mubr.f32.mxu0 %v21072_v7  ;;  %v2195_v41 = vpop.f32.mrf.mxu0  ;;  %v11030_v7 = vand.u32 4294901760, %v21183_v12  ;;  %v10984_v8 = vand.u32 4294901760, %v21238_v42 }
 0x111   : > { %v2433_v15 = vpop.f32.mrf.mxu1  ;;  %10319 = vmatprep.subr.mxu0 %v10080_v61  ;;  %10431 = vmatprep.mubr.f32.mxu1 %v21049_v20  ;;  %v2276_v54 = vadd.f32 %v2275_v59, %v2194_v0  ;;  %v19722_v61 = vld [vmem:[%s22480_s1 + $0x178] sm:$0x7f]  ;;  %v10508_v1 = vand.u32 4294901760, %v10507_v45  ;;  %v9953_v59 = vrot.slane %v9906_v46, 5  ;;  %v21258_v0 = vsub.f32 %v19721_v5, %v21240_v53  ;;  %v11856_v41 = vld [vmem:[%s19837_s26 + $0x8] sm:$0xc0] }
 0x112   : > { %10555 = vmatprep.subr.mxu1 %v10554_v16  ;;  %v2353_v21 = vpop.f32.mrf.mxu0  ;;  %10203 = vmatmul.mubr.f32.vlgmr.msra.gmra.mxu0 %v21089_v13  ;;  %v21218_v13 = vsub.f32 %v9951_v24, %v21193_v17  ;;  %v21230_v25 = vand.u32 4294901760, %v19722_v61  ;;  %v11031_v63 = vsub.f32 %v21183_v12, %v11030_v7 }
 0x113   : > { %v2583_v23 = vpop.f32.mrf.mxu1  ;;  %10433 = vmatmul.mubr.f32.vlgmr.msra.gmra.mxu1 %v21059_v34  ;;  %v2354_v18 = vadd.f32 %v2353_v21, %v2276_v54  ;;  %10323 = vmatpush1.xpose.msra.mxu0 %v10086_v19  ;;  %v9955_v19 = vrot.slane %v9899_v40, 5  ;;  %v9954_v28 = vsel %vm9933_vm3, %v9952_v33, %v9953_v59  ;;  %v19724_v21 = vld [vmem:[%s22480_s1 + $0x188] sm:$0x7f] }
 0x114   : > { %10561 = vmatpush1.xpose.msra.mxu1 %v10560_v26  ;;  %10357 = vmatprep.mubr.f32.mxu0 %v21049_v20  ;;  %v2355_v58 = vpop.f32.mrf.mxu0  ;;  %v9956_v20 = vrot.slane %v9907_v32, 5  ;;  %v10978_v10 = vand.u32 4294901760, %v21218_v13  ;;  %v21252_v16 = vsub.f32 %v19722_v61, %v21230_v25  ;;  %v11900_v61 = vrot.slane %v11856_v41, 6 }
 0x115   : > { %v2585_v9 = vpop.f32.mrf.mxu1  ;;  %10469 = vmatprep.subr.mxu0 %v21074_v47  ;;  %10595 = vmatprep.mubr.f32.mxu1 %v21120_v56  ;;  %v2432_v49 = vadd.f32 %v2431_v62, %v2354_v18  ;;  %v11026_v62 = vand.u32 4294901760, %v11025_v36  ;;  %v11863_v58 = vld [vmem:[%s19837_s26 + $0x40] sm:$0x1f] }
 0x116   : > { %10711 = vmatprep.subr.mxu1 %v21074_v47  ;;  %v2509_v48 = vpop.f32.mrf.mxu0  ;;  %10359 = vmatmul.mubr.f32.vlgmr.msra.gmra.mxu0 %v21059_v34  ;;  %v9957_v52 = vsel %vm9933_vm3, %v9955_v19, %v9956_v20  ;;  %v10979_v15 = vsub.f32 %v21218_v13, %v10978_v10 }
 0x117   : > { %v2747_v35 = vpop.f32.mrf.mxu1  ;;  %10597 = vmatmul.mubr.f32.vlgmr.msra.gmra.mxu1 %v21138_v60  ;;  %v2510_v22 = vadd.f32 %v2509_v48, %v2432_v49  ;;  %10471 = vmatpush1.xpose.msra.mxu0 %v21096_v2  ;;  %v21265_v45 = vand.u32 4294901760, %v9957_v52 }
 0x118   : > { %10713 = vmatpush1.xpose.msra.mxu1 %v21096_v2  ;;  %10509 = vmatprep.mubr.f32.mxu0 %v10508_v1  ;;  %v2511_v34 = vpop.f32.mrf.mxu0  ;;  %v10980_v9 = vand.u32 4294901760, %v10979_v15  ;;  %v19723_v1 = vld [vmem:[%s22480_s1 + $0x180] sm:$0x7f] }
 0x119   : > { %v2749_v50 = vpop.f32.mrf.mxu1  ;;  %10634 = vmatprep.subr.mxu0 %v21104_v4  ;;  %10749 = vmatprep.mubr.f32.mxu1 %v10506_v51  ;;  %v2584_v24 = vadd.f32 %v2583_v23, %v2510_v22  ;;  %v11032_v51 = vand.u32 4294901760, %v11031_v63  ;;  %v21272_v23 = vand.u32 4294901760, %v9954_v28  ;;  %v10985_v4 = vsub.f32 %v21238_v42, %v10984_v8 }
 0x11a   : > { %10867 = vmatprep.subr.mxu1 %v21074_v47  ;;  %v2665_v26 = vpop.f32.mrf.mxu0  ;;  %10515 = vmatmul.mubr.f32.vlgmr.msra.gmra.mxu0 %v10514_v37  ;;  %v21312_v59 = vand.u32 4294901760, %v19723_v1 }
 0x11b   : > { %v2903_v30 = vpop.f32.mrf.mxu1  ;;  %10753 = vmatmul.mubr.f32.vlgmr.msra.gmra.mxu1 %v10512_v38  ;;  %v2666_v38 = vadd.f32 %v2665_v26, %v2584_v24  ;;  %10637 = vmatpush1.xpose.msra.mxu0 %v21113_v3  ;;  %v21296_v3 = vsub.f32 %v9954_v28, %v21272_v23 }
 0x11c   : > { %10869 = vmatpush1.xpose.msra.mxu1 %v21096_v2  ;;  %10672 = vmatprep.mubr.f32.mxu0 %v21147_v43  ;;  %v11864_v2 = vld [vmem:[%s19837_s26 + $0x48] sm:$0x1f]  ;;  %v2667_v54 = vpop.f32.mrf.mxu0  ;;  %v11496_v43 = vand.u32 4294901760, %v21252_v16 }
 0x11d   : > { %v2905_v47 = vpop.f32.mrf.mxu1  ;;  %10791 = vmatprep.subr.mxu0 %v10552_v14  ;;  %10903 = vmatprep.mubr.f32.mxu1 %v21120_v56  ;;  %v2748_v40 = vadd.f32 %v2747_v35, %v2666_v38  ;;  %v11502_v14 = vand.u32 4294901760, %v21258_v0  ;;  %v11901_v6 = vrot.slane %v11864_v2, 6  ;;  %v10986_v35 = vand.u32 4294901760, %v10985_v4 }
 0x11e   : > { %11027 = vmatprep.subr.mxu1 %v11026_v62  ;;  %v2825_v31 = vpop.f32.mrf.mxu0  ;;  %10675 = vmatmul.mubr.f32.vlgmr.msra.gmra.mxu0 %v21168_v27  ;;  %v21288_v27 = vsub.f32 %v9957_v52, %v21265_v45  ;;  %v11497_v20 = vsub.f32 %v21252_v16, %v11496_v43  ;;  %v11456_v52 = vand.u32 4294901760, %v21296_v3  ;;  %v21331_v38 = vsub.f32 %v19723_v1, %v21312_v59  ;;  %v11865_v1 = vld [vmem:[%s19837_s26 + $0x50] sm:$0x1f] }
 0x11f   : > { %v3055_v32 = vpop.f32.mrf.mxu1  ;;  %10905 = vmatmul.mubr.f32.vlgmr.msra.gmra.mxu1 %v21138_v60  ;;  %v2826_v46 = vadd.f32 %v2825_v31, %v2748_v40  ;;  %10795 = vmatpush1.xpose.msra.mxu0 %v10558_v29  ;;  %v21298_v29 = vand.u32 4294901760, %v19724_v21  ;;  %v11503_v33 = vsub.f32 %v21258_v0, %v11502_v14  ;;  %v11902_v48 = vsel %vm11896_vm4, %v11900_v61, %v11901_v6  ;;  %v19725_v61 = vld [vmem:[%s22480_s1 + $0x190] sm:$0x7f] }
 0x120   : > { %11033 = vmatpush1.xpose.msra.mxu1 %v11032_v51  ;;  %10829 = vmatprep.mubr.f32.mxu0 %v21120_v56  ;;  %v2827_v5 = vpop.f32.mrf.mxu0  ;;  %v11855_v56 = vld [vmem:[%s19837_s26] sm:$0xc0]  ;;  %v11450_v22 = vand.u32 4294901760, %v21288_v27  ;;  %v11498_v28 = vand.u32 4294901760, %v11497_v20  ;;  %v21327_v26 = vand.u32 4294901760, %v11902_v48  ;;  %v12049_v31 = vand.u32 4294901760, %v21331_v38 }
 0x121   : > { %v3057_v18 = vpop.f32.mrf.mxu1  ;;  %10941 = vmatprep.subr.mxu0 %v21153_v44  ;;  %11067 = vmatprep.mubr.f32.mxu1 %v21193_v17  ;;  %v2904_v36 = vadd.f32 %v2903_v30, %v2826_v46  ;;  %v11897_v50 = vrot.slane %v11855_v56, 6  ;;  %v21322_v24 = vsub.f32 %v19724_v21, %v21298_v29 }
 0x122   : > { %11183 = vmatprep.subr.mxu1 %v21153_v44  ;;  %v2981_v49 = vpop.f32.mrf.mxu0  ;;  %10831 = vmatmul.mubr.f32.vlgmr.msra.gmra.mxu0 %v21138_v60  ;;  %v11898_v60 = vrot.slane %v11863_v58, 6  ;;  %v21348_v40 = vsub.f32 %v11902_v48, %v21327_v26 }
 0x123   : > { %v3219_v19 = vpop.f32.mrf.mxu1  ;;  %11069 = vmatmul.mubr.f32.vlgmr.msra.gmra.mxu1 %v21201_v55  ;;  %v2982_v37 = vadd.f32 %v2981_v49, %v2904_v36  ;;  %10943 = vmatpush1.xpose.msra.mxu0 %v21160_v11 }
 0x124   : > { %11185 = vmatpush1.xpose.msra.mxu1 %v21160_v11  ;;  %10981 = vmatprep.mubr.f32.mxu0 %v10980_v9  ;;  %v2983_v34 = vpop.f32.mrf.mxu0  ;;  %v11899_v15 = vsel %vm11896_vm4, %v11897_v50, %v11898_v60  ;;  %v11857_v9 = vld [vmem:[%s19837_s26 + $0x10] sm:$0xc0] }
 0x125   : > { %v3221_v63 = vpop.f32.mrf.mxu1  ;;  %11106 = vmatprep.subr.mxu0 %v21176_v57  ;;  %11221 = vmatprep.mubr.f32.mxu1 %v10978_v10  ;;  %v3056_v30 = vadd.f32 %v3055_v32, %v2982_v37  ;;  %v11504_v10 = vand.u32 4294901760, %v11503_v33  ;;  %v19726_v57 = vld [vmem:[%s22480_s1 + $0x198] sm:$0x7f]  ;;  %v21357_v4 = vand.u32 4294901760, %v11899_v15  ;;  %v11903_v48 = vrot.slane %v11857_v9, 6 }
 0x126   : > { %11339 = vmatprep.subr.mxu1 %v21153_v44  ;;  %v3137_v51 = vpop.f32.mrf.mxu0  ;;  %10987 = vmatmul.mubr.f32.vlgmr.msra.gmra.mxu0 %v10986_v35  ;;  %v11451_v44 = vsub.f32 %v21288_v27, %v11450_v22  ;;  %v11866_v32 = vld [vmem:[%s19837_s26 + $0x58] sm:$0x1f]  ;;  %v21369_v56 = vand.u32 4294901760, %v19726_v57  ;;  %v12050_v35 = vsub.f32 %v21331_v38, %v12049_v31  ;;  %v11904_v37 = vrot.slane %v11865_v1, 6  ;;  %v19727_v9 = vld [vmem:[%s22480_s1 + $0x1a0] sm:$0x7f] }
 0x127   : > { %v3375_v62 = vpop.f32.mrf.mxu1  ;;  %11225 = vmatmul.mubr.f32.vlgmr.msra.gmra.mxu1 %v10984_v8  ;;  %v3138_v47 = vadd.f32 %v3137_v51, %v3056_v30  ;;  %11109 = vmatpush1.xpose.msra.mxu0 %v21183_v12  ;;  %v11907_v36 = vrot.slane %v11866_v32, 6  ;;  %v21385_v33 = vsub.f32 %v11899_v15, %v21357_v4 }
 0x128   : > { %11341 = vmatpush1.xpose.msra.mxu1 %v21160_v11  ;;  %11144 = vmatprep.mubr.f32.mxu0 %v21218_v13  ;;  %v3139_v41 = vpop.f32.mrf.mxu0  ;;  %v11457_v11 = vsub.f32 %v21296_v3, %v11456_v52  ;;  %v12043_v13 = vand.u32 4294901760, %v21322_v24  ;;  %v11452_v18 = vand.u32 4294901760, %v11451_v44 }
 0x129   : > { %v3377_v8 = vpop.f32.mrf.mxu1  ;;  %11263 = vmatprep.subr.mxu0 %v11024_v39  ;;  %11375 = vmatprep.mubr.f32.mxu1 %v21193_v17  ;;  %v3220_v2 = vadd.f32 %v3219_v19, %v3138_v47  ;;  %v11858_v39 = vld [vmem:[%s19837_s26 + $0x18] sm:$0xc0]  ;;  %v12051_v47 = vand.u32 4294901760, %v12050_v35 }
 0x12a   : > { %11499 = vmatprep.subr.mxu1 %v11498_v28  ;;  %v3297_v21 = vpop.f32.mrf.mxu0  ;;  %11147 = vmatmul.mubr.f32.vlgmr.msra.gmra.mxu0 %v21238_v42  ;;  %v11458_v5 = vand.u32 4294901760, %v11457_v11  ;;  %v11906_v58 = vrot.slane %v11858_v39, 6  ;;  %v12044_v12 = vsub.f32 %v21322_v24, %v12043_v13  ;;  %v12003_v8 = vand.u32 4294901760, %v21385_v33  ;;  %v11860_v11 = vld [vmem:[%s19837_s26 + $0x28] sm:$0xc0] }
 0x12b   : > { %v3527_v54 = vpop.f32.mrf.mxu1  ;;  %11377 = vmatmul.mubr.f32.vlgmr.msra.gmra.mxu1 %v21201_v55  ;;  %v3298_v6 = vadd.f32 %v3297_v21, %v3220_v2  ;;  %11267 = vmatpush1.xpose.msra.mxu0 %v11030_v7  ;;  %v21377_v7 = vand.u32 4294901760, %v19725_v61  ;;  %v11868_v2 = vld [vmem:[%s19837_s26 + $0x68] sm:$0x1f]  ;;  %v11912_v1 = vrot.slane %v11860_v11, 6 }
 0x12c   : > { %11505 = vmatpush1.xpose.msra.mxu1 %v11504_v10  ;;  %11301 = vmatprep.mubr.f32.mxu0 %v21193_v17  ;;  %v3299_v42 = vpop.f32.mrf.mxu0  ;;  %v11997_v17 = vand.u32 4294901760, %v21348_v40  ;;  %v11908_v34 = vsel %vm11896_vm4, %v11906_v58, %v11907_v36  ;;  %v12045_v28 = vand.u32 4294901760, %v12044_v12  ;;  %v19728_v21 = vld [vmem:[%s22480_s1 + $0x1a8] sm:$0x7f] }
 0x12d   : > { %v3529_v46 = vpop.f32.mrf.mxu1  ;;  %11413 = vmatprep.subr.mxu0 %v21230_v25  ;;  %11539 = vmatprep.mubr.f32.mxu1 %v21265_v45  ;;  %v3376_v19 = vadd.f32 %v3375_v62, %v3298_v6  ;;  %v21402_v10 = vsub.f32 %v19725_v61, %v21377_v7  ;;  %v21409_v15 = vand.u32 4294901760, %v11908_v34  ;;  %v11859_v61 = vld [vmem:[%s19837_s26 + $0x20] sm:$0xc0]  ;;  %v11867_v6 = vld [vmem:[%s19837_s26 + $0x60] sm:$0x1f]  ;;  %v11913_v42 = vrot.slane %v11868_v2, 6 }
 0x12e   : > { %11655 = vmatprep.subr.mxu1 %v21230_v25  ;;  %v3453_v49 = vpop.f32.mrf.mxu0  ;;  %11303 = vmatmul.mubr.f32.vlgmr.msra.gmra.mxu0 %v21201_v55  ;;  %v21392_v55 = vsub.f32 %v19726_v57, %v21369_v56  ;;  %v11998_v51 = vsub.f32 %v21348_v40, %v11997_v17  ;;  %v21446_v58 = vand.u32 4294901760, %v19728_v21  ;;  %v11909_v36 = vrot.slane %v11859_v61, 6 }
 0x12f   : > { %v3691_v20 = vpop.f32.mrf.mxu1  ;;  %11541 = vmatmul.mubr.f32.vlgmr.msra.gmra.mxu1 %v21272_v23  ;;  %v3454_v63 = vadd.f32 %v3453_v49, %v3376_v19  ;;  %11415 = vmatpush1.xpose.msra.mxu0 %v21240_v53  ;;  %v12521_v39 = vand.u32 4294901760, %v21402_v10  ;;  %v11910_v19 = vrot.slane %v11867_v6, 6 }
 0x130   : > { %11657 = vmatpush1.xpose.msra.mxu1 %v21240_v53  ;;  %11453 = vmatprep.mubr.f32.mxu0 %v11452_v18  ;;  %v3455_v60 = vpop.f32.mrf.mxu0 }
 0x131   : > { %v3693_v50 = vpop.f32.mrf.mxu1  ;;  %11578 = vmatprep.subr.mxu0 %v21252_v16  ;;  %11693 = vmatprep.mubr.f32.mxu1 %v11450_v22  ;;  %v3528_v30 = vadd.f32 %v3527_v54, %v3454_v63  ;;  %v12522_v49 = vsub.f32 %v21402_v10, %v12521_v39 }
 0x132   : > { %11811 = vmatprep.subr.mxu1 %v21230_v25  ;;  %v3609_v22 = vpop.f32.mrf.mxu0  ;;  %11459 = vmatmul.mubr.f32.vlgmr.msra.gmra.mxu0 %v11458_v5 }
 0x133   : > { %v3847_v62 = vpop.f32.mrf.mxu1  ;;  %11697 = vmatmul.mubr.f32.vlgmr.msra.gmra.mxu1 %v11456_v52  ;;  %v11905_v52 = vsel %vm11896_vm4, %v11903_v48, %v11904_v37  ;;  %v3610_v25 = vadd.f32 %v3609_v22, %v3528_v30  ;;  %11581 = vmatpush1.xpose.msra.mxu0 %v21258_v0  ;;  %v21456_v48 = vand.u32 4294901760, %v19727_v9 }
 0x134   : > { %11813 = vmatpush1.xpose.msra.mxu1 %v21240_v53  ;;  %11616 = vmatprep.mubr.f32.mxu0 %v21288_v27  ;;  %v3611_v41 = vpop.f32.mrf.mxu0  ;;  %v12515_v53 = vand.u32 4294901760, %v21392_v55  ;;  %v11999_v27 = vand.u32 4294901760, %v11998_v51  ;;  %v21419_v32 = vand.u32 4294901760, %v11905_v52  ;;  %v11911_v51 = vsel %vm11896_vm4, %v11909_v36, %v11910_v19 }
 0x135   : > { %v3849_v44 = vpop.f32.mrf.mxu1  ;;  %11735 = vmatprep.subr.mxu0 %v11496_v43  ;;  %11847 = vmatprep.mubr.f32.mxu1 %v21265_v45  ;;  %v3692_v54 = vadd.f32 %v3691_v20, %v3610_v25  ;;  %v12004_v43 = vsub.f32 %v21385_v33, %v12003_v8  ;;  %v21488_v41 = vand.u32 4294901760, %v11911_v51 }
 0x136   : > { %12046 = vmatprep.subr.mxu1 %v12045_v28  ;;  %v3769_v16 = vpop.f32.mrf.mxu0  ;;  %11619 = vmatmul.mubr.f32.vlgmr.msra.gmra.mxu0 %v21296_v3  ;;  %v21434_v3 = vsub.f32 %v11908_v34, %v21409_v15  ;;  %v12516_v0 = vsub.f32 %v21392_v55, %v12515_v53  ;;  %v21454_v35 = vsub.f32 %v11905_v52, %v21419_v32 }
 0x137   : > { %v3999_v57 = vpop.f32.mrf.mxu1  ;;  %11849 = vmatmul.mubr.f32.vlgmr.msra.gmra.mxu1 %v21272_v23  ;;  %v3770_v46 = vadd.f32 %v3769_v16, %v3692_v54  ;;  %11739 = vmatpush1.xpose.msra.mxu0 %v11502_v14  ;;  %v12005_v12 = vand.u32 4294901760, %v12004_v43  ;;  %v21470_v28 = vsub.f32 %v19728_v21, %v21446_v58  ;;  %v21476_v52 = vsub.f32 %v19727_v9, %v21456_v48  ;;  %v11870_v54 = vld [vmem:[%s19837_s26 + $0x78] sm:$0x1f] }
 0x138   : > { %12052 = vmatpush1.xpose.msra.mxu1 %v12051_v47  ;;  %11773 = vmatprep.mubr.f32.mxu0 %v21265_v45  ;;  %v3771_v5 = vpop.f32.mrf.mxu0  ;;  %v12469_v50 = vand.u32 4294901760, %v21434_v3  ;;  %v12523_v47 = vand.u32 4294901760, %v12522_v49  ;;  %v19730_v16 = vld [vmem:[%s22480_s1 + $0x1b8] sm:$0x7f]  ;;  %v11919_v9 = vrot.slane %v11870_v54, 6 }
 0x139   : > { %v4001_v18 = vpop.f32.mrf.mxu1  ;;  %11960 = vmatprep.subr.mxu0 %v21298_v29  ;;  %12086 = vmatprep.mubr.f32.mxu1 %v21327_v26  ;;  %v3848_v45 = vadd.f32 %v3847_v62, %v3770_v46  ;;  %v12517_v62 = vand.u32 4294901760, %v12516_v0  ;;  %v12987_v2 = vand.u32 4294901760, %v21470_v28  ;;  %v21514_v46 = vsub.f32 %v11911_v51, %v21488_v41 }
 0x13a   : > { %12202 = vmatprep.subr.mxu1 %v21298_v29  ;;  %v3925_v20 = vpop.f32.mrf.mxu0  ;;  %11775 = vmatmul.mubr.f32.vlgmr.msra.gmra.mxu0 %v21272_v23  ;;  %v11914_v23 = vsel %vm11896_vm4, %v11912_v1, %v11913_v42  ;;  %v11861_v1 = vld [vmem:[%s19837_s26 + $0x30] sm:$0xc0]  ;;  %v11869_v42 = vld [vmem:[%s19837_s26 + $0x70] sm:$0x1f] }
 0x13b   : > { %v4237_v14 = vpop.f32.mrf.mxu1  ;;  %12088 = vmatmul.mubr.f32.vlgmr.msra.gmra.mxu1 %v21357_v4  ;;  %v3926_v37 = vadd.f32 %v3925_v20, %v3848_v45  ;;  %11962 = vmatpush1.xpose.msra.mxu0 %v21312_v59  ;;  %v11915_v49 = vrot.slane %v11861_v1, 6  ;;  %v13826_v1 = vld [vmem:[%s19837_s26 + $0x40] sm:$0x3f] }
 0x13c   : > { %12204 = vmatpush1.xpose.msra.mxu1 %v21312_v59  ;;  %12000 = vmatprep.mubr.f32.mxu0 %v11999_v27  ;;  %v3927_v60 = vpop.f32.mrf.mxu0 }
 0x13d   : > { %v4239_v63 = vpop.f32.mrf.mxu1  ;;  %12125 = vmatprep.subr.mxu0 %v21322_v24  ;;  %12240 = vmatprep.mubr.f32.mxu1 %v11997_v17  ;;  %v21464_v34 = vadd.f32 %v3999_v57, %v3926_v37  ;;  %v12475_v17 = vand.u32 4294901760, %v21454_v35  ;;  %v11916_v37 = vrot.slane %v11869_v42, 6 }
 0x13e   : > { %12358 = vmatprep.subr.mxu1 %v21298_v29  ;;  %v4155_v22 = vpop.f32.mrf.mxu0  ;;  %12006 = vmatmul.mubr.f32.vlgmr.msra.gmra.mxu0 %v12005_v12 }
 0x13f   : > { %v4393_v30 = vpop.f32.mrf.mxu1  ;;  %12244 = vmatmul.mubr.f32.vlgmr.msra.gmra.mxu1 %v12003_v8  ;;  %v21478_v8 = vand.u32 4294901760, %v11914_v23  ;;  %v4238_v29 = vadd.f32 %v4237_v14, %v4155_v22  ;;  %12128 = vmatpush1.xpose.msra.mxu0 %v21331_v38  ;;  %v12476_v24 = vsub.f32 %v21454_v35, %v12475_v17  ;;  %v21523_v38 = vand.u32 4294901760, %v19730_v16 }
 0x140   : > { %12360 = vmatpush1.xpose.msra.mxu1 %v21312_v59  ;;  %12163 = vmatprep.mubr.f32.mxu0 %v21348_v40  ;;  %v12470_v59 = vsub.f32 %v21434_v3, %v12469_v50  ;;  %v4157_v44 = vpop.f32.mrf.mxu0  ;;  %v11862_v40 = vld [vmem:[%s19837_s26 + $0x38] sm:$0xc0] }
 0x141   : > { %v4395_v25 = vpop.f32.mrf.mxu1  ;;  %12282 = vmatprep.subr.mxu0 %v12043_v13  ;;  %12394 = vmatprep.mubr.f32.mxu1 %v21327_v26  ;;  %v12993_v13 = vand.u32 4294901760, %v21476_v52  ;;  %v21500_v27 = vsub.f32 %v11914_v23, %v21478_v8  ;;  %v11918_v18 = vrot.slane %v11862_v40, 6  ;;  %v12477_v14 = vand.u32 4294901760, %v12476_v24  ;;  %v13827_v40 = vld [vmem:[%s19837_s26 + $0x48] sm:$0x3f] }
 0x142   : > { %12518 = vmatprep.subr.mxu1 %v12517_v62  ;;  %v4315_v57 = vpop.f32.mrf.mxu0  ;;  %12166 = vmatmul.mubr.f32.vlgmr.msra.gmra.mxu0 %v21385_v33  ;;  %v19729_v33 = vld [vmem:[%s22480_s1 + $0x1b0] sm:$0x7f]  ;;  %v12471_v61 = vand.u32 4294901760, %v12470_v59  ;;  %v21546_v22 = vsub.f32 %v19730_v16, %v21523_v38  ;;  %v11917_v59 = vsel %vm11896_vm4, %v11915_v49, %v11916_v37 }
 0x143   : > { %v4545_v11 = vpop.f32.mrf.mxu1  ;;  %12396 = vmatmul.mubr.f32.vlgmr.msra.gmra.mxu1 %v21357_v4  ;;  %v4316_v43 = vadd.f32 %v4315_v57, %v4238_v29  ;;  %12286 = vmatpush1.xpose.msra.mxu0 %v12049_v31  ;;  %v21525_v31 = vand.u32 4294901760, %v19729_v33  ;;  %v12994_v36 = vsub.f32 %v21476_v52, %v12993_v13  ;;  %v12941_v19 = vand.u32 4294901760, %v21500_v27 }
 0x144   : > { %12524 = vmatpush1.xpose.msra.mxu1 %v12523_v47  ;;  %12320 = vmatprep.mubr.f32.mxu0 %v21327_v26  ;;  %v4317_v6 = vpop.f32.mrf.mxu0  ;;  %v12988_v26 = vsub.f32 %v21470_v28, %v12987_v2  ;;  %v11920_v23 = vsel %vm11896_vm4, %v11918_v18, %v11919_v9  ;;  %v21569_v16 = vand.u32 4294901760, %v11917_v59  ;;  %v13864_v18 = vrot.slane %v13827_v40, 7  ;;  %v13818_v9 = vld [vmem:[%s19837_s26] sm:$0x80] }
 0x145   : > { %v4547_v21 = vpop.f32.mrf.mxu1  ;;  %12432 = vmatprep.subr.mxu0 %v21369_v56  ;;  %12558 = vmatprep.mubr.f32.mxu1 %v21409_v15  ;;  %v4394_v5 = vadd.f32 %v4393_v30, %v4316_v43  ;;  %v21543_v51 = vsub.f32 %v19729_v33, %v21525_v31  ;;  %v12995_v47 = vand.u32 4294901760, %v12994_v36  ;;  %v21554_v25 = vand.u32 4294901760, %v11920_v23  ;;  %v19732_v33 = vld [vmem:[%s22480_s1 + $0x1c8] sm:$0x7f]  ;;  %v19731_v43 = vld [vmem:[%s22480_s1 + $0x1c0] sm:$0x7f] }
 0x146   : > { %12674 = vmatprep.subr.mxu1 %v21369_v56  ;;  %v4471_v45 = vpop.f32.mrf.mxu0  ;;  %12322 = vmatmul.mubr.f32.vlgmr.msra.gmra.mxu0 %v21357_v4  ;;  %v12947_v4 = vand.u32 4294901760, %v21514_v46  ;;  %v12989_v62 = vand.u32 4294901760, %v12988_v26  ;;  %v21595_v26 = vand.u32 4294901760, %v19732_v33  ;;  %v21602_v36 = vand.u32 4294901760, %v19731_v43 }
 0x147   : > { %v4709_v0 = vpop.f32.mrf.mxu1  ;;  %12560 = vmatmul.mubr.f32.vlgmr.msra.gmra.mxu1 %v21419_v32  ;;  %v4472_v20 = vadd.f32 %v4471_v45, %v4394_v5  ;;  %12434 = vmatpush1.xpose.msra.mxu0 %v21377_v7  ;;  %v13465_v24 = vand.u32 4294901760, %v21543_v51 }
 0x148   : > { %12676 = vmatpush1.xpose.msra.mxu1 %v21377_v7  ;;  %12472 = vmatprep.mubr.f32.mxu0 %v12471_v61  ;;  %v4473_v63 = vpop.f32.mrf.mxu0 }
 0x149   : > { %v4711_v12 = vpop.f32.mrf.mxu1  ;;  %12597 = vmatprep.subr.mxu0 %v21392_v55  ;;  %12712 = vmatprep.mubr.f32.mxu1 %v12469_v50  ;;  %v4546_v60 = vadd.f32 %v4545_v11, %v4472_v20  ;;  %v13819_v11 = vld [vmem:[%s19837_s26 + $0x8] sm:$0x80]  ;;  %v13860_v20 = vrot.slane %v13818_v9, 7 }
 0x14a   : > { %12830 = vmatprep.subr.mxu1 %v21369_v56  ;;  %v4627_v50 = vpop.f32.mrf.mxu0  ;;  %12478 = vmatmul.mubr.f32.vlgmr.msra.gmra.mxu0 %v12477_v14  ;;  %v13863_v6 = vrot.slane %v13819_v11, 7  ;;  %v21600_v14 = vsub.f32 %v11917_v59, %v21569_v16  ;;  %v13861_v12 = vrot.slane %v13826_v1, 7  ;;  %v13829_v11 = vld [vmem:[%s19837_s26 + $0x58] sm:$0x3f]  ;;  %v13820_v1 = vld [vmem:[%s19837_s26 + $0x10] sm:$0x80] }
 0x14b   : > { %v4865_v30 = vpop.f32.mrf.mxu1  ;;  %12716 = vmatmul.mubr.f32.vlgmr.msra.gmra.mxu1 %v12475_v17  ;;  %v12942_v17 = vsub.f32 %v21500_v27, %v12941_v19  ;;  %v4628_v29 = vadd.f32 %v4627_v50, %v4546_v60  ;;  %12600 = vmatpush1.xpose.msra.mxu0 %v21402_v10 }
 0x14c   : > { %12832 = vmatpush1.xpose.msra.mxu1 %v21377_v7  ;;  %12635 = vmatprep.mubr.f32.mxu0 %v21434_v3  ;;  %v4629_v44 = vpop.f32.mrf.mxu0  ;;  %v12948_v7 = vsub.f32 %v21514_v46, %v12947_v4  ;;  %v13459_v3 = vand.u32 4294901760, %v21546_v22 }
 0x14d   : > { %v4867_v56 = vpop.f32.mrf.mxu1  ;;  %12754 = vmatprep.subr.mxu0 %v12515_v53  ;;  %12866 = vmatprep.mubr.f32.mxu1 %v21409_v15  ;;  %v4710_v54 = vadd.f32 %v4709_v0, %v4628_v29  ;;  %v12943_v53 = vand.u32 4294901760, %v12942_v17  ;;  %v21619_v29 = vsub.f32 %v19731_v43, %v21602_v36 }
 0x14e   : > { %12990 = vmatprep.subr.mxu1 %v12989_v62  ;;  %v4787_v55 = vpop.f32.mrf.mxu0  ;;  %12638 = vmatmul.mubr.f32.vlgmr.msra.gmra.mxu0 %v21454_v35  ;;  %v21581_v35 = vsub.f32 %v11920_v23, %v21554_v25  ;;  %v12949_v5 = vand.u32 4294901760, %v12948_v7  ;;  %v13865_v23 = vsel %vm13859_vm5, %v13863_v6, %v13864_v18  ;;  %v13821_v7 = vld [vmem:[%s19837_s26 + $0x18] sm:$0x80]  ;;  %v13870_v18 = vrot.slane %v13829_v11, 7 }
 0x14f   : > { %v5017_v57 = vpop.f32.mrf.mxu1  ;;  %12868 = vmatmul.mubr.f32.vlgmr.msra.gmra.mxu1 %v21419_v32  ;;  %v4788_v21 = vadd.f32 %v4787_v55, %v4710_v54  ;;  %12758 = vmatpush1.xpose.msra.mxu0 %v12521_v39  ;;  %v13466_v39 = vsub.f32 %v21543_v51, %v13465_v24  ;;  %v21621_v56 = vand.u32 4294901760, %v13865_v23  ;;  %v13869_v6 = vrot.slane %v13821_v7, 7 }
 0x150   : > { %12996 = vmatpush1.xpose.msra.mxu1 %v12995_v47  ;;  %12792 = vmatprep.mubr.f32.mxu0 %v21409_v15  ;;  %v4789_v42 = vpop.f32.mrf.mxu0  ;;  %v13460_v15 = vsub.f32 %v21546_v22, %v13459_v3  ;;  %v13413_v63 = vand.u32 4294901760, %v21581_v35  ;;  %v21614_v47 = vsub.f32 %v19732_v33, %v21595_v26  ;;  %v19734_v33 = vld [vmem:[%s22480_s1 + $0x1d8] sm:$0x7f] }
 0x151   : > { %v5019_v61 = vpop.f32.mrf.mxu1  ;;  %12904 = vmatprep.subr.mxu0 %v21446_v58  ;;  %13030 = vmatprep.mubr.f32.mxu1 %v21478_v8  ;;  %v4866_v0 = vadd.f32 %v4865_v30, %v4788_v21  ;;  %v13467_v50 = vand.u32 4294901760, %v13466_v39  ;;  %v13828_v42 = vld [vmem:[%s19837_s26 + $0x50] sm:$0x3f] }
 0x152   : > { %13146 = vmatprep.subr.mxu1 %v21446_v58  ;;  %v4943_v45 = vpop.f32.mrf.mxu0  ;;  %12794 = vmatmul.mubr.f32.vlgmr.msra.gmra.mxu0 %v21419_v32  ;;  %v13461_v62 = vand.u32 4294901760, %v13460_v15  ;;  %v13414_v44 = vsub.f32 %v21581_v35, %v13413_v63  ;;  %v19733_v61 = vld [vmem:[%s22480_s1 + $0x1d0] sm:$0x7f] }
 0x153   : > { %v5181_v10 = vpop.f32.mrf.mxu1  ;;  %13032 = vmatmul.mubr.f32.vlgmr.msra.gmra.mxu1 %v21488_v41  ;;  %v4944_v49 = vadd.f32 %v4943_v45, %v4866_v0  ;;  %12906 = vmatpush1.xpose.msra.mxu0 %v21456_v48  ;;  %v21667_v0 = vand.u32 4294901760, %v19734_v33 }
 0x154   : > { %13148 = vmatpush1.xpose.msra.mxu1 %v21456_v48  ;;  %12944 = vmatprep.mubr.f32.mxu0 %v12943_v53  ;;  %v4945_v60 = vpop.f32.mrf.mxu0  ;;  %v21644_v53 = vsub.f32 %v13865_v23, %v21621_v56  ;;  %v13415_v21 = vand.u32 4294901760, %v13414_v44  ;;  %v13866_v23 = vrot.slane %v13820_v1, 7  ;;  %v13822_v1 = vld [vmem:[%s19837_s26 + $0x20] sm:$0x80] }
 0x155   : > { %v5183_v37 = vpop.f32.mrf.mxu1  ;;  %13069 = vmatprep.subr.mxu0 %v21470_v28  ;;  %13184 = vmatprep.mubr.f32.mxu1 %v12941_v19  ;;  %v5018_v32 = vadd.f32 %v5017_v57, %v4944_v49  ;;  %v13419_v19 = vand.u32 4294901760, %v21600_v14 }
 0x156   : > { %13302 = vmatprep.subr.mxu1 %v21446_v58  ;;  %v5099_v17 = vpop.f32.mrf.mxu0  ;;  %12950 = vmatmul.mubr.f32.vlgmr.msra.gmra.mxu0 %v12949_v5  ;;  %v13862_v58 = vsel %vm13859_vm5, %v13860_v20, %v13861_v12  ;;  %v13960_v45 = vand.u32 4294901760, %v21644_v53  ;;  %v21675_v20 = vand.u32 4294901760, %v19733_v61  ;;  %v13871_v37 = vsel %vm13859_vm5, %v13869_v6, %v13870_v18 }
 0x157   : > { %v5337_v30 = vpop.f32.mrf.mxu1  ;;  %13188 = vmatmul.mubr.f32.vlgmr.msra.gmra.mxu1 %v12947_v4  ;;  %v5100_v4 = vadd.f32 %v5099_v17, %v5018_v32  ;;  %13072 = vmatpush1.xpose.msra.mxu0 %v21476_v52  ;;  %v21636_v57 = vand.u32 4294901760, %v13862_v58  ;;  %v13420_v28 = vsub.f32 %v21600_v14, %v13419_v19  ;;  %v21687_v17 = vsub.f32 %v19734_v33, %v21667_v0 }
 0x158   : > { %13304 = vmatpush1.xpose.msra.mxu1 %v21456_v48  ;;  %13107 = vmatprep.mubr.f32.mxu0 %v21500_v27  ;;  %v5101_v48 = vpop.f32.mrf.mxu0  ;;  %v14006_v27 = vand.u32 4294901760, %v21614_v47  ;;  %v13961_v44 = vsub.f32 %v21644_v53, %v13960_v45 }
 0x159   : > { %v5339_v59 = vpop.f32.mrf.mxu1  ;;  %13226 = vmatprep.subr.mxu0 %v12987_v2  ;;  %13338 = vmatprep.mubr.f32.mxu1 %v21478_v8  ;;  %v5182_v40 = vadd.f32 %v5181_v10, %v5100_v4  ;;  %v14012_v2 = vand.u32 4294901760, %v21619_v29  ;;  %v13421_v15 = vand.u32 4294901760, %v13420_v28 }
 0x15a   : > { %13462 = vmatprep.subr.mxu1 %v13461_v62  ;;  %v5259_v55 = vpop.f32.mrf.mxu0  ;;  %13110 = vmatmul.mubr.f32.vlgmr.msra.gmra.mxu0 %v21514_v46  ;;  %v21693_v59 = vand.u32 4294901760, %v13871_v37 }
 0x15b   : > { %v5489_v54 = vpop.f32.mrf.mxu1  ;;  %13340 = vmatmul.mubr.f32.vlgmr.msra.gmra.mxu1 %v21488_v41  ;;  %v5260_v43 = vadd.f32 %v5259_v55, %v5182_v40  ;;  %13230 = vmatpush1.xpose.msra.mxu0 %v12993_v13  ;;  %v21665_v13 = vsub.f32 %v13862_v58, %v21636_v57  ;;  %v14013_v39 = vsub.f32 %v21619_v29, %v14012_v2  ;;  %v14478_v40 = vand.u32 4294901760, %v21687_v17  ;;  %v13831_v55 = vld [vmem:[%s19837_s26 + $0x68] sm:$0x3f] }
 0x15c   : > { %13468 = vmatpush1.xpose.msra.mxu1 %v13467_v50  ;;  %13264 = vmatprep.mubr.f32.mxu0 %v21478_v8  ;;  %v5261_v9 = vpop.f32.mrf.mxu0  ;;  %v14007_v8 = vsub.f32 %v21614_v47, %v14006_v27 }
 0x15d   : > { %v5491_v46 = vpop.f32.mrf.mxu1  ;;  %13376 = vmatprep.subr.mxu0 %v21523_v38  ;;  %13502 = vmatprep.mubr.f32.mxu1 %v21554_v25  ;;  %v5338_v5 = vadd.f32 %v5337_v30, %v5260_v43  ;;  %v13966_v50 = vand.u32 4294901760, %v21665_v13  ;;  %v14014_v4 = vand.u32 4294901760, %v14013_v39  ;;  %v19736_v43 = vld [vmem:[%s22480_s1 + $0x1e8] sm:$0x7f]  ;;  %v13876_v9 = vrot.slane %v13831_v55, 7 }
 0x15e   : > { %13618 = vmatprep.subr.mxu1 %v21523_v38  ;;  %v5415_v10 = vpop.f32.mrf.mxu0  ;;  %13266 = vmatmul.mubr.f32.vlgmr.msra.gmra.mxu0 %v21488_v41  ;;  %v13867_v41 = vrot.slane %v13828_v42, 7  ;;  %v14008_v62 = vand.u32 4294901760, %v14007_v8  ;;  %v13830_v42 = vld [vmem:[%s19837_s26 + $0x60] sm:$0x3f] }
 0x15f   : > { %v5653_v52 = vpop.f32.mrf.mxu1  ;;  %13504 = vmatmul.mubr.f32.vlgmr.msra.gmra.mxu1 %v21569_v16  ;;  %v5416_v12 = vadd.f32 %v5415_v10, %v5338_v5  ;;  %13378 = vmatpush1.xpose.msra.mxu0 %v21525_v31 }
 0x160   : > { %13620 = vmatpush1.xpose.msra.mxu1 %v21525_v31  ;;  %13416 = vmatprep.mubr.f32.mxu0 %v13415_v21  ;;  %v5417_v60 = vpop.f32.mrf.mxu0  ;;  %v13962_v21 = vand.u32 4294901760, %v13961_v44 }
 0x161   : > { %v5655_v49 = vpop.f32.mrf.mxu1  ;;  %13541 = vmatprep.subr.mxu0 %v21546_v22  ;;  %13656 = vmatprep.mubr.f32.mxu1 %v13413_v63  ;;  %v5490_v32 = vadd.f32 %v5489_v54, %v5416_v12  ;;  %v21691_v63 = vsub.f32 %v19733_v61, %v21675_v20  ;;  %v13823_v54 = vld [vmem:[%s19837_s26 + $0x28] sm:$0x80]  ;;  %v19735_v61 = vld [vmem:[%s22480_s1 + $0x1e0] sm:$0x7f] }
 0x162   : > { %13774 = vmatprep.subr.mxu1 %v21523_v38  ;;  %v5571_v58 = vpop.f32.mrf.mxu0  ;;  %13422 = vmatmul.mubr.f32.vlgmr.msra.gmra.mxu0 %v13421_v15  ;;  %v13875_v18 = vrot.slane %v13823_v54, 7  ;;  %v21747_v12 = vand.u32 4294901760, %v19735_v61  ;;  %v13833_v54 = vld [vmem:[%s19837_s26 + $0x78] sm:$0x3f] }
 0x163   : > { %v5809_v30 = vpop.f32.mrf.mxu1  ;;  %13660 = vmatmul.mubr.f32.vlgmr.msra.gmra.mxu1 %v13419_v19  ;;  %v5572_v19 = vadd.f32 %v5571_v58, %v5490_v32  ;;  %13544 = vmatpush1.xpose.msra.mxu0 %v21543_v51  ;;  %v14484_v22 = vand.u32 4294901760, %v21691_v63 }
 0x164   : > { %13776 = vmatpush1.xpose.msra.mxu1 %v21525_v31  ;;  %13579 = vmatprep.mubr.f32.mxu0 %v21581_v35  ;;  %v13868_v31 = vsel %vm13859_vm5, %v13866_v23, %v13867_v41  ;;  %v5573_v48 = vpop.f32.mrf.mxu0  ;;  %v13967_v35 = vsub.f32 %v21665_v13, %v13966_v50  ;;  %v13872_v23 = vrot.slane %v13822_v1, 7  ;;  %v13877_v60 = vsel %vm13859_vm5, %v13875_v18, %v13876_v9 }
 0x165   : > { %v5811_v38 = vpop.f32.mrf.mxu1  ;;  %13698 = vmatprep.subr.mxu0 %v13459_v3  ;;  %13810 = vmatprep.mubr.f32.mxu1 %v21554_v25  ;;  %v5654_v7 = vadd.f32 %v5653_v52, %v5572_v19  ;;  %v21714_v3 = vsub.f32 %v13871_v37, %v21693_v59  ;;  %v21716_v33 = vand.u32 4294901760, %v13868_v31  ;;  %v21736_v52 = vand.u32 4294901760, %v19736_v43 }
 0x166   : > { %14009 = vmatprep.subr.mxu1 %v14008_v62  ;;  %v5731_v28 = vpop.f32.mrf.mxu0  ;;  %13582 = vmatmul.mubr.f32.vlgmr.msra.gmra.mxu0 %v21600_v14  ;;  %v14485_v10 = vsub.f32 %v21691_v63, %v14484_v22  ;;  %v13882_v18 = vrot.slane %v13833_v54, 7 }
 0x167   : > { %v5961_v11 = vpop.f32.mrf.mxu1  ;;  %13812 = vmatmul.mubr.f32.vlgmr.msra.gmra.mxu1 %v21569_v16  ;;  %v5732_v46 = vadd.f32 %v5731_v28, %v5654_v7  ;;  %13702 = vmatpush1.xpose.msra.mxu0 %v13465_v24  ;;  %v13968_v24 = vand.u32 4294901760, %v13967_v35  ;;  %v14432_v15 = vand.u32 4294901760, %v21714_v3  ;;  %v21745_v39 = vsub.f32 %v13868_v31, %v21716_v33  ;;  %v13825_v35 = vld [vmem:[%s19837_s26 + $0x38] sm:$0x80]  ;;  %v19738_v28 = vld [vmem:[%s22480_s1 + $0x1f8] sm:$0x7f] }
 0x168   : > { %14015 = vmatpush1.xpose.msra.mxu1 %v14014_v4  ;;  %13736 = vmatprep.mubr.f32.mxu0 %v21554_v25  ;;  %v5733_v6 = vpop.f32.mrf.mxu0  ;;  %v14479_v25 = vsub.f32 %v21687_v17, %v14478_v40  ;;  %v21758_v58 = vsub.f32 %v19736_v43, %v21736_v52  ;;  %v14486_v19 = vand.u32 4294901760, %v14485_v10  ;;  %v21773_v31 = vand.u32 4294901760, %v13877_v60 }
 0x169   : > { %v5963_v14 = vpop.f32.mrf.mxu1  ;;  %13923 = vmatprep.subr.mxu0 %v21595_v26  ;;  %14049 = vmatprep.mubr.f32.mxu1 %v21621_v56  ;;  %v5810_v5 = vadd.f32 %v5809_v30, %v5732_v46  ;;  %v14438_v38 = vand.u32 4294901760, %v21745_v39  ;;  %v13881_v6 = vrot.slane %v13825_v35, 7 }
 0x16a   : > { %14165 = vmatprep.subr.mxu1 %v21595_v26  ;;  %v5887_v8 = vpop.f32.mrf.mxu0  ;;  %13738 = vmatmul.mubr.f32.vlgmr.msra.gmra.mxu0 %v21569_v16  ;;  %v13873_v16 = vrot.slane %v13830_v42, 7  ;;  %v14480_v62 = vand.u32 4294901760, %v14479_v25  ;;  %v21797_v14 = vsub.f32 %v13877_v60, %v21773_v31  ;;  %v21811_v42 = vand.u32 4294901760, %v19738_v28 }
 0x16b   : > { %v6200_v51 = vpop.f32.mrf.mxu1  ;;  %14051 = vmatmul.mubr.f32.vlgmr.msra.gmra.mxu1 %v21636_v57  ;;  %v5888_v49 = vadd.f32 %v5887_v8, %v5810_v5  ;;  %13925 = vmatpush1.xpose.msra.mxu0 %v21602_v36  ;;  %v14439_v55 = vsub.f32 %v21745_v39, %v14438_v38 }
 0x16c   : > { %14167 = vmatpush1.xpose.msra.mxu1 %v21602_v36  ;;  %13963 = vmatprep.mubr.f32.mxu0 %v13962_v21  ;;  %v5889_v41 = vpop.f32.mrf.mxu0  ;;  %v13874_v48 = vsel %vm13859_vm5, %v13872_v23, %v13873_v16  ;;  %v19737_v21 = vld [vmem:[%s22480_s1 + $0x1f0] sm:$0x7f] }
 0x16d   : > { %v6202_v37 = vpop.f32.mrf.mxu1  ;;  %14088 = vmatprep.subr.mxu0 %v21614_v47  ;;  %14203 = vmatprep.mubr.f32.mxu1 %v13960_v45  ;;  %v5962_v32 = vadd.f32 %v5961_v11, %v5888_v49  ;;  %v14433_v45 = vsub.f32 %v21714_v3, %v14432_v15  ;;  %v21821_v8 = vand.u32 4294901760, %v19737_v21  ;;  %v13883_v41 = vsel %vm13859_vm5, %v13881_v6, %v13882_v18 }
 0x16e   : > { %14321 = vmatprep.subr.mxu1 %v21595_v26  ;;  %v6118_v4 = vpop.f32.mrf.mxu0  ;;  %13969 = vmatmul.mubr.f32.vlgmr.msra.gmra.mxu0 %v13968_v24  ;;  %v14904_v37 = vand.u32 4294901760, %v21797_v14 }
 0x16f   : > { %v6356_v30 = vpop.f32.mrf.mxu1  ;;  %14207 = vmatmul.mubr.f32.vlgmr.msra.gmra.mxu1 %v13966_v50  ;;  %v21766_v50 = vsub.f32 %v19735_v61, %v21747_v12  ;;  %v21769_v26 = vadd.f32 %v5962_v32, %v21464_v34  ;;  %v6201_v44 = vadd.f32 %v6200_v51, %v6118_v4  ;;  %14091 = vmatpush1.xpose.msra.mxu0 %v21619_v29  ;;  %v14950_v34 = vand.u32 4294901760, %v21758_v58  ;;  %v13824_v29 = vld [vmem:[%s19837_s26 + $0x30] sm:$0x80] }
 0x170   : > { %14323 = vmatpush1.xpose.msra.mxu1 %v21602_v36  ;;  %14126 = vmatprep.mubr.f32.mxu0 %v21644_v53  ;;  %v6120_v7 = vpop.f32.mrf.mxu0  ;;  %v14434_v46 = vand.u32 4294901760, %v14433_v45  ;;  %v14440_v51 = vand.u32 4294901760, %v14439_v55  ;;  %v21838_v45 = vsub.f32 %v19737_v21, %v21821_v8 }
 0x171   : > { %v6358_v36 = vpop.f32.mrf.mxu1  ;;  %14245 = vmatprep.subr.mxu0 %v14006_v27  ;;  %14357 = vmatprep.mubr.f32.mxu1 %v21621_v56  ;;  %v14956_v47 = vand.u32 4294901760, %v21766_v50  ;;  %v21788_v27 = vand.u32 4294901760, %v13874_v48  ;;  %v14951_v1 = vsub.f32 %v21758_v58, %v14950_v34 }
 0x172   : > { %14481 = vmatprep.subr.mxu1 %v14480_v62  ;;  %v6278_v53 = vpop.f32.mrf.mxu0  ;;  %14129 = vmatmul.mubr.f32.vlgmr.msra.gmra.mxu0 %v21665_v13  ;;  %v21833_v62 = vsub.f32 %v19738_v28, %v21811_v42  ;;  %v21845_v36 = vand.u32 4294901760, %v13883_v41 }
 0x173   : > { %v6508_v11 = vpop.f32.mrf.mxu1  ;;  %14359 = vmatmul.mubr.f32.vlgmr.msra.gmra.mxu1 %v21636_v57  ;;  %v6279_v43 = vadd.f32 %v6278_v53, %v6201_v44  ;;  %14249 = vmatpush1.xpose.msra.mxu0 %v14012_v2  ;;  %v13832_v2 = vld [vmem:[%s19837_s26 + $0x70] sm:$0x3f]  ;;  %v14957_v24 = vsub.f32 %v21766_v50, %v14956_v47  ;;  %v21819_v25 = vsub.f32 %v13874_v48, %v21788_v27  ;;  %v15428_v53 = vand.u32 4294901760, %v21838_v45 }
 0x174   : > { %14487 = vmatpush1.xpose.msra.mxu1 %v14486_v19  ;;  %14283 = vmatprep.mubr.f32.mxu0 %v21621_v56  ;;  %v6280_v61 = vpop.f32.mrf.mxu0  ;;  %v13879_v23 = vrot.slane %v13832_v2, 7 }
 0x175   : > { %v6510_v13 = vpop.f32.mrf.mxu1  ;;  %14395 = vmatprep.subr.mxu0 %v21667_v0  ;;  %14521 = vmatprep.mubr.f32.mxu1 %v21693_v59  ;;  %v6357_v9 = vadd.f32 %v6356_v30, %v6279_v43  ;;  %v14952_v30 = vand.u32 4294901760, %v14951_v1  ;;  %v14958_v19 = vand.u32 4294901760, %v14957_v24  ;;  %v15429_v18 = vsub.f32 %v21838_v45, %v15428_v53 }
 0x176   : > { %14637 = vmatprep.subr.mxu1 %v21667_v0  ;;  %v6434_v5 = vpop.f32.mrf.mxu0  ;;  %14285 = vmatmul.mubr.f32.vlgmr.msra.gmra.mxu0 %v21636_v57  ;;  %v13878_v57 = vrot.slane %v13824_v29, 7  ;;  %v19739_v13 = vld [vmem:[%s22480_s1 + $0x200] sm:$0x7f] }
 0x177   : > { %v6672_v56 = vpop.f32.mrf.mxu1  ;;  %14523 = vmatmul.mubr.f32.vlgmr.msra.gmra.mxu1 %v21716_v33  ;;  %v6435_v10 = vadd.f32 %v6434_v5, %v6357_v9  ;;  %14397 = vmatpush1.xpose.msra.mxu0 %v21675_v20  ;;  %v21887_v2 = vand.u32 4294901760, %v19739_v13  ;;  %v15782_v5 = vld [vmem:[%s19837_s26 + $0x48] sm:$0x7f] }
 0x178   : > { %14639 = vmatpush1.xpose.msra.mxu1 %v21675_v20  ;;  %14435 = vmatprep.mubr.f32.mxu0 %v14434_v46  ;;  %v6436_v16 = vpop.f32.mrf.mxu0 }
 0x179   : > { %v6674_v49 = vpop.f32.mrf.mxu1  ;;  %14560 = vmatprep.subr.mxu0 %v21687_v17  ;;  %14675 = vmatprep.mubr.f32.mxu1 %v14432_v15  ;;  %v6509_v60 = vadd.f32 %v6508_v11, %v6435_v10  ;;  %v14910_v15 = vand.u32 4294901760, %v21819_v25  ;;  %v19740_v17 = vld [vmem:[%s22480_s1 + $0x208] sm:$0x7f] }
 0x17a   : > { %14793 = vmatprep.subr.mxu1 %v21667_v0  ;;  %v6590_v4 = vpop.f32.mrf.mxu0  ;;  %14441 = vmatmul.mubr.f32.vlgmr.msra.gmra.mxu0 %v14440_v51 }
 0x17b   : > { %v6828_v32 = vpop.f32.mrf.mxu1  ;;  %14679 = vmatmul.mubr.f32.vlgmr.msra.gmra.mxu1 %v14438_v38  ;;  %v6591_v44 = vadd.f32 %v6590_v4, %v6509_v60  ;;  %14563 = vmatpush1.xpose.msra.mxu0 %v21691_v63  ;;  %v14905_v38 = vsub.f32 %v21797_v14, %v14904_v37  ;;  %v14911_v54 = vsub.f32 %v21819_v25, %v14910_v15 }
 0x17c   : > { %14795 = vmatpush1.xpose.msra.mxu1 %v21675_v20  ;;  %14598 = vmatprep.mubr.f32.mxu0 %v21714_v3  ;;  %v13880_v20 = vsel %vm13859_vm5, %v13878_v57, %v13879_v23  ;;  %v6592_v48 = vpop.f32.mrf.mxu0  ;;  %v15422_v3 = vand.u32 4294901760, %v21833_v62  ;;  %v15430_v23 = vand.u32 4294901760, %v15429_v18 }
 0x17d   : > { %v6830_v0 = vpop.f32.mrf.mxu1  ;;  %14717 = vmatprep.subr.mxu0 %v14478_v40  ;;  %14829 = vmatprep.mubr.f32.mxu1 %v21693_v59  ;;  %v6673_v7 = vadd.f32 %v6672_v56, %v6591_v44  ;;  %v21856_v55 = vand.u32 4294901760, %v13880_v20  ;;  %v14906_v43 = vand.u32 4294901760, %v14905_v38  ;;  %v14912_v6 = vand.u32 4294901760, %v14911_v54 }
 0x17e   : > { %14953 = vmatprep.subr.mxu1 %v14952_v30  ;;  %v6750_v35 = vpop.f32.mrf.mxu0  ;;  %14601 = vmatmul.mubr.f32.vlgmr.msra.gmra.mxu0 %v21745_v39  ;;  %v21865_v39 = vsub.f32 %v13883_v41, %v21845_v36  ;;  %v15423_v63 = vsub.f32 %v21833_v62, %v15422_v3  ;;  %v15781_v30 = vld [vmem:[%s19837_s26 + $0x40] sm:$0x7f] }
 0x17f   : > { %v6980_v11 = vpop.f32.mrf.mxu1  ;;  %14831 = vmatmul.mubr.f32.vlgmr.msra.gmra.mxu1 %v21716_v33  ;;  %v6751_v40 = vadd.f32 %v6750_v35, %v6673_v7  ;;  %14721 = vmatpush1.xpose.msra.mxu0 %v14484_v22  ;;  %v21885_v29 = vsub.f32 %v13880_v20, %v21856_v55  ;;  %v21920_v38 = vand.u32 4294901760, %v15781_v30  ;;  %v19741_v7 = vld [vmem:[%s22480_s1 + $0x210] sm:$0x7f] }
 0x180   : > { %14959 = vmatpush1.xpose.msra.mxu1 %v14958_v19  ;;  %14755 = vmatprep.mubr.f32.mxu0 %v21693_v59  ;;  %v6752_v46 = vpop.f32.mrf.mxu0  ;;  %v21877_v59 = vand.u32 4294901760, %v19740_v17  ;;  %v15376_v1 = vand.u32 4294901760, %v21865_v39  ;;  %v15424_v10 = vand.u32 4294901760, %v15423_v63 }
 0x181   : > { %v6982_v28 = vpop.f32.mrf.mxu1  ;;  %14867 = vmatprep.subr.mxu0 %v21736_v52  ;;  %14993 = vmatprep.mubr.f32.mxu1 %v21773_v31  ;;  %v6829_v21 = vadd.f32 %v6828_v32, %v6751_v40  ;;  %v15382_v16 = vand.u32 4294901760, %v21885_v29  ;;  %v21909_v32 = vand.u32 4294901760, %v15782_v5 }
 0x182   : > { %15109 = vmatprep.subr.mxu1 %v21736_v52  ;;  %v6906_v22 = vpop.f32.mrf.mxu0  ;;  %14757 = vmatmul.mubr.f32.vlgmr.msra.gmra.mxu0 %v21716_v33  ;;  %v21897_v49 = vsub.f32 %v19740_v17, %v21877_v59  ;;  %v15377_v60 = vsub.f32 %v21865_v39, %v15376_v1  ;;  %v21949_v28 = vsub.f32 %v15781_v30, %v21920_v38 }
 0x183   : > { %v7144_v61 = vpop.f32.mrf.mxu1  ;;  %14995 = vmatmul.mubr.f32.vlgmr.msra.gmra.mxu1 %v21788_v27  ;;  %v6907_v9 = vadd.f32 %v6906_v22, %v6829_v21  ;;  %14869 = vmatpush1.xpose.msra.mxu0 %v21747_v12  ;;  %v15383_v44 = vsub.f32 %v21885_v29, %v15382_v16 }
 0x184   : > { %15111 = vmatpush1.xpose.msra.mxu1 %v21747_v12  ;;  %14907 = vmatprep.mubr.f32.mxu0 %v14906_v43  ;;  %v6908_v33 = vpop.f32.mrf.mxu0  ;;  %v15378_v48 = vand.u32 4294901760, %v15377_v60  ;;  %v21951_v43 = vand.u32 4294901760, %v19741_v7 }
 0x185   : > { %v7146_v56 = vpop.f32.mrf.mxu1  ;;  %15032 = vmatprep.subr.mxu0 %v21758_v58  ;;  %15147 = vmatprep.mubr.f32.mxu1 %v14904_v37  ;;  %v6981_v51 = vadd.f32 %v6980_v11, %v6907_v9  ;;  %v21902_v37 = vsub.f32 %v19739_v13, %v21887_v2  ;;  %v19742_v58 = vld [vmem:[%s22480_s1 + $0x218] sm:$0x7f]  ;;  %v15384_v17 = vand.u32 4294901760, %v15383_v44  ;;  %v15872_v33 = vand.u32 4294901760, %v21949_v28 }
 0x186   : > { %15265 = vmatprep.subr.mxu1 %v21736_v52  ;;  %v7062_v57 = vpop.f32.mrf.mxu0  ;;  %14913 = vmatmul.mubr.f32.vlgmr.msra.gmra.mxu0 %v14912_v6 }
 0x187   : > { %v7300_v24 = vpop.f32.mrf.mxu1  ;;  %15151 = vmatmul.mubr.f32.vlgmr.msra.gmra.mxu1 %v14910_v15  ;;  %v7063_v41 = vadd.f32 %v7062_v57, %v6981_v51  ;;  %15035 = vmatpush1.xpose.msra.mxu0 %v21766_v50  ;;  %v15918_v0 = vand.u32 4294901760, %v21902_v37 }
 0x188   : > { %15267 = vmatpush1.xpose.msra.mxu1 %v21747_v12  ;;  %15070 = vmatprep.mubr.f32.mxu0 %v21797_v14  ;;  %v7064_v12 = vpop.f32.mrf.mxu0  ;;  %v15912_v14 = vand.u32 4294901760, %v21897_v49 }
 0x189   : > { %v7302_v52 = vpop.f32.mrf.mxu1  ;;  %15189 = vmatprep.subr.mxu0 %v14950_v34  ;;  %15301 = vmatprep.mubr.f32.mxu1 %v21773_v31  ;;  %v7145_v4 = vadd.f32 %v7144_v61, %v7063_v41  ;;  %v15919_v40 = vsub.f32 %v21902_v37, %v15918_v0  ;;  %v15784_v61 = vld [vmem:[%s19837_s26 + $0x58] sm:$0x7f]  ;;  %v15873_v41 = vsub.f32 %v21949_v28, %v15872_v33 }
 0x18a   : > { %15425 = vmatprep.subr.mxu1 %v15424_v10  ;;  %v7222_v15 = vpop.f32.mrf.mxu0  ;;  %15073 = vmatmul.mubr.f32.vlgmr.msra.gmra.mxu0 %v21819_v25  ;;  %v21929_v25 = vsub.f32 %v15782_v5, %v21909_v32  ;;  %v15913_v50 = vsub.f32 %v21897_v49, %v15912_v14  ;;  %v15783_v10 = vld [vmem:[%s19837_s26 + $0x50] sm:$0x7f] }
 0x18b   : > { %v7452_v19 = vpop.f32.mrf.mxu1  ;;  %15303 = vmatmul.mubr.f32.vlgmr.msra.gmra.mxu1 %v21788_v27  ;;  %v7223_v34 = vadd.f32 %v7222_v15, %v7145_v4  ;;  %15193 = vmatpush1.xpose.msra.mxu0 %v14956_v47  ;;  %v15920_v56 = vand.u32 4294901760, %v15919_v40  ;;  %v21984_v60 = vand.u32 4294901760, %v15783_v10  ;;  %v19743_v4 = vld [vmem:[%s22480_s1 + $0x220] sm:$0x7f] }
 0x18c   : > { %15431 = vmatpush1.xpose.msra.mxu1 %v15430_v23  ;;  %15227 = vmatprep.mubr.f32.mxu0 %v21773_v31  ;;  %v7224_v11 = vpop.f32.mrf.mxu0  ;;  %v21941_v31 = vand.u32 4294901760, %v19742_v58  ;;  %v15866_v21 = vand.u32 4294901760, %v21929_v25  ;;  %v15914_v6 = vand.u32 4294901760, %v15913_v50 }
 0x18d   : > { %v7454_v20 = vpop.f32.mrf.mxu1  ;;  %15339 = vmatprep.subr.mxu0 %v21811_v42  ;;  %15465 = vmatprep.mubr.f32.mxu1 %v21845_v36  ;;  %v7301_v35 = vadd.f32 %v7300_v24, %v7223_v34  ;;  %v21973_v24 = vand.u32 4294901760, %v15784_v61 }
 0x18e   : > { %15581 = vmatprep.subr.mxu1 %v21811_v42  ;;  %v7378_v47 = vpop.f32.mrf.mxu0  ;;  %15229 = vmatmul.mubr.f32.vlgmr.msra.gmra.mxu0 %v21788_v27  ;;  %v21961_v18 = vsub.f32 %v19742_v58, %v21941_v31  ;;  %v15867_v51 = vsub.f32 %v21929_v25, %v15866_v21  ;;  %v15874_v58 = vand.u32 4294901760, %v15873_v41  ;;  %v22013_v20 = vsub.f32 %v15783_v10, %v21984_v60 }
 0x18f   : > { %v7616_v54 = vpop.f32.mrf.mxu1  ;;  %15467 = vmatmul.mubr.f32.vlgmr.msra.gmra.mxu1 %v21856_v55  ;;  %v7379_v13 = vadd.f32 %v7378_v47, %v7301_v35  ;;  %15341 = vmatpush1.xpose.msra.mxu0 %v21821_v8 }
 0x190   : > { %15583 = vmatpush1.xpose.msra.mxu1 %v21821_v8  ;;  %15379 = vmatprep.mubr.f32.mxu0 %v15378_v48  ;;  %v7380_v27 = vpop.f32.mrf.mxu0  ;;  %v15868_v12 = vand.u32 4294901760, %v15867_v51  ;;  %v22015_v48 = vand.u32 4294901760, %v19743_v4 }
 0x191   : > { %v7618_v46 = vpop.f32.mrf.mxu1  ;;  %15504 = vmatprep.subr.mxu0 %v21833_v62  ;;  %15619 = vmatprep.mubr.f32.mxu1 %v15376_v1  ;;  %v7453_v63 = vadd.f32 %v7452_v19, %v7379_v13  ;;  %v21966_v1 = vsub.f32 %v19741_v7, %v21951_v43  ;;  %v19744_v62 = vld [vmem:[%s22480_s1 + $0x228] sm:$0x7f]  ;;  %v16344_v27 = vand.u32 4294901760, %v22013_v20 }
 0x192   : > { %15737 = vmatprep.subr.mxu1 %v21811_v42  ;;  %v7534_v9 = vpop.f32.mrf.mxu0  ;;  %15385 = vmatmul.mubr.f32.vlgmr.msra.gmra.mxu0 %v15384_v17 }
 0x193   : > { %v7772_v22 = vpop.f32.mrf.mxu1  ;;  %15623 = vmatmul.mubr.f32.vlgmr.msra.gmra.mxu1 %v15382_v16  ;;  %v7535_v5 = vadd.f32 %v7534_v9, %v7453_v63  ;;  %15507 = vmatpush1.xpose.msra.mxu0 %v21838_v45  ;;  %v16390_v52 = vand.u32 4294901760, %v21966_v1 }
 0x194   : > { %15739 = vmatpush1.xpose.msra.mxu1 %v21821_v8  ;;  %15542 = vmatprep.mubr.f32.mxu0 %v21865_v39  ;;  %v7536_v8 = vpop.f32.mrf.mxu0  ;;  %v16384_v39 = vand.u32 4294901760, %v21961_v18 }
 0x195   : > { %v7774_v42 = vpop.f32.mrf.mxu1  ;;  %15661 = vmatprep.subr.mxu0 %v15422_v3  ;;  %15773 = vmatprep.mubr.f32.mxu1 %v21845_v36  ;;  %v7617_v57 = vadd.f32 %v7616_v54, %v7535_v5  ;;  %v16391_v34 = vsub.f32 %v21966_v1, %v16390_v52  ;;  %v15786_v54 = vld [vmem:[%s19837_s26 + $0x68] sm:$0x7f]  ;;  %v19745_v8 = vld [vmem:[%s22480_s1 + $0x230] sm:$0x7f] }
 0x196   : > { %15915 = vmatprep.subr.mxu1 %v15914_v6  ;;  %v7694_v16 = vpop.f32.mrf.mxu0  ;;  %15545 = vmatmul.mubr.f32.vlgmr.msra.gmra.mxu0 %v21885_v29  ;;  %v21993_v29 = vsub.f32 %v15784_v61, %v21973_v24  ;;  %v16385_v45 = vsub.f32 %v21961_v18, %v16384_v39  ;;  %v15785_v6 = vld [vmem:[%s19837_s26 + $0x60] sm:$0x7f] }
 0x197   : > { %v7924_v23 = vpop.f32.mrf.mxu1  ;;  %15775 = vmatmul.mubr.f32.vlgmr.msra.gmra.mxu1 %v21856_v55  ;;  %v7695_v3 = vadd.f32 %v7694_v16, %v7617_v57  ;;  %15665 = vmatpush1.xpose.msra.mxu0 %v15428_v53  ;;  %v16392_v46 = vand.u32 4294901760, %v16391_v34  ;;  %v22051_v42 = vand.u32 4294901760, %v15785_v6 }
 0x198   : > { %15921 = vmatpush1.xpose.msra.mxu1 %v15920_v56  ;;  %15699 = vmatprep.mubr.f32.mxu0 %v21845_v36  ;;  %v7696_v19 = vpop.f32.mrf.mxu0  ;;  %v22005_v36 = vand.u32 4294901760, %v19744_v62  ;;  %v16338_v35 = vand.u32 4294901760, %v21993_v29  ;;  %v16386_v17 = vand.u32 4294901760, %v16385_v45 }
 0x199   : > { %v7926_v30 = vpop.f32.mrf.mxu1  ;;  %15829 = vmatprep.subr.mxu0 %v21877_v59  ;;  %15955 = vmatprep.mubr.f32.mxu1 %v21909_v32  ;;  %v7773_v15 = vadd.f32 %v7772_v22, %v7695_v3  ;;  %v22080_v3 = vsub.f32 %v15785_v6, %v22051_v42 }
 0x19a   : > { %16071 = vmatprep.subr.mxu1 %v21877_v59  ;;  %v7850_v53 = vpop.f32.mrf.mxu0  ;;  %15701 = vmatmul.mubr.f32.vlgmr.msra.gmra.mxu0 %v21856_v55  ;;  %v22025_v40 = vsub.f32 %v19744_v62, %v22005_v36  ;;  %v16339_v22 = vsub.f32 %v21993_v29, %v16338_v35  ;;  %v22082_v30 = vand.u32 4294901760, %v19745_v8 }
 0x19b   : > { %v8163_v44 = vpop.f32.mrf.mxu1  ;;  %15957 = vmatmul.mubr.f32.vlgmr.msra.gmra.mxu1 %v21920_v38  ;;  %v7851_v7 = vadd.f32 %v7850_v53, %v7773_v15  ;;  %15831 = vmatpush1.xpose.msra.mxu0 %v21887_v2  ;;  %v15788_v15 = vld [vmem:[%s19837_s26 + $0x78] sm:$0x7f] }
 0x19c   : > { %16073 = vmatpush1.xpose.msra.mxu1 %v21887_v2  ;;  %15869 = vmatprep.mubr.f32.mxu0 %v15868_v12  ;;  %v7852_v55 = vpop.f32.mrf.mxu0  ;;  %v16340_v10 = vand.u32 4294901760, %v16339_v22 }
 0x19d   : > { %v8165_v11 = vpop.f32.mrf.mxu1  ;;  %15994 = vmatprep.subr.mxu0 %v21897_v49  ;;  %16109 = vmatprep.mubr.f32.mxu1 %v15866_v21  ;;  %v7925_v50 = vadd.f32 %v7924_v23, %v7851_v7  ;;  %v22030_v21 = vsub.f32 %v19743_v4, %v22015_v48  ;;  %v19746_v49 = vld [vmem:[%s22480_s1 + $0x238] sm:$0x7f] }
 0x19e   : > { %16227 = vmatprep.subr.mxu1 %v21877_v59  ;;  %v8081_v13 = vpop.f32.mrf.mxu0  ;;  %15875 = vmatmul.mubr.f32.vlgmr.msra.gmra.mxu0 %v15874_v58  ;;  %v16816_v11 = vand.u32 4294901760, %v22080_v3 }
 0x19f   : > { %v8319_v47 = vpop.f32.mrf.mxu1  ;;  %16113 = vmatmul.mubr.f32.vlgmr.msra.gmra.mxu1 %v15872_v33  ;;  %v22033_v61 = vadd.f32 %v7925_v50, %v21769_v26  ;;  %v8164_v63 = vadd.f32 %v8163_v44, %v8081_v13  ;;  %15997 = vmatpush1.xpose.msra.mxu0 %v21902_v37  ;;  %v16345_v33 = vsub.f32 %v22013_v20, %v16344_v27  ;;  %v16862_v5 = vand.u32 4294901760, %v22030_v21 }
 0x1a0   : > { %16229 = vmatpush1.xpose.msra.mxu1 %v21887_v2  ;;  %16032 = vmatprep.mubr.f32.mxu0 %v21929_v25  ;;  %v22040_v2 = vand.u32 4294901760, %v15786_v54  ;;  %v8083_v9 = vpop.f32.mrf.mxu0  ;;  %v16856_v25 = vand.u32 4294901760, %v22025_v40  ;;  %v22104_v50 = vand.u32 4294901760, %v15788_v15 }
 0x1a1   : > { %v8321_v59 = vpop.f32.mrf.mxu1  ;;  %16151 = vmatprep.subr.mxu0 %v15912_v14  ;;  %16263 = vmatprep.mubr.f32.mxu1 %v21909_v32  ;;  %v16346_v41 = vand.u32 4294901760, %v16345_v33  ;;  %v16863_v62 = vsub.f32 %v22030_v21, %v16862_v5  ;;  %v19747_v9 = vld [vmem:[%s22480_s1 + $0x240] sm:$0x7f] }
 0x1a2   : > { %16387 = vmatprep.subr.mxu1 %v16386_v17  ;;  %v8241_v56 = vpop.f32.mrf.mxu0  ;;  %16035 = vmatmul.mubr.f32.vlgmr.msra.gmra.mxu0 %v21949_v28  ;;  %v22060_v28 = vsub.f32 %v15786_v54, %v22040_v2  ;;  %v16857_v37 = vsub.f32 %v22025_v40, %v16856_v25  ;;  %v22124_v6 = vsub.f32 %v15788_v15, %v22104_v50 }
 0x1a3   : > { %v8471_v26 = vpop.f32.mrf.mxu1  ;;  %16265 = vmatmul.mubr.f32.vlgmr.msra.gmra.mxu1 %v21920_v38  ;;  %v8242_v14 = vadd.f32 %v8241_v56, %v8164_v63  ;;  %16155 = vmatpush1.xpose.msra.mxu0 %v15918_v0  ;;  %v16864_v7 = vand.u32 4294901760, %v16863_v62  ;;  %v22132_v56 = vld [vmem:[%s19837_s26 + $0x48] sm:$0xfe] }
 0x1a4   : > { %16393 = vmatpush1.xpose.msra.mxu1 %v16392_v46  ;;  %16189 = vmatprep.mubr.f32.mxu0 %v21909_v32  ;;  %v8243_v57 = vpop.f32.mrf.mxu0  ;;  %v22072_v32 = vand.u32 4294901760, %v19746_v49  ;;  %v16810_v19 = vand.u32 4294901760, %v22060_v28  ;;  %v16858_v53 = vand.u32 4294901760, %v16857_v37  ;;  %v17687_v37 = vld [vmem:[%s19837_s26 + $0x40] sm:$0xfe] }
 0x1a5   : > { %v8473_v51 = vpop.f32.mrf.mxu1  ;;  %16301 = vmatprep.subr.mxu0 %v21941_v31  ;;  %16427 = vmatprep.mubr.f32.mxu1 %v21973_v24  ;;  %v8320_v23 = vadd.f32 %v8319_v47, %v8242_v14  ;;  %v15787_v47 = vld [vmem:[%s19837_s26 + $0x70] sm:$0x7f] }
 0x1a6   : > { %16543 = vmatprep.subr.mxu1 %v21941_v31  ;;  %v8397_v0 = vpop.f32.mrf.mxu0  ;;  %16191 = vmatmul.mubr.f32.vlgmr.msra.gmra.mxu0 %v21920_v38  ;;  %v22092_v58 = vsub.f32 %v19746_v49, %v22072_v32  ;;  %v16811_v54 = vsub.f32 %v22060_v28, %v16810_v19 }
 0x1a7   : > { %v8635_v16 = vpop.f32.mrf.mxu1  ;;  %16429 = vmatmul.mubr.f32.vlgmr.msra.gmra.mxu1 %v21984_v60  ;;  %v8398_v12 = vadd.f32 %v8397_v0, %v8320_v23  ;;  %16303 = vmatpush1.xpose.msra.mxu0 %v21951_v43 }
 0x1a8   : > { %16545 = vmatpush1.xpose.msra.mxu1 %v21951_v43  ;;  %16341 = vmatprep.mubr.f32.mxu0 %v16340_v10  ;;  %v8399_v38 = vpop.f32.mrf.mxu0 }
 0x1a9   : > { %v8637_v4 = vpop.f32.mrf.mxu1  ;;  %16466 = vmatprep.subr.mxu0 %v21961_v18  ;;  %16581 = vmatprep.mubr.f32.mxu1 %v16338_v35  ;;  %v8472_v44 = vadd.f32 %v8471_v26, %v8398_v12  ;;  %v22097_v35 = vsub.f32 %v19745_v8, %v22082_v30  ;;  %v22115_v18 = vand.u32 4294901760, %v15787_v47  ;;  %v22149_v8 = vand.u32 4294901760, %v19747_v9 }
 0x1aa   : > { %16699 = vmatprep.subr.mxu1 %v21941_v31  ;;  %v8553_v34 = vpop.f32.mrf.mxu0  ;;  %16347 = vmatmul.mubr.f32.vlgmr.msra.gmra.mxu0 %v16346_v41 }
 0x1ab   : > { %v8791_v45 = vpop.f32.mrf.mxu1  ;;  %16585 = vmatmul.mubr.f32.vlgmr.msra.gmra.mxu1 %v16344_v27  ;;  %v8554_v55 = vadd.f32 %v8553_v34, %v8472_v44  ;;  %16469 = vmatpush1.xpose.msra.mxu0 %v21966_v1  ;;  %v16817_v27 = vsub.f32 %v22080_v3, %v16816_v11  ;;  %v17334_v63 = vand.u32 4294901760, %v22097_v35  ;;  %v22147_v10 = vsub.f32 %v15787_v47, %v22115_v18 }
 0x1ac   : > { %16701 = vmatpush1.xpose.msra.mxu1 %v21951_v43  ;;  %16504 = vmatprep.mubr.f32.mxu0 %v21993_v29  ;;  %v8555_v43 = vpop.f32.mrf.mxu0  ;;  %v17328_v29 = vand.u32 4294901760, %v22092_v58 }
 0x1ad   : > { %v8793_v31 = vpop.f32.mrf.mxu1  ;;  %16623 = vmatprep.subr.mxu0 %v16384_v39  ;;  %16735 = vmatprep.mubr.f32.mxu1 %v21973_v24  ;;  %v8636_v17 = vadd.f32 %v8635_v16, %v8554_v55  ;;  %v19748_v39 = vld [vmem:[%s22480_s1 + $0x248] sm:$0x7f]  ;;  %v16818_v14 = vand.u32 4294901760, %v16817_v27  ;;  %v17335_v51 = vsub.f32 %v22097_v35, %v17334_v63  ;;  %v17282_v16 = vand.u32 4294901760, %v22124_v6 }
 0x1ae   : > { %16859 = vmatprep.subr.mxu1 %v16858_v53  ;;  %v8713_v46 = vpop.f32.mrf.mxu0  ;;  %16507 = vmatmul.mubr.f32.vlgmr.msra.gmra.mxu0 %v22013_v20  ;;  %v16812_v20 = vand.u32 4294901760, %v16811_v54  ;;  %v22139_v33 = vand.u32 4294901760, %v19748_v39  ;;  %v17288_v44 = vand.u32 4294901760, %v22147_v10 }
 0x1af   : > { %v8943_v13 = vpop.f32.mrf.mxu1  ;;  %16737 = vmatmul.mubr.f32.vlgmr.msra.gmra.mxu1 %v21984_v60  ;;  %v8714_v59 = vadd.f32 %v8713_v46, %v8636_v17  ;;  %16627 = vmatpush1.xpose.msra.mxu0 %v16390_v52  ;;  %v17336_v15 = vand.u32 4294901760, %v17335_v51  ;;  %v17283_v34 = vsub.f32 %v22124_v6, %v17282_v16  ;;  %v19749_v46 = vld [vmem:[%s22480_s1 + $0x250] sm:$0x7f] }
 0x1b0   : > { %16865 = vmatpush1.xpose.msra.mxu1 %v16864_v7  ;;  %16661 = vmatprep.mubr.f32.mxu0 %v21973_v24  ;;  %v8715_v26 = vpop.f32.mrf.mxu0  ;;  %v17329_v24 = vsub.f32 %v22092_v58, %v17328_v29  ;;  %v22160_v4 = vsub.f32 %v19748_v39, %v22139_v33  ;;  %v17289_v54 = vsub.f32 %v22147_v10, %v17288_v44  ;;  %v22199_v39 = vld [vmem:[%s19837_s26 + $0x58] sm:$0xfe] }
 0x1b1   : > { %v8945_v22 = vpop.f32.mrf.mxu1  ;;  %16773 = vmatprep.subr.mxu0 %v22005_v36  ;;  %16899 = vmatprep.mubr.f32.mxu1 %v22040_v2  ;;  %v8792_v1 = vadd.f32 %v8791_v45, %v8714_v59  ;;  %v22165_v45 = vsub.f32 %v19747_v9, %v22149_v8 }
 0x1b2   : > { %17015 = vmatprep.subr.mxu1 %v22005_v36  ;;  %v8869_v49 = vpop.f32.mrf.mxu0  ;;  %16663 = vmatmul.mubr.f32.vlgmr.msra.gmra.mxu0 %v21984_v60  ;;  %v17713_v60 = vrot.slane %v22132_v56, 1  ;;  %v17330_v12 = vand.u32 4294901760, %v17329_v24  ;;  %v22216_v56 = vand.u32 4294901760, %v19749_v46 }
 0x1b3   : > { %v9107_v52 = vpop.f32.mrf.mxu1  ;;  %16901 = vmatmul.mubr.f32.vlgmr.msra.gmra.mxu1 %v22051_v42  ;;  %v8870_v57 = vadd.f32 %v8869_v49, %v8792_v1  ;;  %16775 = vmatpush1.xpose.msra.mxu0 %v22015_v48  ;;  %v17848_v47 = vand.u32 4294901760, %v22165_v45  ;;  %v17689_v49 = vld [vmem:[%s19837_s26 + $0x50] sm:$0xfe] }
 0x1b4   : > { %17017 = vmatpush1.xpose.msra.mxu1 %v22015_v48  ;;  %16813 = vmatprep.mubr.f32.mxu0 %v16812_v20  ;;  %v8871_v0 = vpop.f32.mrf.mxu0  ;;  %v22172_v7 = vand.u32 4294901760, %v17713_v60  ;;  %v17290_v20 = vand.u32 4294901760, %v17289_v54 }
 0x1b5   : > { %v9109_v23 = vpop.f32.mrf.mxu1  ;;  %16938 = vmatprep.subr.mxu0 %v22025_v40  ;;  %17053 = vmatprep.mubr.f32.mxu1 %v16810_v19  ;;  %v8944_v41 = vadd.f32 %v8943_v13, %v8870_v57  ;;  %v17712_v19 = vrot.slane %v17687_v37, 1  ;;  %v17849_v9 = vsub.f32 %v22165_v45, %v17848_v47 }
 0x1b6   : > { %17171 = vmatprep.subr.mxu1 %v22005_v36  ;;  %v9025_v38 = vpop.f32.mrf.mxu0  ;;  %16819 = vmatmul.mubr.f32.vlgmr.msra.gmra.mxu0 %v16818_v14  ;;  %v22191_v13 = vsub.f32 %v17713_v60, %v22172_v7 }
 0x1b7   : > { %v9263_v62 = vpop.f32.mrf.mxu1  ;;  %17057 = vmatmul.mubr.f32.vlgmr.msra.gmra.mxu1 %v16816_v11  ;;  %v9026_v53 = vadd.f32 %v9025_v38, %v8944_v41  ;;  %16941 = vmatpush1.xpose.msra.mxu0 %v22030_v21  ;;  %v22182_v40 = vand.u32 4294901760, %v17712_v19  ;;  %v17850_v0 = vand.u32 4294901760, %v17849_v9 }
 0x1b8   : > { %17173 = vmatpush1.xpose.msra.mxu1 %v22015_v48  ;;  %16976 = vmatprep.mubr.f32.mxu0 %v22060_v28  ;;  %v9027_v48 = vpop.f32.mrf.mxu0  ;;  %v17842_v28 = vand.u32 4294901760, %v22160_v4  ;;  %v17796_v24 = vand.u32 4294901760, %v22191_v13 }
 0x1b9   : > { %v9265_v36 = vpop.f32.mrf.mxu1  ;;  %17095 = vmatprep.subr.mxu0 %v16856_v25  ;;  %17207 = vmatprep.mubr.f32.mxu1 %v22040_v2  ;;  %v9108_v11 = vadd.f32 %v9107_v52, %v9026_v53  ;;  %v19750_v25 = vld [vmem:[%s22480_s1 + $0x258] sm:$0x7f]  ;;  %v22214_v26 = vsub.f32 %v17712_v19, %v22182_v40 }
 0x1ba   : > { %17331 = vmatprep.subr.mxu1 %v17330_v12  ;;  %v9185_v31 = vpop.f32.mrf.mxu0  ;;  %16979 = vmatmul.mubr.f32.vlgmr.msra.gmra.mxu0 %v22080_v3  ;;  %v17284_v3 = vand.u32 4294901760, %v17283_v34  ;;  %v22206_v59 = vand.u32 4294901760, %v19750_v25  ;;  %v17797_v38 = vsub.f32 %v22191_v13, %v17796_v24 }
 0x1bb   : > { %v9415_v55 = vpop.f32.mrf.mxu1  ;;  %17209 = vmatmul.mubr.f32.vlgmr.msra.gmra.mxu1 %v22051_v42  ;;  %v9186_v43 = vadd.f32 %v9185_v31, %v9108_v11  ;;  %17099 = vmatpush1.xpose.msra.mxu0 %v16862_v5  ;;  %v17802_v41 = vand.u32 4294901760, %v22214_v26  ;;  %v19751_v31 = vld [vmem:[%s22480_s1 + $0x260] sm:$0x7f] }
 0x1bc   : > { %17337 = vmatpush1.xpose.msra.mxu1 %v17336_v15  ;;  %17133 = vmatprep.mubr.f32.mxu0 %v22040_v2  ;;  %v9187_v27 = vpop.f32.mrf.mxu0  ;;  %v17843_v2 = vsub.f32 %v22160_v4, %v17842_v28  ;;  %v22227_v60 = vsub.f32 %v19750_v25, %v22206_v59  ;;  %v22266_v25 = vld [vmem:[%s19837_s26 + $0x68] sm:$0xfe] }
 0x1bd   : > { %v9417_v17 = vpop.f32.mrf.mxu1  ;;  %17245 = vmatprep.subr.mxu0 %v22072_v32  ;;  %17371 = vmatprep.mubr.f32.mxu1 %v22104_v50  ;;  %v9264_v21 = vadd.f32 %v9263_v62, %v9186_v43  ;;  %v22232_v62 = vsub.f32 %v19749_v46, %v22216_v56  ;;  %v17803_v36 = vsub.f32 %v22214_v26, %v17802_v41 }
 0x1be   : > { %17487 = vmatprep.subr.mxu1 %v22072_v32  ;;  %v9341_v22 = vpop.f32.mrf.mxu0  ;;  %17135 = vmatmul.mubr.f32.vlgmr.msra.gmra.mxu0 %v22051_v42  ;;  %v17715_v42 = vrot.slane %v22199_v39, 1  ;;  %v17844_v23 = vand.u32 4294901760, %v17843_v2  ;;  %v22283_v39 = vand.u32 4294901760, %v19751_v31 }
 0x1bf   : > { %v9579_v5 = vpop.f32.mrf.mxu1  ;;  %17373 = vmatmul.mubr.f32.vlgmr.msra.gmra.mxu1 %v22115_v18  ;;  %v9342_v1 = vadd.f32 %v9341_v22, %v9264_v21  ;;  %17247 = vmatpush1.xpose.msra.mxu0 %v22082_v30  ;;  %v18320_v34 = vand.u32 4294901760, %v22232_v62  ;;  %v17691_v22 = vld [vmem:[%s19837_s26 + $0x60] sm:$0xfe] }
 0x1c0   : > { %17489 = vmatpush1.xpose.msra.mxu1 %v22082_v30  ;;  %17285 = vmatprep.mubr.f32.mxu0 %v17284_v3  ;;  %v9343_v14 = vpop.f32.mrf.mxu0  ;;  %v22239_v15 = vand.u32 4294901760, %v17715_v42  ;;  %v17804_v3 = vand.u32 4294901760, %v17803_v36  ;;  %v22336_v36 = vld [vmem:[%s19837_s26 + $0x78] sm:$0xfe] }
 0x1c1   : > { %v9581_v52 = vpop.f32.mrf.mxu1  ;;  %17410 = vmatprep.subr.mxu0 %v22092_v58  ;;  %17525 = vmatprep.mubr.f32.mxu1 %v17282_v16  ;;  %v9416_v51 = vadd.f32 %v9415_v55, %v9342_v1  ;;  %v17714_v16 = vrot.slane %v17689_v49, 1  ;;  %v18321_v46 = vsub.f32 %v22232_v62, %v18320_v34 }
 0x1c2   : > { %17643 = vmatprep.subr.mxu1 %v22072_v32  ;;  %v9497_v37 = vpop.f32.mrf.mxu0  ;;  %17291 = vmatmul.mubr.f32.vlgmr.msra.gmra.mxu0 %v17290_v20  ;;  %v22258_v55 = vsub.f32 %v17715_v42, %v22239_v15 }
 0x1c3   : > { %v9735_v57 = vpop.f32.mrf.mxu1  ;;  %17529 = vmatmul.mubr.f32.vlgmr.msra.gmra.mxu1 %v17288_v44  ;;  %v9498_v12 = vadd.f32 %v9497_v37, %v9416_v51  ;;  %17413 = vmatpush1.xpose.msra.mxu0 %v22097_v35  ;;  %v22249_v58 = vand.u32 4294901760, %v17714_v16  ;;  %v18322_v14 = vand.u32 4294901760, %v18321_v46 }
 0x1c4   : > { %17645 = vmatpush1.xpose.msra.mxu1 %v22082_v30  ;;  %17448 = vmatprep.mubr.f32.mxu0 %v22124_v6  ;;  %v9499_v30 = vpop.f32.mrf.mxu0  ;;  %v18314_v6 = vand.u32 4294901760, %v22227_v60  ;;  %v18268_v2 = vand.u32 4294901760, %v22258_v55 }
 0x1c5   : > { %v9737_v32 = vpop.f32.mrf.mxu1  ;;  %17567 = vmatprep.subr.mxu0 %v17328_v29  ;;  %17679 = vmatprep.mubr.f32.mxu1 %v22104_v50  ;;  %v9580_v44 = vadd.f32 %v9579_v5, %v9498_v12  ;;  %v19752_v29 = vld [vmem:[%s22480_s1 + $0x268] sm:$0x7f]  ;;  %v22281_v27 = vsub.f32 %v17714_v16, %v22249_v58 }
 0x1c6   : > { %17845 = vmatprep.subr.mxu1 %v17844_v23  ;;  %v9657_v53 = vpop.f32.mrf.mxu0  ;;  %17451 = vmatmul.mubr.f32.vlgmr.msra.gmra.mxu0 %v22147_v10  ;;  %v17798_v10 = vand.u32 4294901760, %v17797_v38  ;;  %v22273_v43 = vand.u32 4294901760, %v19752_v29 }
 0x1c7   : > { %v9887_v19 = vpop.f32.mrf.mxu1  ;;  %17681 = vmatmul.mubr.f32.vlgmr.msra.gmra.mxu1 %v22115_v18  ;;  %v9658_v48 = vadd.f32 %v9657_v53, %v9580_v44  ;;  %17571 = vmatpush1.xpose.msra.mxu0 %v17334_v63  ;;  %v18274_v51 = vand.u32 4294901760, %v22281_v27 }
 0x1c8   : > { %17851 = vmatpush1.xpose.msra.mxu1 %v17850_v0  ;;  %17605 = vmatprep.mubr.f32.mxu0 %v22104_v50  ;;  %v9659_v54 = vpop.f32.mrf.mxu0  ;;  %v18315_v50 = vsub.f32 %v22227_v60, %v18314_v6  ;;  %v22294_v42 = vsub.f32 %v19752_v29, %v22273_v43 }
 0x1c9   : > { %v9889_v11 = vpop.f32.mrf.mxu1  ;;  %17759 = vmatprep.subr.mxu0 %v22139_v33  ;;  %17885 = vmatprep.mubr.f32.mxu1 %v22172_v7  ;;  %v9736_v35 = vadd.f32 %v9735_v57, %v9658_v48  ;;  %v22299_v57 = vsub.f32 %v19751_v31, %v22283_v39  ;;  %v18275_v12 = vsub.f32 %v22281_v27, %v18274_v51 }
 0x1ca   : > { %18001 = vmatprep.subr.mxu1 %v22139_v33  ;;  %v9813_v17 = vpop.f32.mrf.mxu0  ;;  %17607 = vmatmul.mubr.f32.vlgmr.msra.gmra.mxu0 %v22115_v18  ;;  %v17717_v18 = vrot.slane %v22266_v25, 1  ;;  %v18316_v52 = vand.u32 4294901760, %v18315_v50  ;;  %v18786_v16 = vand.u32 4294901760, %v22294_v42  ;;  %v17693_v50 = vld [vmem:[%s19837_s26 + $0x70] sm:$0xfe]  ;;  %s19617_s26 = sld [smem:[#allocation2]] }
 0x1cb   : > { %v10126_v63 = vpop.f32.mrf.mxu1  ;;  %17887 = vmatmul.mubr.f32.vlgmr.msra.gmra.mxu1 %v22182_v40  ;;  %v9814_v21 = vadd.f32 %v9813_v17, %v9736_v35  ;;  %17761 = vmatpush1.xpose.msra.mxu0 %v22149_v8  ;;  %v18792_v32 = vand.u32 4294901760, %v22299_v57  ;;  %v18276_v11 = vand.u32 4294901760, %v18275_v12 }
 0x1cc   : > { %18003 = vmatpush1.xpose.msra.mxu1 %v22149_v8  ;;  %17799 = vmatprep.mubr.f32.mxu0 %v17798_v10  ;;  %v9815_v20 = vpop.f32.mrf.mxu0  ;;  %v22309_v0 = vand.u32 4294901760, %v17717_v18 }
 0x1cd   : > { %v10128_v5 = vpop.f32.mrf.mxu1  ;;  %17924 = vmatprep.subr.mxu0 %v22160_v4  ;;  %18039 = vmatprep.mubr.f32.mxu1 %v17796_v24  ;;  %v9888_v9 = vadd.f32 %v9887_v19, %v9814_v21  ;;  %v17716_v24 = vrot.slane %v17691_v22, 1  ;;  %v19754_v4 = vld [vmem:[%s22480_s1 + $0x278] sm:$0x7f]  ;;  %v19753_v19 = vld [vmem:[%s22480_s1 + $0x270] sm:$0x7f]  ;;  %v18793_v10 = vsub.f32 %v22299_v57, %v18792_v32 }
 0x1ce   : > { %18157 = vmatprep.subr.mxu1 %v22139_v33  ;;  %v10044_v49 = vpop.f32.mrf.mxu0  ;;  %17805 = vmatmul.mubr.f32.vlgmr.msra.gmra.mxu0 %v17804_v3  ;;  %v22328_v44 = vsub.f32 %v17717_v18, %v22309_v0  ;;  %v22343_v29 = vand.u32 4294901760, %v19754_v4  ;;  %v22353_v54 = vand.u32 4294901760, %v19753_v19 }
 0x1cf   : > { %v10282_v1 = vpop.f32.mrf.mxu1  ;;  %18043 = vmatmul.mubr.f32.vlgmr.msra.gmra.mxu1 %v17802_v41  ;;  %v22302_v23 = vadd.f32 %v9888_v9, %v22033_v61  ;;  %v10127_v37 = vadd.f32 %v10126_v63, %v10044_v49  ;;  %17927 = vmatpush1.xpose.msra.mxu0 %v22165_v45  ;;  %v22319_v38 = vand.u32 4294901760, %v17716_v24  ;;  %v18794_v22 = vand.u32 4294901760, %v18793_v10 }
 0x1d0   : > { %18159 = vmatpush1.xpose.msra.mxu1 %v22149_v8  ;;  %17962 = vmatprep.mubr.f32.mxu0 %v22191_v13  ;;  %v18269_v8 = vsub.f32 %v22258_v55, %v18268_v2  ;;  %v10046_v41 = vpop.f32.mrf.mxu0  ;;  %v18740_v63 = vand.u32 4294901760, %v22328_v44  ;;  %v22364_v5 = vsub.f32 %v19754_v4, %v22343_v29  ;;  %v22369_v9 = vsub.f32 %v19753_v19, %v22353_v54 }
 0x1d1   : > { %v10284_v33 = vpop.f32.mrf.mxu1  ;;  %18081 = vmatprep.subr.mxu0 %v17842_v28  ;;  %18193 = vmatprep.mubr.f32.mxu1 %v22172_v7  ;;  %v22351_v31 = vsub.f32 %v17716_v24, %v22319_v38 }
 0x1d2   : > { %18317 = vmatprep.subr.mxu1 %v18316_v52  ;;  %v10204_v13 = vpop.f32.mrf.mxu0  ;;  %17965 = vmatmul.mubr.f32.vlgmr.msra.gmra.mxu0 %v22214_v26  ;;  %v18270_v26 = vand.u32 4294901760, %v18269_v8  ;;  %v18741_v52 = vsub.f32 %v22328_v44, %v18740_v63  ;;  %v19264_v33 = vand.u32 4294901760, %v22369_v9 }
 0x1d3   : > { %v10434_v61 = vpop.f32.mrf.mxu1  ;;  %18195 = vmatmul.mubr.f32.vlgmr.msra.gmra.mxu1 %v22182_v40  ;;  %v10205_v28 = vadd.f32 %v10204_v13, %v10127_v37  ;;  %18085 = vmatpush1.xpose.msra.mxu0 %v17848_v47  ;;  %v18746_v20 = vand.u32 4294901760, %v22351_v31 }
 0x1d4   : > { %18323 = vmatpush1.xpose.msra.mxu1 %v18322_v14  ;;  %18119 = vmatprep.mubr.f32.mxu0 %v22172_v7  ;;  %v10206_v53 = vpop.f32.mrf.mxu0  ;;  %v18787_v7 = vsub.f32 %v22294_v42, %v18786_v16  ;;  %v18742_v41 = vand.u32 4294901760, %v18741_v52  ;;  %v19265_v4 = vsub.f32 %v22369_v9, %v19264_v33 }
 0x1d5   : > { %v10436_v30 = vpop.f32.mrf.mxu1  ;;  %18231 = vmatprep.subr.mxu0 %v22206_v59  ;;  %18357 = vmatprep.mubr.f32.mxu1 %v22239_v15  ;;  %v10283_v45 = vadd.f32 %v10282_v1, %v10205_v28  ;;  %v18747_v37 = vsub.f32 %v22351_v31, %v18746_v20 }
 0x1d6   : > { %18473 = vmatprep.subr.mxu1 %v22206_v59  ;;  %v10360_v48 = vpop.f32.mrf.mxu0  ;;  %18121 = vmatmul.mubr.f32.vlgmr.msra.gmra.mxu0 %v22182_v40  ;;  %v17719_v40 = vrot.slane %v22336_v36, 1  ;;  %v18788_v21 = vand.u32 4294901760, %v18787_v7  ;;  %v19266_v7 = vand.u32 4294901760, %v19265_v4 }
 0x1d7   : > { %v10598_v47 = vpop.f32.mrf.mxu1  ;;  %18359 = vmatmul.mubr.f32.vlgmr.msra.gmra.mxu1 %v22249_v58  ;;  %v10361_v25 = vadd.f32 %v10360_v48, %v10283_v45  ;;  %18233 = vmatpush1.xpose.msra.mxu0 %v22216_v56 }
 0x1d8   : > { %18475 = vmatpush1.xpose.msra.mxu1 %v22216_v56  ;;  %18271 = vmatprep.mubr.f32.mxu0 %v18270_v26  ;;  %v10362_v17 = vpop.f32.mrf.mxu0  ;;  %v22376_v49 = vand.u32 4294901760, %v17719_v40 }
 0x1d9   : > { %v10600_v35 = vpop.f32.mrf.mxu1  ;;  %18396 = vmatprep.subr.mxu0 %v22227_v60  ;;  %18511 = vmatprep.mubr.f32.mxu1 %v18268_v2  ;;  %v10435_v3 = vadd.f32 %v10434_v61, %v10361_v25  ;;  %v17718_v2 = vrot.slane %v17693_v50, 1 }
 0x1da   : > { %18629 = vmatprep.subr.mxu1 %v22206_v59  ;;  %v10516_v18 = vpop.f32.mrf.mxu0  ;;  %18277 = vmatmul.mubr.f32.vlgmr.msra.gmra.mxu0 %v18276_v11  ;;  %v22392_v61 = vsub.f32 %v17719_v40, %v22376_v49 }
 0x1db   : > { %v10754_v46 = vpop.f32.mrf.mxu1  ;;  %18515 = vmatmul.mubr.f32.vlgmr.msra.gmra.mxu1 %v18274_v51  ;;  %v10517_v1 = vadd.f32 %v10516_v18, %v10435_v3  ;;  %18399 = vmatpush1.xpose.msra.mxu0 %v22232_v62  ;;  %v22386_v8 = vand.u32 4294901760, %v17718_v2 }
 0x1dc   : > { %18631 = vmatpush1.xpose.msra.mxu1 %v22216_v56  ;;  %18434 = vmatprep.mubr.f32.mxu0 %v22258_v55  ;;  %v10518_v56 = vpop.f32.mrf.mxu0  ;;  %v19258_v55 = vand.u32 4294901760, %v22364_v5  ;;  %v19212_v19 = vand.u32 4294901760, %v22392_v61 }
 0x1dd   : > { %v10756_v59 = vpop.f32.mrf.mxu1  ;;  %18553 = vmatprep.subr.mxu0 %v18314_v6  ;;  %18665 = vmatprep.mubr.f32.mxu1 %v22239_v15  ;;  %v10599_v14 = vadd.f32 %v10598_v47, %v10517_v1  ;;  %v22407_v28 = vsub.f32 %v17718_v2, %v22386_v8 }
 0x1de   : > { %18789 = vmatprep.subr.mxu1 %v18788_v21  ;;  %v10676_v24 = vpop.f32.mrf.mxu0  ;;  %18437 = vmatmul.mubr.f32.vlgmr.msra.gmra.mxu0 %v22281_v27  ;;  %v19259_v62 = vsub.f32 %v22364_v5, %v19258_v55  ;;  %v19213_v25 = vsub.f32 %v22392_v61, %v19212_v19 }
 0x1df   : > { %v10906_v51 = vpop.f32.mrf.mxu1  ;;  %18667 = vmatmul.mubr.f32.vlgmr.msra.gmra.mxu1 %v22249_v58  ;;  %v10677_v60 = vadd.f32 %v10676_v24, %v10599_v14  ;;  %18557 = vmatpush1.xpose.msra.mxu0 %v18320_v34  ;;  %v18748_v34 = vand.u32 4294901760, %v18747_v37  ;;  %v19218_v48 = vand.u32 4294901760, %v22407_v28 }
 0x1e0   : > { %18795 = vmatpush1.xpose.msra.mxu1 %v18794_v22  ;;  %18591 = vmatprep.mubr.f32.mxu0 %v22239_v15  ;;  %v10678_v13 = vpop.f32.mrf.mxu0  ;;  %v19260_v45 = vand.u32 4294901760, %v19259_v62 }
 0x1e1   : > { %v10908_v6 = vpop.f32.mrf.mxu1  ;;  %18703 = vmatprep.subr.mxu0 %v22273_v43  ;;  %18829 = vmatprep.mubr.f32.mxu1 %v22309_v0  ;;  %v10755_v27 = vadd.f32 %v10754_v46, %v10677_v60 }
 0x1e2   : > { %18945 = vmatprep.subr.mxu1 %v22273_v43  ;;  %v10832_v15 = vpop.f32.mrf.mxu0  ;;  %18593 = vmatmul.mubr.f32.vlgmr.msra.gmra.mxu0 %v22249_v58 }
 0x1e3   : > { %v11070_v12 = vpop.f32.mrf.mxu1  ;;  %18831 = vmatmul.mubr.f32.vlgmr.msra.gmra.mxu1 %v22319_v38  ;;  %v10833_v30 = vadd.f32 %v10832_v15, %v10755_v27  ;;  %18705 = vmatpush1.xpose.msra.mxu0 %v22283_v39 }
 0x1e4   : > { %18947 = vmatpush1.xpose.msra.mxu1 %v22283_v39  ;;  %18743 = vmatprep.mubr.f32.mxu0 %v18742_v41  ;;  %v10834_v53 = vpop.f32.mrf.mxu0 }
 0x1e5   : > { %v11072_v26 = vpop.f32.mrf.mxu1  ;;  %18868 = vmatprep.subr.mxu0 %v22294_v42  ;;  %18983 = vmatprep.mubr.f32.mxu1 %v18740_v63  ;;  %v10907_v58 = vadd.f32 %v10906_v51, %v10833_v30 }
 0x1e6   : > { %19101 = vmatprep.subr.mxu1 %v22273_v43  ;;  %v10988_v47 = vpop.f32.mrf.mxu0  ;;  %18749 = vmatmul.mubr.f32.vlgmr.msra.gmra.mxu0 %v18748_v34 }
 0x1e7   : > { %v11226_v36 = vpop.f32.mrf.mxu1  ;;  %18987 = vmatmul.mubr.f32.vlgmr.msra.gmra.mxu1 %v18746_v20  ;;  %v10989_v11 = vadd.f32 %v10988_v47, %v10907_v58  ;;  %18871 = vmatpush1.xpose.msra.mxu0 %v22299_v57 }
 0x1e8   : > { %19103 = vmatpush1.xpose.msra.mxu1 %v22283_v39  ;;  %18906 = vmatprep.mubr.f32.mxu0 %v22328_v44  ;;  %v10990_v35 = vpop.f32.mrf.mxu0  ;;  %v19219_v44 = vsub.f32 %v22407_v28, %v19218_v48 }
 0x1e9   : > { %v11228_v10 = vpop.f32.mrf.mxu1  ;;  %19025 = vmatprep.subr.mxu0 %v18786_v16  ;;  %19137 = vmatprep.mubr.f32.mxu1 %v22309_v0  ;;  %v11071_v43 = vadd.f32 %v11070_v12, %v10989_v11  ;;  %v19214_v16 = vand.u32 4294901760, %v19213_v25 }
 0x1ea   : > { %19261 = vmatprep.subr.mxu1 %v19260_v45  ;;  %v11148_v39 = vpop.f32.mrf.mxu0  ;;  %18909 = vmatmul.mubr.f32.vlgmr.msra.gmra.mxu0 %v22351_v31  ;;  %v19220_v57 = vand.u32 4294901760, %v19219_v44 }
 0x1eb   : > { %v11378_v63 = vpop.f32.mrf.mxu1  ;;  %19139 = vmatmul.mubr.f32.vlgmr.msra.gmra.mxu1 %v22319_v38  ;;  %v11149_v40 = vadd.f32 %v11148_v39, %v11071_v43  ;;  %19029 = vmatpush1.xpose.msra.mxu0 %v18792_v32 }
 0x1ec   : > { %19267 = vmatpush1.xpose.msra.mxu1 %v19266_v7  ;;  %19063 = vmatprep.mubr.f32.mxu0 %v22309_v0  ;;  %v11150_v50 = vpop.f32.mrf.mxu0 }
 0x1ed   : > { %v11380_v42 = vpop.f32.mrf.mxu1  ;;  %19175 = vmatprep.subr.mxu0 %v22343_v29  ;;  %19301 = vmatprep.mubr.f32.mxu1 %v22376_v49  ;;  %v11227_v17 = vadd.f32 %v11226_v36, %v11149_v40 }
 0x1ee   : > { %19417 = vmatprep.subr.mxu1 %v22343_v29  ;;  %v11304_v31 = vpop.f32.mrf.mxu0  ;;  %19065 = vmatmul.mubr.f32.vlgmr.msra.gmra.mxu0 %v22319_v38 }
 0x1ef   : > { %v11542_v3 = vpop.f32.mrf.mxu1  ;;  %19303 = vmatmul.mubr.f32.vlgmr.msra.gmra.mxu1 %v22386_v8  ;;  %v11305_v0 = vadd.f32 %v11304_v31, %v11227_v17  ;;  %19177 = vmatpush1.xpose.msra.mxu0 %v22353_v54 }
 0x1f0   : > { %19419 = vmatpush1.xpose.msra.mxu1 %v22353_v54  ;;  %19215 = vmatprep.mubr.f32.mxu0 %v19214_v16  ;;  %v11306_v46 = vpop.f32.mrf.mxu0 }
 0x1f1   : > { %v11544_v32 = vpop.f32.mrf.mxu1  ;;  %19340 = vmatprep.subr.mxu0 %v22364_v5  ;;  %19455 = vmatprep.mubr.f32.mxu1 %v19212_v19  ;;  %v11379_v21 = vadd.f32 %v11378_v63, %v11305_v0 }
 0x1f2   : > { %19573 = vmatprep.subr.mxu1 %v22343_v29  ;;  %v11460_v22 = vpop.f32.mrf.mxu0  ;;  %19221 = vmatmul.mubr.f32.vlgmr.msra.gmra.mxu0 %v19220_v57 }
 0x1f3   : > { %v11698_v18 = vpop.f32.mrf.mxu1  ;;  %19459 = vmatmul.mubr.f32.vlgmr.msra.gmra.mxu1 %v19218_v48  ;;  %v11461_v38 = vadd.f32 %v11460_v22, %v11379_v21  ;;  %19343 = vmatpush1.xpose.msra.mxu0 %v22369_v9 }
 0x1f4   : > { %19575 = vmatpush1.xpose.msra.mxu1 %v22353_v54  ;;  %19378 = vmatprep.mubr.f32.mxu0 %v22392_v61  ;;  %v11462_v2 = vpop.f32.mrf.mxu0 }
 0x1f5   : > { %v11700_v20 = vpop.f32.mrf.mxu1  ;;  %19497 = vmatprep.subr.mxu0 %v19258_v55  ;;  %19609 = vmatprep.mubr.f32.mxu1 %v22376_v49  ;;  %v11543_v1 = vadd.f32 %v11542_v3, %v11461_v38 }
 0x1f6   : > { %v11620_v29 = vpop.f32.mrf.mxu0  ;;  %19381 = vmatmul.mubr.f32.vlgmr.msra.gmra.mxu0 %v22407_v28 }
 0x1f7   : > { %v11850_v59 = vpop.f32.mrf.mxu1  ;;  %19611 = vmatmul.mubr.f32.vlgmr.msra.gmra.mxu1 %v22386_v8  ;;  %v11621_v54 = vadd.f32 %v11620_v29, %v11543_v1  ;;  %19501 = vmatpush1.xpose.msra.mxu0 %v19264_v33 }
 0x1f8   : > { %19535 = vmatprep.mubr.f32.mxu0 %v22376_v49  ;;  %v11622_v56 = vpop.f32.mrf.mxu0 }
 0x1f9   : > { %v11852_v52 = vpop.f32.mrf.mxu1  ;;  %v11699_v14 = vadd.f32 %v11698_v18, %v11621_v54 }
 0x1fa   : > { %v11776_v51 = vpop.f32.mrf.mxu0  ;;  %19537 = vmatmul.mubr.f32.vlgmr.msra.gmra.mxu0 %v22386_v8 }
 0x1fb   : > { %v12089_v5 = vpop.f32.mrf.mxu1  ;;  %v11777_v55 = vadd.f32 %v11776_v51, %v11699_v14 }
 0x1fc   : > { %v11778_v37 = vpop.f32.mrf.mxu0 }
 0x1fd   : > { %v12091_v24 = vpop.f32.mrf.mxu1  ;;  %v11851_v60 = vadd.f32 %v11850_v59, %v11777_v55 }
 0x1fe   : > { %v12007_v41 = vpop.f32.mrf.mxu0 }
 0x1ff   : > { %v12245_v6 = vpop.f32.mrf.mxu1  ;;  %v22451_v61 = vadd.f32 %v11851_v60, %v22302_v23  ;;  %v12090_v9 = vadd.f32 %v12089_v5, %v12007_v41 }
 0x200   : > { %v12009_v13 = vpop.f32.mrf.mxu0 }
 0x201   : > { %v12247_v33 = vpop.f32.mrf.mxu1 }
 0x202   : > { %v12167_v27 = vpop.f32.mrf.mxu0 }
 0x203   : > { %v12397_v49 = vpop.f32.mrf.mxu1  ;;  %v12168_v12 = vadd.f32 %v12167_v27, %v12090_v9 }
 0x204   : > { %v12169_v15 = vpop.f32.mrf.mxu0 }
 0x205   : > { %v12399_v62 = vpop.f32.mrf.mxu1  ;;  %v12246_v34 = vadd.f32 %v12245_v6, %v12168_v12 }
 0x206   : > { %v12323_v8 = vpop.f32.mrf.mxu0 }
 0x207   : > { %v12561_v4 = vpop.f32.mrf.mxu1  ;;  %v12324_v28 = vadd.f32 %v12323_v8, %v12246_v34 }
 0x208   : > { %v12325_v26 = vpop.f32.mrf.mxu0 }
 0x209   : > { %v12563_v30 = vpop.f32.mrf.mxu1  ;;  %v12398_v19 = vadd.f32 %v12397_v49, %v12324_v28 }
 0x20a   : > { %v12479_v58 = vpop.f32.mrf.mxu0 }
 0x20b   : > { %v12717_v53 = vpop.f32.mrf.mxu1  ;;  %v12480_v36 = vadd.f32 %v12479_v58, %v12398_v19 }
 0x20c   : > { %v12481_v45 = vpop.f32.mrf.mxu0 }
 0x20d   : > { %v12719_v23 = vpop.f32.mrf.mxu1  ;;  %v12562_v47 = vadd.f32 %v12561_v4, %v12480_v36 }
 0x20e   : > { %v12639_v48 = vpop.f32.mrf.mxu0 }
 0x20f   : > { %v12869_v7 = vpop.f32.mrf.mxu1  ;;  %v12640_v11 = vadd.f32 %v12639_v48, %v12562_v47 }
 0x210   : > { %v12641_v25 = vpop.f32.mrf.mxu0 }
 0x211   : > { %v12871_v10 = vpop.f32.mrf.mxu1  ;;  %v12718_v35 = vadd.f32 %v12717_v53, %v12640_v11 }
 0x212   : > { %v12795_v63 = vpop.f32.mrf.mxu0 }
 0x213   : > { %v13033_v43 = vpop.f32.mrf.mxu1  ;;  %v12796_v39 = vadd.f32 %v12795_v63, %v12718_v35 }
 0x214   : > { %v12797_v40 = vpop.f32.mrf.mxu0 }
 0x215   : > { %v13035_v44 = vpop.f32.mrf.mxu1  ;;  %v12870_v42 = vadd.f32 %v12869_v7, %v12796_v39 }
 0x216   : > { %v12951_v50 = vpop.f32.mrf.mxu0 }
 0x217   : > { %v13189_v16 = vpop.f32.mrf.mxu1  ;;  %v12952_v17 = vadd.f32 %v12951_v50, %v12870_v42 }
 0x218   : > { %v12953_v31 = vpop.f32.mrf.mxu0 }
 0x219   : > { %v13191_v3 = vpop.f32.mrf.mxu1  ;;  %v13034_v57 = vadd.f32 %v13033_v43, %v12952_v17 }
 0x21a   : > { %v13111_v32 = vpop.f32.mrf.mxu0 }
 0x21b   : > { %v13341_v0 = vpop.f32.mrf.mxu1  ;;  %v13112_v46 = vadd.f32 %v13111_v32, %v13034_v57 }
 0x21c   : > { %v13113_v18 = vpop.f32.mrf.mxu0 }
 0x21d   : > { %v13343_v21 = vpop.f32.mrf.mxu1  ;;  %v13190_v22 = vadd.f32 %v13189_v16, %v13112_v46 }
 0x21e   : > { %v13267_v20 = vpop.f32.mrf.mxu0 }
 0x21f   : > { %v13505_v38 = vpop.f32.mrf.mxu1  ;;  %v13268_v2 = vadd.f32 %v13267_v20, %v13190_v22 }
 0x220   : > { %v13269_v59 = vpop.f32.mrf.mxu0 }
 0x221   : > { %v13507_v1 = vpop.f32.mrf.mxu1  ;;  %v13342_v29 = vadd.f32 %v13341_v0, %v13268_v2 }
 0x222   : > { %v13423_v52 = vpop.f32.mrf.mxu0 }
 0x223   : > { %v13661_v54 = vpop.f32.mrf.mxu1  ;;  %v13424_v56 = vadd.f32 %v13423_v52, %v13342_v29 }
 0x224   : > { %v13425_v5 = vpop.f32.mrf.mxu0 }
 0x225   : > { %v13663_v14 = vpop.f32.mrf.mxu1  ;;  %v13506_v51 = vadd.f32 %v13505_v38, %v13424_v56 }
 0x226   : > { %v13583_v24 = vpop.f32.mrf.mxu0 }
 0x227   : > { %v13813_v55 = vpop.f32.mrf.mxu1  ;;  %v13584_v37 = vadd.f32 %v13583_v24, %v13506_v51 }
 0x228   : > { %v13585_v6 = vpop.f32.mrf.mxu0 }
 0x229   : > { %v13815_v60 = vpop.f32.mrf.mxu1  ;;  %v13662_v41 = vadd.f32 %v13661_v54, %v13584_v37 }
 0x22a   : > { %v13739_v33 = vpop.f32.mrf.mxu0 }
 0x22b   : > { %v14052_v9 = vpop.f32.mrf.mxu1  ;;  %v13740_v13 = vadd.f32 %v13739_v33, %v13662_v41 }
 0x22c   : > { %v13741_v27 = vpop.f32.mrf.mxu0 }
 0x22d   : > { %v14054_v49 = vpop.f32.mrf.mxu1  ;;  %v13814_v12 = vadd.f32 %v13813_v55, %v13740_v13 }
 0x22e   : > { %v13970_v15 = vpop.f32.mrf.mxu0 }
 0x22f   : > { %v14208_v62 = vpop.f32.mrf.mxu1  ;;  %v22454_v34 = vadd.f32 %v13814_v12, %v22451_v61  ;;  %v14053_v4 = vadd.f32 %v14052_v9, %v13970_v15 }
 0x230   : > { %v13972_v28 = vpop.f32.mrf.mxu0 }
 0x231   : > { %v14210_v8 = vpop.f32.mrf.mxu1 }
 0x232   : > { %v14130_v26 = vpop.f32.mrf.mxu0 }
 0x233   : > { %v14360_v30 = vpop.f32.mrf.mxu1  ;;  %v14131_v19 = vadd.f32 %v14130_v26, %v14053_v4 }
 0x234   : > { %v14132_v58 = vpop.f32.mrf.mxu0 }
 0x235   : > { %v14362_v53 = vpop.f32.mrf.mxu1  ;;  %v14209_v36 = vadd.f32 %v14208_v62, %v14131_v19 }
 0x236   : > { %v14286_v45 = vpop.f32.mrf.mxu0 }
 0x237   : > { %v14524_v23 = vpop.f32.mrf.mxu1  ;;  %v14287_v47 = vadd.f32 %v14286_v45, %v14209_v36 }
 0x238   : > { %v14288_v48 = vpop.f32.mrf.mxu0 }
 0x239   : > { %v14526_v7 = vpop.f32.mrf.mxu1  ;;  %v14361_v11 = vadd.f32 %v14360_v30, %v14287_v47 }
 0x23a   : > { %v14442_v25 = vpop.f32.mrf.mxu0 }
 0x23b   : > { %v14680_v10 = vpop.f32.mrf.mxu1  ;;  %v14443_v35 = vadd.f32 %v14442_v25, %v14361_v11 }
 0x23c   : > { %v14444_v43 = vpop.f32.mrf.mxu0 }
 0x23d   : > { %v14682_v61 = vpop.f32.mrf.mxu1  ;;  %v14525_v63 = vadd.f32 %v14524_v23, %v14443_v35 }
 0x23e   : > { %v14602_v44 = vpop.f32.mrf.mxu0 }
 0x23f   : > { %v14832_v39 = vpop.f32.mrf.mxu1  ;;  %v14603_v40 = vadd.f32 %v14602_v44, %v14525_v63 }
 0x240   : > { %v14604_v16 = vpop.f32.mrf.mxu0 }
 0x241   : > { %v14834_v42 = vpop.f32.mrf.mxu1  ;;  %v14681_v50 = vadd.f32 %v14680_v10, %v14603_v40 }
 0x242   : > { %v14758_v3 = vpop.f32.mrf.mxu0 }
 0x243   : > { %v14996_v17 = vpop.f32.mrf.mxu1  ;;  %v14759_v31 = vadd.f32 %v14758_v3, %v14681_v50 }
 0x244   : > { %v14760_v0 = vpop.f32.mrf.mxu0 }
 0x245   : > { %v14998_v57 = vpop.f32.mrf.mxu1  ;;  %v14833_v32 = vadd.f32 %v14832_v39, %v14759_v31 }
 0x246   : > { %v14914_v21 = vpop.f32.mrf.mxu0 }
 0x247   : > { %v15152_v46 = vpop.f32.mrf.mxu1  ;;  %v14915_v18 = vadd.f32 %v14914_v21, %v14833_v32 }
 0x248   : > { %v14916_v38 = vpop.f32.mrf.mxu0 }
 0x249   : > { %v15154_v22 = vpop.f32.mrf.mxu1  ;;  %v14997_v20 = vadd.f32 %v14996_v17, %v14915_v18 }
 0x24a   : > { %v15074_v1 = vpop.f32.mrf.mxu0 }
 0x24b   : > { %v15304_v2 = vpop.f32.mrf.mxu1  ;;  %v15075_v59 = vadd.f32 %v15074_v1, %v14997_v20 }
 0x24c   : > { %v15076_v54 = vpop.f32.mrf.mxu0 }
 0x24d   : > { %v15306_v29 = vpop.f32.mrf.mxu1  ;;  %v15153_v52 = vadd.f32 %v15152_v46, %v15075_v59 }
 0x24e   : > { %v15230_v14 = vpop.f32.mrf.mxu0 }
 0x24f   : > { %v15468_v56 = vpop.f32.mrf.mxu1  ;;  %v15231_v5 = vadd.f32 %v15230_v14, %v15153_v52 }
 0x250   : > { %v15232_v55 = vpop.f32.mrf.mxu0 }
 0x251   : > { %v15470_v51 = vpop.f32.mrf.mxu1  ;;  %v15305_v24 = vadd.f32 %v15304_v2, %v15231_v5 }
 0x252   : > { %v15386_v60 = vpop.f32.mrf.mxu0 }
 0x253   : > { %v15624_v37 = vpop.f32.mrf.mxu1  ;;  %v15387_v6 = vadd.f32 %v15386_v60, %v15305_v24 }
 0x254   : > { %v15388_v9 = vpop.f32.mrf.mxu0 }
 0x255   : > { %v15626_v41 = vpop.f32.mrf.mxu1  ;;  %v15469_v33 = vadd.f32 %v15468_v56, %v15387_v6 }
 0x256   : > { %v15546_v49 = vpop.f32.mrf.mxu0 }
 0x257   : > { %v15776_v13 = vpop.f32.mrf.mxu1  ;;  %v15547_v27 = vadd.f32 %v15546_v49, %v15469_v33 }
 0x258   : > { %v15548_v62 = vpop.f32.mrf.mxu0 }
 0x259   : > { %v15778_v12 = vpop.f32.mrf.mxu1  ;;  %v15625_v15 = vadd.f32 %v15624_v37, %v15547_v27 }
 0x25a   : > { %v15702_v8 = vpop.f32.mrf.mxu0 }
 0x25b   : > { %v15958_v4 = vpop.f32.mrf.mxu1  ;;  %v15703_v28 = vadd.f32 %v15702_v8, %v15625_v15 }
 0x25c   : > { %v15704_v26 = vpop.f32.mrf.mxu0 }
 0x25d   : > { %v15960_v30 = vpop.f32.mrf.mxu1  ;;  %v15777_v19 = vadd.f32 %v15776_v13, %v15703_v28 }
 0x25e   : > { %v15876_v58 = vpop.f32.mrf.mxu0 }
 0x25f   : > { %v16114_v53 = vpop.f32.mrf.mxu1  ;;  %v22457_v36 = vadd.f32 %v15777_v19, %v22454_v34  ;;  %v15959_v48 = vadd.f32 %v15958_v4, %v15876_v58 }
 0x260   : > { %v15878_v45 = vpop.f32.mrf.mxu0 }
 0x261   : > { %v16116_v23 = vpop.f32.mrf.mxu1 }
 0x262   : > { %v16036_v7 = vpop.f32.mrf.mxu0 }
 0x263   : > { %v16266_v47 = vpop.f32.mrf.mxu1  ;;  %v16037_v25 = vadd.f32 %v16036_v7, %v15959_v48 }
 0x264   : > { %v16038_v10 = vpop.f32.mrf.mxu0 }
 0x265   : > { %v16268_v11 = vpop.f32.mrf.mxu1  ;;  %v16115_v39 = vadd.f32 %v16114_v53, %v16037_v25 }
 0x266   : > { %v16192_v61 = vpop.f32.mrf.mxu0 }
 0x267   : > { %v16430_v35 = vpop.f32.mrf.mxu1  ;;  %v16193_v50 = vadd.f32 %v16192_v61, %v16115_v39 }
 0x268   : > { %v16194_v63 = vpop.f32.mrf.mxu0 }
 0x269   : > { %v16432_v43 = vpop.f32.mrf.mxu1  ;;  %v16267_v57 = vadd.f32 %v16266_v47, %v16193_v50 }
 0x26a   : > { %v16348_v40 = vpop.f32.mrf.mxu0 }
 0x26b   : > { %v16586_v44 = vpop.f32.mrf.mxu1  ;;  %v16349_v18 = vadd.f32 %v16348_v40, %v16267_v57 }
 0x26c   : > { %v16350_v16 = vpop.f32.mrf.mxu0 }
 0x26d   : > { %v16588_v42 = vpop.f32.mrf.mxu1  ;;  %v16431_v1 = vadd.f32 %v16430_v35, %v16349_v18 }
 0x26e   : > { %v16508_v17 = vpop.f32.mrf.mxu0 }
 0x26f   : > { %v16738_v34 = vpop.f32.mrf.mxu1  ;;  %v16509_v56 = vadd.f32 %v16508_v17, %v16431_v1 }
 0x270   : > { %v16510_v31 = vpop.f32.mrf.mxu0 }
 0x271   : > { %v16740_v3 = vpop.f32.mrf.mxu1  ;;  %v16587_v24 = vadd.f32 %v16586_v44, %v16509_v56 }
 0x272   : > { %v16664_v32 = vpop.f32.mrf.mxu0 }
 0x273   : > { %v16902_v0 = vpop.f32.mrf.mxu1  ;;  %v16665_v9 = vadd.f32 %v16664_v32, %v16587_v24 }
 0x274   : > { %v16666_v21 = vpop.f32.mrf.mxu0 }
 0x275   : > { %v16904_v46 = vpop.f32.mrf.mxu1  ;;  %v16739_v12 = vadd.f32 %v16738_v34, %v16665_v9 }
 0x276   : > { %v16820_v38 = vpop.f32.mrf.mxu0 }
 0x277   : > { %v17058_v22 = vpop.f32.mrf.mxu1  ;;  %v16821_v28 = vadd.f32 %v16820_v38, %v16739_v12 }
 0x278   : > { %v16822_v2 = vpop.f32.mrf.mxu0 }
 0x279   : > { %v17060_v20 = vpop.f32.mrf.mxu1  ;;  %v16903_v58 = vadd.f32 %v16902_v0, %v16821_v28 }
 0x27a   : > { %v16980_v29 = vpop.f32.mrf.mxu0 }
 0x27b   : > { %v17210_v59 = vpop.f32.mrf.mxu1  ;;  %v16981_v10 = vadd.f32 %v16980_v29, %v16903_v58 }
 0x27c   : > { %v16982_v52 = vpop.f32.mrf.mxu0 }
 0x27d   : > { %v17212_v54 = vpop.f32.mrf.mxu1  ;;  %v17059_v44 = vadd.f32 %v17058_v22, %v16981_v10 }
 0x27e   : > { %v17136_v5 = vpop.f32.mrf.mxu0 }
 0x27f   : > { %v22459_v14 = vpop.f32.mrf.mxu1  ;;  %v17137_v3 = vadd.f32 %v17136_v5, %v17059_v44 }
 0x280   : > { %v17138_v55 = vpop.f32.mrf.mxu0 }
 0x281   : > { %v17376_v51 = vpop.f32.mrf.mxu1  ;;  %v17211_v18 = vadd.f32 %v17210_v59, %v17137_v3 }
 0x282   : > { %v17292_v60 = vpop.f32.mrf.mxu0 }
 0x283   : > { %v22461_v37 = vpop.f32.mrf.mxu1  ;;  %v17293_v54 = vadd.f32 %v17292_v60, %v17211_v18 }
 0x284   : > { %v17294_v41 = vpop.f32.mrf.mxu0 }
 0x285   : > { %v17532_v6 = vpop.f32.mrf.mxu1 }
 0x286   : > { %v17452_v13 = vpop.f32.mrf.mxu0  ;;  %v17375_v6 = vadd.f32 %v22459_v14, %v17293_v54 }
 0x287   : > { %v22463_v33 = vpop.f32.mrf.mxu1 }
 0x288   : > { %v17454_v27 = vpop.f32.mrf.mxu0 }
 0x289   : > { %v17684_v49 = vpop.f32.mrf.mxu1 }
 0x28a   : > { %v22465_v15 = vpop.f32.mrf.mxu0 }
 0x28b   : > { %v17888_v62 = vpop.f32.mrf.mxu1 }
 0x28c   : > { %v17610_v8 = vpop.f32.mrf.mxu0 }
 0x28d   : > { %v17890_v4 = vpop.f32.mrf.mxu1 }
 0x28e   : > { %v17806_v26 = vpop.f32.mrf.mxu0 }
 0x28f   : > { %v18044_v30 = vpop.f32.mrf.mxu1  ;;  %v17889_v23 = vadd.f32 %v17888_v62, %v17806_v26  ;;  %v17453_v62 = vadd.f32 %v17452_v13, %v17375_v6 }
 0x290   : > { %v17808_v53 = vpop.f32.mrf.mxu0 }
 0x291   : > { %v18046_v19 = vpop.f32.mrf.mxu1 }
 0x292   : > { %v17966_v47 = vpop.f32.mrf.mxu0  ;;  %v17531_v19 = vadd.f32 %v22461_v37, %v17453_v62 }
 0x293   : > { %v18196_v45 = vpop.f32.mrf.mxu1  ;;  %v17967_v7 = vadd.f32 %v17966_v47, %v17889_v23 }
 0x294   : > { %v17968_v11 = vpop.f32.mrf.mxu0 }
 0x295   : > { %v18198_v48 = vpop.f32.mrf.mxu1  ;;  %v18045_v25 = vadd.f32 %v18044_v30, %v17967_v7  ;;  %v17609_v7 = vadd.f32 %v22465_v15, %v17531_v19 }
 0x296   : > { %v18122_v61 = vpop.f32.mrf.mxu0 }
 0x297   : > { %v18360_v35 = vpop.f32.mrf.mxu1  ;;  %v18123_v43 = vadd.f32 %v18122_v61, %v18045_v25  ;;  %v17683_v61 = vadd.f32 %v22463_v33, %v17609_v7 }
 0x298   : > { %v18124_v39 = vpop.f32.mrf.mxu0 }
 0x299   : > { %v18362_v63 = vpop.f32.mrf.mxu1  ;;  %v18197_v40 = vadd.f32 %v18196_v45, %v18123_v43  ;;  %v17686_v44 = vadd.f32 %v17683_v61, %v22457_v36 }
 0x29a   : > { %v18278_v16 = vpop.f32.mrf.mxu0 }
 0x29b   : > { %v18516_v42 = vpop.f32.mrf.mxu1  ;;  %v18279_v50 = vadd.f32 %v18278_v16, %v18197_v40 }
 0x29c   : > { %v18280_v17 = vpop.f32.mrf.mxu0 }
 0x29d   : > { %v18518_v34 = vpop.f32.mrf.mxu1  ;;  %v18361_v31 = vadd.f32 %v18360_v35, %v18279_v50 }
 0x29e   : > { %v18438_v0 = vpop.f32.mrf.mxu0 }
 0x29f   : > { %v18668_v57 = vpop.f32.mrf.mxu1  ;;  %v18439_v32 = vadd.f32 %v18438_v0, %v18361_v31 }
 0x2a0   : > { %v18440_v21 = vpop.f32.mrf.mxu0 }
 0x2a1   : > { %v18670_v46 = vpop.f32.mrf.mxu1  ;;  %v18517_v38 = vadd.f32 %v18516_v42, %v18439_v32  ;;  %v19618_v42 = vstv %s19617_s26 }
 0x2a2   : > { %v18594_v2 = vpop.f32.mrf.mxu0 }
 0x2a3   : > { %v18832_v20 = vpop.f32.mrf.mxu1  ;;  %v18595_v1 = vadd.f32 %v18594_v2, %v18517_v38 }
 0x2a4   : > { %v18596_v22 = vpop.f32.mrf.mxu0 }
 0x2a5   : > { %v18834_v29 = vpop.f32.mrf.mxu1  ;;  %v18669_v52 = vadd.f32 %v18668_v57, %v18595_v1 }
 0x2a6   : > { %v18750_v51 = vpop.f32.mrf.mxu0 }
 0x2a7   : > { %v18988_v56 = vpop.f32.mrf.mxu1  ;;  %v18751_v55 = vadd.f32 %v18750_v51, %v18669_v52 }
 0x2a8   : > { %v18752_v5 = vpop.f32.mrf.mxu0 }
 0x2a9   : > { %v18990_v24 = vpop.f32.mrf.mxu1  ;;  %v18833_v41 = vadd.f32 %v18832_v20, %v18751_v55 }
 0x2aa   : > { %v18910_v49 = vpop.f32.mrf.mxu0 }
 0x2ab   : > { %v19140_v9 = vpop.f32.mrf.mxu1  ;;  %v18911_v27 = vadd.f32 %v18910_v49, %v18833_v41 }
 0x2ac   : > { %v18912_v12 = vpop.f32.mrf.mxu0 }
 0x2ad   : > { %v19142_v59 = vpop.f32.mrf.mxu1  ;;  %v18989_v4 = vadd.f32 %v18988_v56, %v18911_v27 }
 0x2ae   : > { %v19066_v28 = vpop.f32.mrf.mxu0 }
 0x2af   : > { %v19304_v8 = vpop.f32.mrf.mxu1  ;;  %v19067_v30 = vadd.f32 %v19066_v28, %v18989_v4 }
 0x2b0   : > { %v19068_v26 = vpop.f32.mrf.mxu0 }
 0x2b1   : > { %v19306_v60 = vpop.f32.mrf.mxu1  ;;  %v19141_v53 = vadd.f32 %v19140_v9, %v19067_v30 }
 0x2b2   : > { %v19222_v23 = vpop.f32.mrf.mxu0 }
 0x2b3   : > { %v19460_v58 = vpop.f32.mrf.mxu1  ;;  %v19223_v45 = vadd.f32 %v19222_v23, %v19141_v53 }
 0x2b4   : > { %v19224_v47 = vpop.f32.mrf.mxu0 }
 0x2b5   : > { %v19462_v14 = vpop.f32.mrf.mxu1  ;;  %v19305_v48 = vadd.f32 %v19304_v8, %v19223_v45 }
 0x2b6   : > { %v19382_v13 = vpop.f32.mrf.mxu0 }
 0x2b7   : > { %v19612_v11 = vpop.f32.mrf.mxu1  ;;  %v19383_v10 = vadd.f32 %v19382_v13, %v19305_v48 }
 0x2b8   : > { %v19384_v35 = vpop.f32.mrf.mxu0 }
 0x2b9   : > { %v19614_v25 = vpop.f32.mrf.mxu1  ;;  %v19461_v43 = vadd.f32 %v19460_v58, %v19383_v10 }
 0x2ba   : > { %v19538_v37 = vpop.f32.mrf.mxu0 }
 0x2bb   : > { %v19539_v63 = vadd.f32 %v19538_v37, %v19461_v43 }
 0x2bc   : > { %v19540_v39 = vpop.f32.mrf.mxu0 }
 0x2bd   : > { %v19613_v40 = vadd.f32 %v19612_v11, %v19539_v63 }
 0x2bf   : > { %v19616_v16 = vadd.f32 %v19613_v40, %v17686_v44 }
 0x2c1   : > { %v19619_v15 = vadd.f32 %v19618_v42, %v19616_v16 }
 0x2c3   : > { %19621 = vst.msk [vmem:[%s169_s5] sm:$0x7f] %vm19620_vm6, %v19619_v15 }
 0x2c4 PF: > { %s14_s14 = sadd.s32 1, %s19772_s14  }
 0x2c5   : > { %p11_p4 = scmp.ge.s32.totalorder %s14_s14, 4  }
 0x2c7   :  { %13 = sbr.rel (!%p11_p4) target bundleno = 2 (0x2), region = 71 }

</bundles_post_ra>
